<compile_context>
chip_gen: v6e
topology: v6e:2x2x1
jax: 0.10.0
libtpu: 0.0.40
codegen_flags: <defaults>
</compile_context>

<pallas_src>
import jax
import jax.numpy as jnp
from jax.experimental import pallas as pl
from jax.experimental.pallas import tpu as pltpu

BN_EPS = 1e-5
_IM2COL_MAX_C = 128           # below this, K=C matmuls underfill the MXU -> im2col
_VMEM_LIMIT_BYTES = 48 * 1024 * 1024
_BLOCK_VMEM_BUDGET = 12 * 1024 * 1024   # budget for the NB-scaled per-step footprint
_TARGET_MXU_ROWS = 512                  # aim for at least this many matmul rows / step


# ----------------------------- kernel helpers -------------------------------

def _conv3x3(xpad_ref, w_ref, col_ref):
    """3x3 'SAME' conv over a zero-padded VMEM tile -> (NB*Hp*Wp, Cout) f32.

    xpad_ref : (NB, Hp+2, Wp+2, C) zero-padded input tile (VMEM scratch)
    w_ref    : (9*C, Cout)         weights in im2col layout (ky, kx, c) x Cout
    col_ref  : (NB*Hp*Wp, 9*C)     VMEM scratch, or None when C >= _IM2COL_MAX_C
    """
    NB, Hp2, Wp2, C = xpad_ref.shape
    Hp, Wp = Hp2 - 2, Wp2 - 2
    M = NB * Hp * Wp
    if col_ref is not None:
        # Small C: build the im2col matrix once and issue a single MXU matmul
        # with K = 9*C (instead of nine K=C matmuls).
        for ky in range(3):
            for kx in range(3):
                j = ky * 3 + kx
                patch = xpad_ref[:, ky:ky + Hp, kx:kx + Wp, :]
                col_ref[:, j * C:(j + 1) * C] = patch.reshape(M, C)
        return jnp.dot(col_ref[...], w_ref[...],
                       preferred_element_type=jnp.float32)
    # Large C: K already saturates the MXU; skip the extra im2col copy.
    acc = jnp.zeros((M, w_ref.shape[-1]), jnp.float32)
    for ky in range(3):
        for kx in range(3):
            j = ky * 3 + kx
            patch = xpad_ref[:, ky:ky + Hp, kx:kx + Wp, :].reshape(M, C)
            acc = acc + jnp.dot(patch, w_ref[j * C:(j + 1) * C, :],
                                preferred_element_type=jnp.float32)
    return acc


def _bn_partial_stats(acc):
    """Per-tile single-pass BN partials: [sum; sum of squares] -> (2, C)."""
    s = jnp.sum(acc, axis=0, keepdims=True)
    ss = jnp.sum(acc * acc, axis=0, keepdims=True)
    return jnp.concatenate([s, ss], axis=0)


def _bn_scale_shift(stats, gamma, beta, n_total):
    """Fold batch statistics + affine params into y * scale + shift (f32)."""
    s = jnp.sum(stats[:, 0, :], axis=0, keepdims=True)       # (1, C)
    ss = jnp.sum(stats[:, 1, :], axis=0, keepdims=True)      # (1, C)
    inv_n = 1.0 / n_total
    mean = s * inv_n
    var = ss * inv_n - mean * mean                            # biased variance
    inv_std = jax.lax.rsqrt(var + BN_EPS)
    scale = gamma * inv_std
    shift = beta - mean * scale
    return scale, shift


# ------------------------------ Pallas kernels ------------------------------

def pool_conv_kernel(x_ref, w_ref, y_ref, stats_ref, xpad_scr, *col_scr):
    # x_ref    : (NB, H, W, Cin)        batch tile of input images (NHWC)
    # w_ref    : (9*Cin, Cmid)          conv1 weights (im2col layout)
    # y_ref    : (NB, Hp*Wp, Cmid)      raw (pre-BN) conv1 activations
    # stats_ref: (1, 2, Cmid)           per-tile BN1 partial sums
    # xpad_scr : (NB, Hp+2, Wp+2, Cin)  VMEM halo scratch
    NB, Hp2, Wp2, Cin = xpad_scr.shape
    Hp, Wp = Hp2 - 2, Wp2 - 2

    # 2x2 / stride-2 max pool, fused with the conv's input load.
    x = x_ref[...]                                            # (NB, H, W, Cin)
    pooled = jnp.max(x.reshape(NB, Hp, 2, Wp, 2, Cin), axis=(2, 4))

    # padding=1 done in VMEM: zero the halo scratch, write the interior.
    xpad_scr[...] = jnp.zeros_like(xpad_scr)
    xpad_scr[:, 1:Hp + 1, 1:Wp + 1, :] = pooled.astype(xpad_scr.dtype)

    acc = _conv3x3(xpad_scr, w_ref, col_scr[0] if col_scr else None)
    y_ref[...] = acc.reshape(NB, Hp * Wp, -1).astype(y_ref.dtype)
    stats_ref[0] = _bn_partial_stats(acc)


def bn_relu_conv_kernel(y1_ref, stats1_ref, g1_ref, b1_ref, w2_ref,
                        y2_ref, stats2_ref, xpad_scr, *col_scr):
    # y1_ref    : (NB, Hp*Wp, Cmid)      raw conv1 activations (batch tile)
    # stats1_ref: (Ng, 2, Cmid)          all per-tile BN1 partial sums
    # g1/b1_ref : (1, Cmid)              BN1 affine parameters
    # w2_ref    : (9*Cmid, Cout)         conv2 weights (im2col layout)
    # y2_ref    : (NB, Hp*Wp, Cout)      raw conv2 activations
    # stats2_ref: (1, 2, Cout)           per-tile BN2 partial sums
    NB, Hp2, Wp2, Cmid = xpad_scr.shape
    Hp, Wp = Hp2 - 2, Wp2 - 2
    n_total = stats1_ref.shape[0] * NB * Hp * Wp

    scale, shift = _bn_scale_shift(stats1_ref[...], g1_ref[...], b1_ref[...],
                                   n_total)
    y = y1_ref[...].reshape(NB * Hp * Wp, Cmid).astype(jnp.float32)
    y = y * scale + shift                                     # BatchNorm1
    y = jnp.maximum(y, 0.0)                                   # ReLU

    xpad_scr[...] = jnp.zeros_like(xpad_scr)
    xpad_scr[:, 1:Hp + 1, 1:Wp + 1, :] = (
        y.reshape(NB, Hp, Wp, Cmid).astype(xpad_scr.dtype))

    acc = _conv3x3(xpad_scr, w2_ref, col_scr[0] if col_scr else None)
    y2_ref[...] = acc.reshape(NB, Hp * Wp, -1).astype(y2_ref.dtype)
    stats2_ref[0] = _bn_partial_stats(acc)


def bn_relu_kernel(y2_ref, stats2_ref, g2_ref, b2_ref, o_ref):
    # y2_ref    : (NB, Hp*Wp, Cout)      raw conv2 activations (batch tile)
    # stats2_ref: (Ng, 2, Cout)          all per-tile BN2 partial sums
    # o_ref     : (NB, Hp*Wp, Cout)      output (NHWC, spatially flattened)
    NB, HW, Cout = y2_ref.shape
    n_total = stats2_ref.shape[0] * NB * HW
    scale, shift = _bn_scale_shift(stats2_ref[...], g2_ref[...], b2_ref[...],
                                   n_total)
    y = y2_ref[...].reshape(NB * HW, Cout).astype(jnp.float32)
    y = y * scale + shift                                     # BatchNorm2
    o_ref[...] = jnp.maximum(y, 0.0).reshape(NB, HW, Cout).astype(o_ref.dtype)


# ------------------------------ wrappers -------------------------------------

def _compiler_params():
    return pltpu.CompilerParams(
        # Batch-tile axis is embarrassingly parallel -> shard across
        # TensorCores on multi-TC chips (v7x); harmless on v5e / v6e.
        dimension_semantics=("parallel",),
        vmem_limit_bytes=_VMEM_LIMIT_BYTES,
    )


def _per_image_vmem_bytes(H, W, Hp, Wp, Cin, Cmid, Cout, isz):
    """Conservative per-image, per-step VMEM footprint (max over the 3 stages).

    Inputs/outputs are counted double-buffered; scratch + f32 intermediates
    are counted once.
    """
    hw = Hp * Wp
    s1 = ((2 * H * W * Cin + 2 * hw * Cmid) * isz
          + (Hp + 2) * (Wp + 2) * Cin * isz
          + hw * Cmid * 4)                                    # f32 acc
    if Cin < _IM2COL_MAX_C:
        s1 += hw * 9 * Cin * isz
    s2 = ((2 * hw * Cmid + 2 * hw * Cout) * isz
          + (Hp + 2) * (Wp + 2) * Cmid * isz
          + hw * (Cmid + Cout) * 4)                           # f32 bn + acc
    if Cmid < _IM2COL_MAX_C:
        s2 += hw * 9 * Cmid * isz
    s3 = 2 * hw * Cout * isz + 3 * hw * Cout * 4              # f32 out + temp
    return max(s1, s2, s3)


def _pick_batch_tile(N, per_image_bytes, rows_per_image, budget_bytes):
    """Largest batch tile NB (a divisor of N) within the VMEM budget; prefer
    the smallest one that still reaches _TARGET_MXU_ROWS matmul rows/step."""
    divisors = [d for d in range(1, N + 1) if N % d == 0]
    fits = [d for d in divisors if d * per_image_bytes <= budget_bytes] or [1]
    for d in fits:
        if d * rows_per_image >= _TARGET_MXU_ROWS:
            return d
    return fits[-1]


def down_forward(x_nchw, params, *, mxu_dtype=jnp.bfloat16):
    """Down.forward: maxpool(2) -> (conv3x3 -> BN -> ReLU) x 2.  NCHW in/out.

    mxu_dtype: dtype of MXU operands and inter-layer activations (bf16 on
    v6e/v7x for ~2x MXU throughput and half the HBM traffic; f32 for an exact
    match to the f32 reference).  Accumulation and BN math always stay f32.
    """
    N, Cin, H, W = x_nchw.shape
    assert H % 2 == 0 and W % 2 == 0, "MaxPool2d(2) expects even H, W"
    Hp, Wp = H // 2, W // 2
    Cmid = params["w1"].shape[-1]
    Cout = params["w2"].shape[-1]

    isz = jnp.dtype(mxu_dtype).itemsize
    weight_bytes = 2 * (9 * Cin * Cmid + 9 * Cmid * Cout) * isz
    per_img = _per_image_vmem_bytes(H, W, Hp, Wp, Cin, Cmid, Cout, isz)
    budget = max(_BLOCK_VMEM_BUDGET - weight_bytes, per_img)
    NB = _pick_batch_tile(N, per_img, Hp * Wp, budget)
    Ng = N // NB

    # boundary layout glue (NCHW -> NHWC; channels land on the lane dim)
    x = jnp.transpose(x_nchw, (0, 2, 3, 1))
    w1 = params["w1"].reshape(9 * Cin, Cmid).astype(mxu_dtype)
    w2 = params["w2"].reshape(9 * Cmid, Cout).astype(mxu_dtype)
    g1 = params["g1"].reshape(1, Cmid).astype(jnp.float32)
    b1 = params["b1"].reshape(1, Cmid).astype(jnp.float32)
    g2 = params["g2"].reshape(1, Cout).astype(jnp.float32)
    b2 = params["b2"].reshape(1, Cout).astype(jnp.float32)

    scratch1 = [pltpu.VMEM((NB, Hp + 2, Wp + 2, Cin), mxu_dtype)]
    if Cin < _IM2COL_MAX_C:
        scratch1.append(pltpu.VMEM((NB * Hp * Wp, 9 * Cin), mxu_dtype))
    scratch2 = [pltpu.VMEM((NB, Hp + 2, Wp + 2, Cmid), mxu_dtype)]
    if Cmid < _IM2COL_MAX_C:
        scratch2.append(pltpu.VMEM((NB * Hp * Wp, 9 * Cmid), mxu_dtype))

    # 1) maxpool + pad-in-VMEM + conv1  (+ BN1 partial stats)
    y1, stats1 = pl.pallas_call(
        pool_conv_kernel,
        out_shape=(jax.ShapeDtypeStruct((N, Hp * Wp, Cmid), mxu_dtype),
                   jax.ShapeDtypeStruct((Ng, 2, Cmid), jnp.float32)),
        grid_spec=pltpu.PrefetchScalarGridSpec(
            num_scalar_prefetch=0, grid=(Ng,),
            in_specs=[
                pl.BlockSpec((NB, H, W, Cin), lambda n: (n, 0, 0, 0)),
                pl.BlockSpec((9 * Cin, Cmid), lambda n: (0, 0)),
            ],
            out_specs=[
                pl.BlockSpec((NB, Hp * Wp, Cmid), lambda n: (n, 0, 0)),
                pl.BlockSpec((1, 2, Cmid), lambda n: (n, 0, 0)),
            ],
            scratch_shapes=scratch1),
        compiler_params=_compiler_params(),
    )(x, w1)

    # 2) BN1 + ReLU + pad-in-VMEM + conv2  (+ BN2 partial stats)
    y2, stats2 = pl.pallas_call(
        bn_relu_conv_kernel,
        out_shape=(jax.ShapeDtypeStruct((N, Hp * Wp, Cout), mxu_dtype),
                   jax.ShapeDtypeStruct((Ng, 2, Cout), jnp.float32)),
        grid_spec=pltpu.PrefetchScalarGridSpec(
            num_scalar_prefetch=0, grid=(Ng,),
            in_specs=[
                pl.BlockSpec((NB, Hp * Wp, Cmid), lambda n: (n, 0, 0)),
                pl.BlockSpec((Ng, 2, Cmid), lambda n: (0, 0, 0)),
                pl.BlockSpec((1, Cmid), lambda n: (0, 0)),
                pl.BlockSpec((1, Cmid), lambda n: (0, 0)),
                pl.BlockSpec((9 * Cmid, Cout), lambda n: (0, 0)),
            ],
            out_specs=[
                pl.BlockSpec((NB, Hp * Wp, Cout), lambda n: (n, 0, 0)),
                pl.BlockSpec((1, 2, Cout), lambda n: (n, 0, 0)),
            ],
            scratch_shapes=scratch2),
        compiler_params=_compiler_params(),
    )(y1, stats1, g1, b1, w2)

    # 3) BN2 + ReLU
    out = pl.pallas_call(
        bn_relu_kernel,
        out_shape=jax.ShapeDtypeStruct((N, Hp * Wp, Cout), jnp.float32),
        grid_spec=pltpu.PrefetchScalarGridSpec(
            num_scalar_prefetch=0, grid=(Ng,),
            in_specs=[
                pl.BlockSpec((NB, Hp * Wp, Cout), lambda n: (n, 0, 0)),
                pl.BlockSpec((Ng, 2, Cout), lambda n: (0, 0, 0)),
                pl.BlockSpec((1, Cout), lambda n: (0, 0)),
                pl.BlockSpec((1, Cout), lambda n: (0, 0)),
            ],
            out_specs=pl.BlockSpec((NB, Hp * Wp, Cout), lambda n: (n, 0, 0))),
        compiler_params=_compiler_params(),
    )(y2, stats2, g2, b2)

    out = out.reshape(N, Hp, Wp, Cout)
    return jnp.transpose(out, (0, 3, 1, 2))                   # NHWC -> NCHW


# --------------------------- parameter init ----------------------------------

def init_params(key, in_channels, out_channels, mid_channels=None):
    if mid_channels is None:
        mid_channels = out_channels
    ks = jax.random.split(key, 6)

    def conv_w(k, cin, cout):
        fan_in = cin * 9
        w_oihw = jax.random.normal(k, (cout, cin, 3, 3), jnp.float32)
        w_oihw = w_oihw * (2.0 / fan_in) ** 0.5
        return jnp.transpose(w_oihw, (2, 3, 1, 0))            # OIHW -> HWIO

    return {
        "w1": conv_w(ks[0], in_channels, mid_channels),
        "g1": 1.0 + 0.1 * jax.random.normal(ks[1], (mid_channels,), jnp.float32),
        "b1": 0.1 * jax.random.normal(ks[2], (mid_channels,), jnp.float32),
        "w2": conv_w(ks[3], mid_channels, out_channels),
        "g2": 1.0 + 0.1 * jax.random.normal(ks[4], (out_channels,), jnp.float32),
        "b2": 0.1 * jax.random.normal(ks[5], (out_channels,), jnp.float32),
    }


# --------------------------- pure-JAX reference -------------------------------

def down_reference(x_nchw, params):
    x = jnp.transpose(x_nchw, (0, 2, 3, 1))
    N, H, W, C = x.shape
    x = jnp.max(x.reshape(N, H // 2, 2, W // 2, 2, C), axis=(2, 4))

    def block(x, w, g, b):
        y = jax.lax.conv_general_dilated(
            x, w, window_strides=(1, 1), padding="SAME",
            dimension_numbers=("NHWC", "HWIO", "NHWC"))
        mean = jnp.mean(y, axis=(0, 1, 2))
        var = jnp.mean((y - mean) ** 2, axis=(0, 1, 2))
        y = (y - mean) * jax.lax.rsqrt(var + BN_EPS) * g + b
        return jnp.maximum(y, 0.0)

    x = block(x, params["w1"], params["g1"], params["b1"])
    x = block(x, params["w2"], params["g2"], params["b2"])
    return jnp.transpose(x, (0, 3, 1, 2))


# ------------------------------ main ------------------------------------------

if __name__ == "__main__":
    key = jax.random.PRNGKey(0)
    kx, kp = jax.random.split(key)

    in_channels, out_channels = 4, 8
    x = jax.random.normal(kx, (2, in_channels, 16, 16), jnp.float32)   # NCHW
    params = init_params(kp, in_channels, out_channels)

    fwd = jax.jit(down_forward, static_argnames=("mxu_dtype",))
    ref = jax.block_until_ready(down_reference(x, params))

    # Exact-math path (f32 MXU operands): must match the f32 reference tightly.
    out_f32 = jax.block_until_ready(fwd(x, params, mxu_dtype=jnp.float32))
    assert out_f32.shape == (2, out_channels, 8, 8), out_f32.shape
    err32 = float(jnp.max(jnp.abs(out_f32 - ref)))
    assert jnp.allclose(out_f32, ref, rtol=1e-3, atol=1e-3), err32

    # Fast path (bf16 MXU operands + bf16 inter-layer activations; f32
    # accumulation / BN statistics): looser tolerance for bf16 quantization.
    out_bf16 = jax.block_until_ready(fwd(x, params, mxu_dtype=jnp.bfloat16))
    assert out_bf16.shape == (2, out_channels, 8, 8), out_bf16.shape
    err16 = float(jnp.max(jnp.abs(out_bf16 - ref)))
    assert jnp.allclose(out_bf16, ref, rtol=5e-2, atol=5e-2), err16

    print("KERNEL_OK")
</pallas_src>

<mosaic_0001>
module attributes {stable_mosaic.version = 11 : i64} {
  func.func @bn_relu_conv_kernel(%arg0: i32, %arg1: memref<2x64x8xf32, #tpu.memory_space<vmem>>, %arg2: memref<1x2x8xf32, #tpu.memory_space<vmem>>, %arg3: memref<1x8xf32, #tpu.memory_space<vmem>>, %arg4: memref<1x8xf32, #tpu.memory_space<vmem>>, %arg5: memref<72x8xf32, #tpu.memory_space<vmem>>, %arg6: memref<2x64x8xf32, #tpu.memory_space<vmem>>, %arg7: memref<1x2x8xf32, #tpu.memory_space<vmem>>, %arg8: memref<2x10x10x8xf32, #tpu.memory_space<vmem>>, %arg9: memref<128x72xf32, #tpu.memory_space<vmem>>) attributes {dimension_semantics = [#tpu.dimension_semantics<parallel>], iteration_bounds = array<i64: 1>, scalar_prefetch = 0 : i64, scratch_operands = 2 : i64, tpu.core_type = #tpu.core_type<tc>, window_params = [{transform_indices = @transform_0, window_bounds = array<i64: 2, 64, 8>}, {pipeline_mode = #tpu.pipeline_mode<synchronous>, transform_indices = @transform_1, window_bounds = array<i64: 1, 2, 8>}, {pipeline_mode = #tpu.pipeline_mode<synchronous>, transform_indices = @transform_2, window_bounds = array<i64: 1, 8>}, {pipeline_mode = #tpu.pipeline_mode<synchronous>, transform_indices = @transform_3, window_bounds = array<i64: 1, 8>}, {pipeline_mode = #tpu.pipeline_mode<synchronous>, transform_indices = @transform_4, window_bounds = array<i64: 72, 8>}, {transform_indices = @transform_5, window_bounds = array<i64: 2, 64, 8>}, {transform_indices = @transform_6, window_bounds = array<i64: 1, 2, 8>}]} {
    %c0 = arith.constant 0 : index
    %c0_0 = arith.constant 0 : index
    %c0_1 = arith.constant 0 : index
    %0 = vector.load %arg2[%c0, %c0_0, %c0_1] : memref<1x2x8xf32, #tpu.memory_space<vmem>>, vector<1x2x8xf32>
    %c0_2 = arith.constant 0 : index
    %c0_3 = arith.constant 0 : index
    %1 = vector.load %arg3[%c0_2, %c0_3] : memref<1x8xf32, #tpu.memory_space<vmem>>, vector<1x8xf32>
    %c0_4 = arith.constant 0 : index
    %c0_5 = arith.constant 0 : index
    %2 = vector.load %arg4[%c0_4, %c0_5] : memref<1x8xf32, #tpu.memory_space<vmem>>, vector<1x8xf32>
    %3 = vector.extract_strided_slice %0 {offsets = [0, 0, 0], sizes = [1, 1, 8], strides = [1, 1, 1]} : vector<1x2x8xf32> to vector<1x1x8xf32>
    %4 = vector.shape_cast %3 : vector<1x1x8xf32> to vector<1x8xf32>
    %cst = arith.constant dense<0.000000e+00> : vector<8xf32>
    %5 = vector.multi_reduction <add>, %4, %cst [0] : vector<1x8xf32> to vector<8xf32>
    %6 = vector.shape_cast %5 : vector<8xf32> to vector<1x8xf32>
    %7 = vector.extract_strided_slice %0 {offsets = [0, 1, 0], sizes = [1, 1, 8], strides = [1, 1, 1]} : vector<1x2x8xf32> to vector<1x1x8xf32>
    %8 = vector.shape_cast %7 : vector<1x1x8xf32> to vector<1x8xf32>
    %cst_6 = arith.constant dense<0.000000e+00> : vector<8xf32>
    %9 = vector.multi_reduction <add>, %8, %cst_6 [0] : vector<1x8xf32> to vector<8xf32>
    %10 = vector.shape_cast %9 : vector<8xf32> to vector<1x8xf32>
    %cst_7 = arith.constant 7.812500e-03 : f32
    %11 = vector.broadcast %cst_7 : f32 to vector<1x8xf32>
    %12 = arith.mulf %6, %11 : vector<1x8xf32>
    %cst_8 = arith.constant 7.812500e-03 : f32
    %13 = vector.broadcast %cst_8 : f32 to vector<1x8xf32>
    %14 = arith.mulf %10, %13 : vector<1x8xf32>
    %15 = arith.mulf %12, %12 : vector<1x8xf32>
    %16 = arith.subf %14, %15 : vector<1x8xf32>
    %cst_9 = arith.constant 9.99999974E-6 : f32
    %17 = vector.broadcast %cst_9 : f32 to vector<1x8xf32>
    %18 = arith.addf %16, %17 : vector<1x8xf32>
    %19 = math.rsqrt %18 : vector<1x8xf32>
    %20 = arith.mulf %1, %19 : vector<1x8xf32>
    %21 = arith.mulf %12, %20 : vector<1x8xf32>
    %22 = arith.subf %2, %21 : vector<1x8xf32>
    %c0_10 = arith.constant 0 : index
    %c0_11 = arith.constant 0 : index
    %c0_12 = arith.constant 0 : index
    %23 = vector.load %arg1[%c0_10, %c0_11, %c0_12] : memref<2x64x8xf32, #tpu.memory_space<vmem>>, vector<2x64x8xf32>
    %24 = vector.shape_cast %23 : vector<2x64x8xf32> to vector<128x8xf32>
    %25 = vector.broadcast %20 : vector<1x8xf32> to vector<128x8xf32>
    %26 = arith.mulf %24, %25 : vector<128x8xf32>
    %27 = vector.broadcast %22 : vector<1x8xf32> to vector<128x8xf32>
    %28 = arith.addf %26, %27 : vector<128x8xf32>
    %cst_13 = arith.constant 0.000000e+00 : f32
    %29 = vector.broadcast %cst_13 : f32 to vector<128x8xf32>
    %30 = arith.maximumf %28, %29 : vector<128x8xf32>
    %cst_14 = arith.constant 0.000000e+00 : f32
    %31 = vector.broadcast %cst_14 : f32 to vector<2x10x10x8xf32>
    %c0_15 = arith.constant 0 : index
    %c0_16 = arith.constant 0 : index
    %c0_17 = arith.constant 0 : index
    %c0_18 = arith.constant 0 : index
    %32 = vector.load %arg8[%c0_15, %c0_16, %c0_17, %c0_18] : memref<2x10x10x8xf32, #tpu.memory_space<vmem>>, vector<2x10x10x8xf32>
    tpu.vector_store %arg8[%c0_15, %c0_16, %c0_17, %c0_18], %31 {strides = array<i32>} : memref<2x10x10x8xf32, #tpu.memory_space<vmem>>, vector<2x10x10x8xf32>,
    %33 = vector.shape_cast %30 : vector<128x8xf32> to vector<2x8x8x8xf32>
    %c0_19 = arith.constant 0 : index
    %c1 = arith.constant 1 : index
    %c1_20 = arith.constant 1 : index
    %c0_21 = arith.constant 0 : index
    %34 = vector.load %arg8[%c0_19, %c1, %c1_20, %c0_21] : memref<2x10x10x8xf32, #tpu.memory_space<vmem>>, vector<2x8x8x8xf32>
    tpu.vector_store %arg8[%c0_19, %c1, %c1_20, %c0_21], %33 {strides = array<i32>} : memref<2x10x10x8xf32, #tpu.memory_space<vmem>>, vector<2x8x8x8xf32>,
    %c0_22 = arith.constant 0 : index
    %c0_23 = arith.constant 0 : index
    %c0_24 = arith.constant 0 : index
    %c0_25 = arith.constant 0 : index
    %35 = vector.load %arg8[%c0_22, %c0_23, %c0_24, %c0_25] : memref<2x10x10x8xf32, #tpu.memory_space<vmem>>, vector<2x8x8x8xf32>
    %36 = vector.shape_cast %35 : vector<2x8x8x8xf32> to vector<128x8xf32>
    %c0_26 = arith.constant 0 : index
    %c0_27 = arith.constant 0 : index
    %37 = vector.load %arg9[%c0_26, %c0_27] : memref<128x72xf32, #tpu.memory_space<vmem>>, vector<128x8xf32>
    tpu.vector_store %arg9[%c0_26, %c0_27], %36 {strides = array<i32>} : memref<128x72xf32, #tpu.memory_space<vmem>>, vector<128x8xf32>,
    %c0_28 = arith.constant 0 : index
    %c0_29 = arith.constant 0 : index
    %c1_30 = arith.constant 1 : index
    %c0_31 = arith.constant 0 : index
    %38 = vector.load %arg8[%c0_28, %c0_29, %c1_30, %c0_31] : memref<2x10x10x8xf32, #tpu.memory_space<vmem>>, vector<2x8x8x8xf32>
    %39 = vector.shape_cast %38 : vector<2x8x8x8xf32> to vector<128x8xf32>
    %c0_32 = arith.constant 0 : index
    %c8 = arith.constant 8 : index
    %40 = vector.load %arg9[%c0_32, %c8] : memref<128x72xf32, #tpu.memory_space<vmem>>, vector<128x8xf32>
    tpu.vector_store %arg9[%c0_32, %c8], %39 {strides = array<i32>} : memref<128x72xf32, #tpu.memory_space<vmem>>, vector<128x8xf32>,
    %c0_33 = arith.constant 0 : index
    %c0_34 = arith.constant 0 : index
    %c2 = arith.constant 2 : index
    %c0_35 = arith.constant 0 : index
    %41 = vector.load %arg8[%c0_33, %c0_34, %c2, %c0_35] : memref<2x10x10x8xf32, #tpu.memory_space<vmem>>, vector<2x8x8x8xf32>
    %42 = vector.shape_cast %41 : vector<2x8x8x8xf32> to vector<128x8xf32>
    %c0_36 = arith.constant 0 : index
    %c16 = arith.constant 16 : index
    %43 = vector.load %arg9[%c0_36, %c16] : memref<128x72xf32, #tpu.memory_space<vmem>>, vector<128x8xf32>
    tpu.vector_store %arg9[%c0_36, %c16], %42 {strides = array<i32>} : memref<128x72xf32, #tpu.memory_space<vmem>>, vector<128x8xf32>,
    %c0_37 = arith.constant 0 : index
    %c1_38 = arith.constant 1 : index
    %c0_39 = arith.constant 0 : index
    %c0_40 = arith.constant 0 : index
    %44 = vector.load %arg8[%c0_37, %c1_38, %c0_39, %c0_40] : memref<2x10x10x8xf32, #tpu.memory_space<vmem>>, vector<2x8x8x8xf32>
    %45 = vector.shape_cast %44 : vector<2x8x8x8xf32> to vector<128x8xf32>
    %c0_41 = arith.constant 0 : index
    %c24 = arith.constant 24 : index
    %46 = vector.load %arg9[%c0_41, %c24] : memref<128x72xf32, #tpu.memory_space<vmem>>, vector<128x8xf32>
    tpu.vector_store %arg9[%c0_41, %c24], %45 {strides = array<i32>} : memref<128x72xf32, #tpu.memory_space<vmem>>, vector<128x8xf32>,
    %c0_42 = arith.constant 0 : index
    %c1_43 = arith.constant 1 : index
    %c1_44 = arith.constant 1 : index
    %c0_45 = arith.constant 0 : index
    %47 = vector.load %arg8[%c0_42, %c1_43, %c1_44, %c0_45] : memref<2x10x10x8xf32, #tpu.memory_space<vmem>>, vector<2x8x8x8xf32>
    %48 = vector.shape_cast %47 : vector<2x8x8x8xf32> to vector<128x8xf32>
    %c0_46 = arith.constant 0 : index
    %c32 = arith.constant 32 : index
    %49 = vector.load %arg9[%c0_46, %c32] : memref<128x72xf32, #tpu.memory_space<vmem>>, vector<128x8xf32>
    tpu.vector_store %arg9[%c0_46, %c32], %48 {strides = array<i32>} : memref<128x72xf32, #tpu.memory_space<vmem>>, vector<128x8xf32>,
    %c0_47 = arith.constant 0 : index
    %c1_48 = arith.constant 1 : index
    %c2_49 = arith.constant 2 : index
    %c0_50 = arith.constant 0 : index
    %50 = vector.load %arg8[%c0_47, %c1_48, %c2_49, %c0_50] : memref<2x10x10x8xf32, #tpu.memory_space<vmem>>, vector<2x8x8x8xf32>
    %51 = vector.shape_cast %50 : vector<2x8x8x8xf32> to vector<128x8xf32>
    %c0_51 = arith.constant 0 : index
    %c40 = arith.constant 40 : index
    %52 = vector.load %arg9[%c0_51, %c40] : memref<128x72xf32, #tpu.memory_space<vmem>>, vector<128x8xf32>
    tpu.vector_store %arg9[%c0_51, %c40], %51 {strides = array<i32>} : memref<128x72xf32, #tpu.memory_space<vmem>>, vector<128x8xf32>,
    %c0_52 = arith.constant 0 : index
    %c2_53 = arith.constant 2 : index
    %c0_54 = arith.constant 0 : index
    %c0_55 = arith.constant 0 : index
    %53 = vector.load %arg8[%c0_52, %c2_53, %c0_54, %c0_55] : memref<2x10x10x8xf32, #tpu.memory_space<vmem>>, vector<2x8x8x8xf32>
    %54 = vector.shape_cast %53 : vector<2x8x8x8xf32> to vector<128x8xf32>
    %c0_56 = arith.constant 0 : index
    %c48 = arith.constant 48 : index
    %55 = vector.load %arg9[%c0_56, %c48] : memref<128x72xf32, #tpu.memory_space<vmem>>, vector<128x8xf32>
    tpu.vector_store %arg9[%c0_56, %c48], %54 {strides = array<i32>} : memref<128x72xf32, #tpu.memory_space<vmem>>, vector<128x8xf32>,
    %c0_57 = arith.constant 0 : index
    %c2_58 = arith.constant 2 : index
    %c1_59 = arith.constant 1 : index
    %c0_60 = arith.constant 0 : index
    %56 = vector.load %arg8[%c0_57, %c2_58, %c1_59, %c0_60] : memref<2x10x10x8xf32, #tpu.memory_space<vmem>>, vector<2x8x8x8xf32>
    %57 = vector.shape_cast %56 : vector<2x8x8x8xf32> to vector<128x8xf32>
    %c0_61 = arith.constant 0 : index
    %c56 = arith.constant 56 : index
    %58 = vector.load %arg9[%c0_61, %c56] : memref<128x72xf32, #tpu.memory_space<vmem>>, vector<128x8xf32>
    tpu.vector_store %arg9[%c0_61, %c56], %57 {strides = array<i32>} : memref<128x72xf32, #tpu.memory_space<vmem>>, vector<128x8xf32>,
    %c0_62 = arith.constant 0 : index
    %c2_63 = arith.constant 2 : index
    %c2_64 = arith.constant 2 : index
    %c0_65 = arith.constant 0 : index
    %59 = vector.load %arg8[%c0_62, %c2_63, %c2_64, %c0_65] : memref<2x10x10x8xf32, #tpu.memory_space<vmem>>, vector<2x8x8x8xf32>
    %60 = vector.shape_cast %59 : vector<2x8x8x8xf32> to vector<128x8xf32>
    %c0_66 = arith.constant 0 : index
    %c64 = arith.constant 64 : index
    %61 = vector.load %arg9[%c0_66, %c64] : memref<128x72xf32, #tpu.memory_space<vmem>>, vector<128x8xf32>
    tpu.vector_store %arg9[%c0_66, %c64], %60 {strides = array<i32>} : memref<128x72xf32, #tpu.memory_space<vmem>>, vector<128x8xf32>,
    %c0_67 = arith.constant 0 : index
    %c0_68 = arith.constant 0 : index
    %62 = vector.load %arg9[%c0_67, %c0_68] : memref<128x72xf32, #tpu.memory_space<vmem>>, vector<128x72xf32>
    %c0_69 = arith.constant 0 : index
    %c0_70 = arith.constant 0 : index
    %63 = vector.load %arg5[%c0_69, %c0_70] : memref<72x8xf32, #tpu.memory_space<vmem>>, vector<72x8xf32>
    %cst_71 = arith.constant dense<0.000000e+00> : vector<128x8xf32>
    %64 = tpu.matmul %62, %63, %cst_71 {dimension_numbers = #tpu.dot_dimension_numbers<[1], [0], [0], [1], [0, 0, 1, 1], [], []>} : vector<128x72xf32>, vector<72x8xf32>, vector<128x8xf32> -> vector<128x8xf32>
    %65 = vector.shape_cast %64 : vector<128x8xf32> to vector<2x64x8xf32>
    %c0_72 = arith.constant 0 : index
    %c0_73 = arith.constant 0 : index
    %c0_74 = arith.constant 0 : index
    %66 = vector.load %arg6[%c0_72, %c0_73, %c0_74] : memref<2x64x8xf32, #tpu.memory_space<vmem>>, vector<2x64x8xf32>
    tpu.vector_store %arg6[%c0_72, %c0_73, %c0_74], %65 {strides = array<i32>} : memref<2x64x8xf32, #tpu.memory_space<vmem>>, vector<2x64x8xf32>,
    %cst_75 = arith.constant dense<0.000000e+00> : vector<8xf32>
    %67 = vector.multi_reduction <add>, %64, %cst_75 [0] : vector<128x8xf32> to vector<8xf32>
    %68 = vector.shape_cast %67 : vector<8xf32> to vector<1x8xf32>
    %69 = arith.mulf %64, %64 : vector<128x8xf32>
    %cst_76 = arith.constant dense<0.000000e+00> : vector<8xf32>
    %70 = vector.multi_reduction <add>, %69, %cst_76 [0] : vector<128x8xf32> to vector<8xf32>
    %71 = vector.shape_cast %70 : vector<8xf32> to vector<1x8xf32>
    %72 = tpu.concatenate %68, %71 in 0 : vector<1x8xf32>, vector<1x8xf32> -> vector<2x8xf32>
    %c0_77 = arith.constant 0 : index
    %c0_78 = arith.constant 0 : index
    %c0_79 = arith.constant 0 : index
    %73 = vector.load %arg7[%c0_77, %c0_78, %c0_79] : memref<1x2x8xf32, #tpu.memory_space<vmem>>, vector<1x2x8xf32>
    %74 = vector.shape_cast %73 : vector<1x2x8xf32> to vector<2x8xf32>
    %75 = vector.shape_cast %72 : vector<2x8xf32> to vector<1x2x8xf32>
    tpu.vector_store %arg7[%c0_77, %c0_78, %c0_79], %75 {strides = array<i32>} : memref<1x2x8xf32, #tpu.memory_space<vmem>>, vector<1x2x8xf32>,
    return
  }
  func.func @transform_0(%arg0: i32) -> (i32, i32, i32) {
    %c0_i32 = arith.constant 0 : i32
    %c0_i32_0 = arith.constant 0 : i32
    %c0_i32_1 = arith.constant 0 : i32
    return %arg0, %c0_i32, %c0_i32_0 : i32, i32, i32
  }
  func.func @transform_1(%arg0: i32) -> (i32, i32, i32) {
    %c0_i32 = arith.constant 0 : i32
    %c0_i32_0 = arith.constant 0 : i32
    %c0_i32_1 = arith.constant 0 : i32
    %c0_i32_2 = arith.constant 0 : i32
    return %c0_i32, %c0_i32_0, %c0_i32_1 : i32, i32, i32
  }
  func.func @transform_2(%arg0: i32) -> (i32, i32) {
    %c0_i32 = arith.constant 0 : i32
    %c0_i32_0 = arith.constant 0 : i32
    %c0_i32_1 = arith.constant 0 : i32
    return %c0_i32, %c0_i32_0 : i32, i32
  }
  func.func @transform_3(%arg0: i32) -> (i32, i32) {
    %c0_i32 = arith.constant 0 : i32
    %c0_i32_0 = arith.constant 0 : i32
    %c0_i32_1 = arith.constant 0 : i32
    return %c0_i32, %c0_i32_0 : i32, i32
  }
  func.func @transform_4(%arg0: i32) -> (i32, i32) {
    %c0_i32 = arith.constant 0 : i32
    %c0_i32_0 = arith.constant 0 : i32
    %c0_i32_1 = arith.constant 0 : i32
    return %c0_i32, %c0_i32_0 : i32, i32
  }
  func.func @transform_5(%arg0: i32) -> (i32, i32, i32) {
    %c0_i32 = arith.constant 0 : i32
    %c0_i32_0 = arith.constant 0 : i32
    %c0_i32_1 = arith.constant 0 : i32
    return %arg0, %c0_i32, %c0_i32_0 : i32, i32, i32
  }
  func.func @transform_6(%arg0: i32) -> (i32, i32, i32) {
    %c0_i32 = arith.constant 0 : i32
    %c0_i32_0 = arith.constant 0 : i32
    %c0_i32_1 = arith.constant 0 : i32
    return %arg0, %c0_i32, %c0_i32_0 : i32, i32, i32
  }
}

module attributes {stable_mosaic.version = 11 : i64} {
  func.func @pool_conv_kernel(%arg0: i32, %arg1: memref<2x16x16x4xf32, #tpu.memory_space<vmem>>, %arg2: memref<36x8xf32, #tpu.memory_space<vmem>>, %arg3: memref<2x64x8xf32, #tpu.memory_space<vmem>>, %arg4: memref<1x2x8xf32, #tpu.memory_space<vmem>>, %arg5: memref<2x10x10x4xf32, #tpu.memory_space<vmem>>, %arg6: memref<128x36xf32, #tpu.memory_space<vmem>>) attributes {dimension_semantics = [#tpu.dimension_semantics<parallel>], iteration_bounds = array<i64: 1>, scalar_prefetch = 0 : i64, scratch_operands = 2 : i64, tpu.core_type = #tpu.core_type<tc>, window_params = [{transform_indices = @transform_0, window_bounds = array<i64: 2, 16, 16, 4>}, {pipeline_mode = #tpu.pipeline_mode<synchronous>, transform_indices = @transform_1, window_bounds = array<i64: 36, 8>}, {transform_indices = @transform_2, window_bounds = array<i64: 2, 64, 8>}, {transform_indices = @transform_3, window_bounds = array<i64: 1, 2, 8>}]} {
    %c0 = arith.constant 0 : index
    %c0_0 = arith.constant 0 : index
    %c0_1 = arith.constant 0 : index
    %c0_2 = arith.constant 0 : index
    %0 = vector.load %arg1[%c0, %c0_0, %c0_1, %c0_2] : memref<2x16x16x4xf32, #tpu.memory_space<vmem>>, vector<2x16x16x4xf32>
    %1 = vector.shape_cast %0 : vector<2x16x16x4xf32> to vector<2x8x2x8x2x4xf32>
    %cst = arith.constant dense<0xFF800000> : vector<2x8x8x4xf32>
    %2 = vector.multi_reduction <maximumf>, %1, %cst [2, 4] : vector<2x8x2x8x2x4xf32> to vector<2x8x8x4xf32>
    %cst_3 = arith.constant 0.000000e+00 : f32
    %3 = vector.broadcast %cst_3 : f32 to vector<2x10x10x4xf32>
    %c0_4 = arith.constant 0 : index
    %c0_5 = arith.constant 0 : index
    %c0_6 = arith.constant 0 : index
    %c0_7 = arith.constant 0 : index
    %4 = vector.load %arg5[%c0_4, %c0_5, %c0_6, %c0_7] : memref<2x10x10x4xf32, #tpu.memory_space<vmem>>, vector<2x10x10x4xf32>
    tpu.vector_store %arg5[%c0_4, %c0_5, %c0_6, %c0_7], %3 {strides = array<i32>} : memref<2x10x10x4xf32, #tpu.memory_space<vmem>>, vector<2x10x10x4xf32>,
    %c0_8 = arith.constant 0 : index
    %c1 = arith.constant 1 : index
    %c1_9 = arith.constant 1 : index
    %c0_10 = arith.constant 0 : index
    %5 = vector.load %arg5[%c0_8, %c1, %c1_9, %c0_10] : memref<2x10x10x4xf32, #tpu.memory_space<vmem>>, vector<2x8x8x4xf32>
    tpu.vector_store %arg5[%c0_8, %c1, %c1_9, %c0_10], %2 {strides = array<i32>} : memref<2x10x10x4xf32, #tpu.memory_space<vmem>>, vector<2x8x8x4xf32>,
    %c0_11 = arith.constant 0 : index
    %c0_12 = arith.constant 0 : index
    %c0_13 = arith.constant 0 : index
    %c0_14 = arith.constant 0 : index
    %6 = vector.load %arg5[%c0_11, %c0_12, %c0_13, %c0_14] : memref<2x10x10x4xf32, #tpu.memory_space<vmem>>, vector<2x8x8x4xf32>
    %7 = vector.shape_cast %6 : vector<2x8x8x4xf32> to vector<128x4xf32>
    %c0_15 = arith.constant 0 : index
    %c0_16 = arith.constant 0 : index
    %8 = vector.load %arg6[%c0_15, %c0_16] : memref<128x36xf32, #tpu.memory_space<vmem>>, vector<128x4xf32>
    tpu.vector_store %arg6[%c0_15, %c0_16], %7 {strides = array<i32>} : memref<128x36xf32, #tpu.memory_space<vmem>>, vector<128x4xf32>,
    %c0_17 = arith.constant 0 : index
    %c0_18 = arith.constant 0 : index
    %c1_19 = arith.constant 1 : index
    %c0_20 = arith.constant 0 : index
    %9 = vector.load %arg5[%c0_17, %c0_18, %c1_19, %c0_20] : memref<2x10x10x4xf32, #tpu.memory_space<vmem>>, vector<2x8x8x4xf32>
    %10 = vector.shape_cast %9 : vector<2x8x8x4xf32> to vector<128x4xf32>
    %c0_21 = arith.constant 0 : index
    %c4 = arith.constant 4 : index
    %11 = vector.load %arg6[%c0_21, %c4] : memref<128x36xf32, #tpu.memory_space<vmem>>, vector<128x4xf32>
    tpu.vector_store %arg6[%c0_21, %c4], %10 {strides = array<i32>} : memref<128x36xf32, #tpu.memory_space<vmem>>, vector<128x4xf32>,
    %c0_22 = arith.constant 0 : index
    %c0_23 = arith.constant 0 : index
    %c2 = arith.constant 2 : index
    %c0_24 = arith.constant 0 : index
    %12 = vector.load %arg5[%c0_22, %c0_23, %c2, %c0_24] : memref<2x10x10x4xf32, #tpu.memory_space<vmem>>, vector<2x8x8x4xf32>
    %13 = vector.shape_cast %12 : vector<2x8x8x4xf32> to vector<128x4xf32>
    %c0_25 = arith.constant 0 : index
    %c8 = arith.constant 8 : index
    %14 = vector.load %arg6[%c0_25, %c8] : memref<128x36xf32, #tpu.memory_space<vmem>>, vector<128x4xf32>
    tpu.vector_store %arg6[%c0_25, %c8], %13 {strides = array<i32>} : memref<128x36xf32, #tpu.memory_space<vmem>>, vector<128x4xf32>,
    %c0_26 = arith.constant 0 : index
    %c1_27 = arith.constant 1 : index
    %c0_28 = arith.constant 0 : index
    %c0_29 = arith.constant 0 : index
    %15 = vector.load %arg5[%c0_26, %c1_27, %c0_28, %c0_29] : memref<2x10x10x4xf32, #tpu.memory_space<vmem>>, vector<2x8x8x4xf32>
    %16 = vector.shape_cast %15 : vector<2x8x8x4xf32> to vector<128x4xf32>
    %c0_30 = arith.constant 0 : index
    %c12 = arith.constant 12 : index
    %17 = vector.load %arg6[%c0_30, %c12] : memref<128x36xf32, #tpu.memory_space<vmem>>, vector<128x4xf32>
    tpu.vector_store %arg6[%c0_30, %c12], %16 {strides = array<i32>} : memref<128x36xf32, #tpu.memory_space<vmem>>, vector<128x4xf32>,
    %c0_31 = arith.constant 0 : index
    %c1_32 = arith.constant 1 : index
    %c1_33 = arith.constant 1 : index
    %c0_34 = arith.constant 0 : index
    %18 = vector.load %arg5[%c0_31, %c1_32, %c1_33, %c0_34] : memref<2x10x10x4xf32, #tpu.memory_space<vmem>>, vector<2x8x8x4xf32>
    %19 = vector.shape_cast %18 : vector<2x8x8x4xf32> to vector<128x4xf32>
    %c0_35 = arith.constant 0 : index
    %c16 = arith.constant 16 : index
    %20 = vector.load %arg6[%c0_35, %c16] : memref<128x36xf32, #tpu.memory_space<vmem>>, vector<128x4xf32>
    tpu.vector_store %arg6[%c0_35, %c16], %19 {strides = array<i32>} : memref<128x36xf32, #tpu.memory_space<vmem>>, vector<128x4xf32>,
    %c0_36 = arith.constant 0 : index
    %c1_37 = arith.constant 1 : index
    %c2_38 = arith.constant 2 : index
    %c0_39 = arith.constant 0 : index
    %21 = vector.load %arg5[%c0_36, %c1_37, %c2_38, %c0_39] : memref<2x10x10x4xf32, #tpu.memory_space<vmem>>, vector<2x8x8x4xf32>
    %22 = vector.shape_cast %21 : vector<2x8x8x4xf32> to vector<128x4xf32>
    %c0_40 = arith.constant 0 : index
    %c20 = arith.constant 20 : index
    %23 = vector.load %arg6[%c0_40, %c20] : memref<128x36xf32, #tpu.memory_space<vmem>>, vector<128x4xf32>
    tpu.vector_store %arg6[%c0_40, %c20], %22 {strides = array<i32>} : memref<128x36xf32, #tpu.memory_space<vmem>>, vector<128x4xf32>,
    %c0_41 = arith.constant 0 : index
    %c2_42 = arith.constant 2 : index
    %c0_43 = arith.constant 0 : index
    %c0_44 = arith.constant 0 : index
    %24 = vector.load %arg5[%c0_41, %c2_42, %c0_43, %c0_44] : memref<2x10x10x4xf32, #tpu.memory_space<vmem>>, vector<2x8x8x4xf32>
    %25 = vector.shape_cast %24 : vector<2x8x8x4xf32> to vector<128x4xf32>
    %c0_45 = arith.constant 0 : index
    %c24 = arith.constant 24 : index
    %26 = vector.load %arg6[%c0_45, %c24] : memref<128x36xf32, #tpu.memory_space<vmem>>, vector<128x4xf32>
    tpu.vector_store %arg6[%c0_45, %c24], %25 {strides = array<i32>} : memref<128x36xf32, #tpu.memory_space<vmem>>, vector<128x4xf32>,
    %c0_46 = arith.constant 0 : index
    %c2_47 = arith.constant 2 : index
    %c1_48 = arith.constant 1 : index
    %c0_49 = arith.constant 0 : index
    %27 = vector.load %arg5[%c0_46, %c2_47, %c1_48, %c0_49] : memref<2x10x10x4xf32, #tpu.memory_space<vmem>>, vector<2x8x8x4xf32>
    %28 = vector.shape_cast %27 : vector<2x8x8x4xf32> to vector<128x4xf32>
    %c0_50 = arith.constant 0 : index
    %c28 = arith.constant 28 : index
    %29 = vector.load %arg6[%c0_50, %c28] : memref<128x36xf32, #tpu.memory_space<vmem>>, vector<128x4xf32>
    tpu.vector_store %arg6[%c0_50, %c28], %28 {strides = array<i32>} : memref<128x36xf32, #tpu.memory_space<vmem>>, vector<128x4xf32>,
    %c0_51 = arith.constant 0 : index
    %c2_52 = arith.constant 2 : index
    %c2_53 = arith.constant 2 : index
    %c0_54 = arith.constant 0 : index
    %30 = vector.load %arg5[%c0_51, %c2_52, %c2_53, %c0_54] : memref<2x10x10x4xf32, #tpu.memory_space<vmem>>, vector<2x8x8x4xf32>
    %31 = vector.shape_cast %30 : vector<2x8x8x4xf32> to vector<128x4xf32>
    %c0_55 = arith.constant 0 : index
    %c32 = arith.constant 32 : index
    %32 = vector.load %arg6[%c0_55, %c32] : memref<128x36xf32, #tpu.memory_space<vmem>>, vector<128x4xf32>
    tpu.vector_store %arg6[%c0_55, %c32], %31 {strides = array<i32>} : memref<128x36xf32, #tpu.memory_space<vmem>>, vector<128x4xf32>,
    %c0_56 = arith.constant 0 : index
    %c0_57 = arith.constant 0 : index
    %33 = vector.load %arg6[%c0_56, %c0_57] : memref<128x36xf32, #tpu.memory_space<vmem>>, vector<128x36xf32>
    %c0_58 = arith.constant 0 : index
    %c0_59 = arith.constant 0 : index
    %34 = vector.load %arg2[%c0_58, %c0_59] : memref<36x8xf32, #tpu.memory_space<vmem>>, vector<36x8xf32>
    %cst_60 = arith.constant dense<0.000000e+00> : vector<128x8xf32>
    %35 = tpu.matmul %33, %34, %cst_60 {dimension_numbers = #tpu.dot_dimension_numbers<[1], [0], [0], [1], [0, 0, 1, 1], [], []>} : vector<128x36xf32>, vector<36x8xf32>, vector<128x8xf32> -> vector<128x8xf32>
    %36 = vector.shape_cast %35 : vector<128x8xf32> to vector<2x64x8xf32>
    %c0_61 = arith.constant 0 : index
    %c0_62 = arith.constant 0 : index
    %c0_63 = arith.constant 0 : index
    %37 = vector.load %arg3[%c0_61, %c0_62, %c0_63] : memref<2x64x8xf32, #tpu.memory_space<vmem>>, vector<2x64x8xf32>
    tpu.vector_store %arg3[%c0_61, %c0_62, %c0_63], %36 {strides = array<i32>} : memref<2x64x8xf32, #tpu.memory_space<vmem>>, vector<2x64x8xf32>,
    %cst_64 = arith.constant dense<0.000000e+00> : vector<8xf32>
    %38 = vector.multi_reduction <add>, %35, %cst_64 [0] : vector<128x8xf32> to vector<8xf32>
    %39 = vector.shape_cast %38 : vector<8xf32> to vector<1x8xf32>
    %40 = arith.mulf %35, %35 : vector<128x8xf32>
    %cst_65 = arith.constant dense<0.000000e+00> : vector<8xf32>
    %41 = vector.multi_reduction <add>, %40, %cst_65 [0] : vector<128x8xf32> to vector<8xf32>
    %42 = vector.shape_cast %41 : vector<8xf32> to vector<1x8xf32>
    %43 = tpu.concatenate %39, %42 in 0 : vector<1x8xf32>, vector<1x8xf32> -> vector<2x8xf32>
    %c0_66 = arith.constant 0 : index
    %c0_67 = arith.constant 0 : index
    %c0_68 = arith.constant 0 : index
    %44 = vector.load %arg4[%c0_66, %c0_67, %c0_68] : memref<1x2x8xf32, #tpu.memory_space<vmem>>, vector<1x2x8xf32>
    %45 = vector.shape_cast %44 : vector<1x2x8xf32> to vector<2x8xf32>
    %46 = vector.shape_cast %43 : vector<2x8xf32> to vector<1x2x8xf32>
    tpu.vector_store %arg4[%c0_66, %c0_67, %c0_68], %46 {strides = array<i32>} : memref<1x2x8xf32, #tpu.memory_space<vmem>>, vector<1x2x8xf32>,
    return
  }
  func.func @transform_0(%arg0: i32) -> (i32, i32, i32, i32) {
    %c0_i32 = arith.constant 0 : i32
    %c0_i32_0 = arith.constant 0 : i32
    %c0_i32_1 = arith.constant 0 : i32
    %c0_i32_2 = arith.constant 0 : i32
    return %arg0, %c0_i32, %c0_i32_0, %c0_i32_1 : i32, i32, i32, i32
  }
  func.func @transform_1(%arg0: i32) -> (i32, i32) {
    %c0_i32 = arith.constant 0 : i32
    %c0_i32_0 = arith.constant 0 : i32
    %c0_i32_1 = arith.constant 0 : i32
    return %c0_i32, %c0_i32_0 : i32, i32
  }
  func.func @transform_2(%arg0: i32) -> (i32, i32, i32) {
    %c0_i32 = arith.constant 0 : i32
    %c0_i32_0 = arith.constant 0 : i32
    %c0_i32_1 = arith.constant 0 : i32
    return %arg0, %c0_i32, %c0_i32_0 : i32, i32, i32
  }
  func.func @transform_3(%arg0: i32) -> (i32, i32, i32) {
    %c0_i32 = arith.constant 0 : i32
    %c0_i32_0 = arith.constant 0 : i32
    %c0_i32_1 = arith.constant 0 : i32
    return %arg0, %c0_i32, %c0_i32_0 : i32, i32, i32
  }
}

module attributes {stable_mosaic.version = 11 : i64} {
  func.func @bn_relu_kernel(%arg0: i32, %arg1: memref<2x64x8xf32, #tpu.memory_space<vmem>>, %arg2: memref<1x2x8xf32, #tpu.memory_space<vmem>>, %arg3: memref<1x8xf32, #tpu.memory_space<vmem>>, %arg4: memref<1x8xf32, #tpu.memory_space<vmem>>, %arg5: memref<2x64x8xf32, #tpu.memory_space<vmem>>) attributes {dimension_semantics = [#tpu.dimension_semantics<parallel>], iteration_bounds = array<i64: 1>, scalar_prefetch = 0 : i64, scratch_operands = 0 : i64, tpu.core_type = #tpu.core_type<tc>, window_params = [{transform_indices = @transform_0, window_bounds = array<i64: 2, 64, 8>}, {pipeline_mode = #tpu.pipeline_mode<synchronous>, transform_indices = @transform_1, window_bounds = array<i64: 1, 2, 8>}, {pipeline_mode = #tpu.pipeline_mode<synchronous>, transform_indices = @transform_2, window_bounds = array<i64: 1, 8>}, {pipeline_mode = #tpu.pipeline_mode<synchronous>, transform_indices = @transform_3, window_bounds = array<i64: 1, 8>}, {transform_indices = @transform_4, window_bounds = array<i64: 2, 64, 8>}]} {
    %c0 = arith.constant 0 : index
    %c0_0 = arith.constant 0 : index
    %c0_1 = arith.constant 0 : index
    %0 = vector.load %arg2[%c0, %c0_0, %c0_1] : memref<1x2x8xf32, #tpu.memory_space<vmem>>, vector<1x2x8xf32>
    %c0_2 = arith.constant 0 : index
    %c0_3 = arith.constant 0 : index
    %1 = vector.load %arg3[%c0_2, %c0_3] : memref<1x8xf32, #tpu.memory_space<vmem>>, vector<1x8xf32>
    %c0_4 = arith.constant 0 : index
    %c0_5 = arith.constant 0 : index
    %2 = vector.load %arg4[%c0_4, %c0_5] : memref<1x8xf32, #tpu.memory_space<vmem>>, vector<1x8xf32>
    %3 = vector.extract_strided_slice %0 {offsets = [0, 0, 0], sizes = [1, 1, 8], strides = [1, 1, 1]} : vector<1x2x8xf32> to vector<1x1x8xf32>
    %4 = vector.shape_cast %3 : vector<1x1x8xf32> to vector<1x8xf32>
    %cst = arith.constant dense<0.000000e+00> : vector<8xf32>
    %5 = vector.multi_reduction <add>, %4, %cst [0] : vector<1x8xf32> to vector<8xf32>
    %6 = vector.shape_cast %5 : vector<8xf32> to vector<1x8xf32>
    %7 = vector.extract_strided_slice %0 {offsets = [0, 1, 0], sizes = [1, 1, 8], strides = [1, 1, 1]} : vector<1x2x8xf32> to vector<1x1x8xf32>
    %8 = vector.shape_cast %7 : vector<1x1x8xf32> to vector<1x8xf32>
    %cst_6 = arith.constant dense<0.000000e+00> : vector<8xf32>
    %9 = vector.multi_reduction <add>, %8, %cst_6 [0] : vector<1x8xf32> to vector<8xf32>
    %10 = vector.shape_cast %9 : vector<8xf32> to vector<1x8xf32>
    %cst_7 = arith.constant 7.812500e-03 : f32
    %11 = vector.broadcast %cst_7 : f32 to vector<1x8xf32>
    %12 = arith.mulf %6, %11 : vector<1x8xf32>
    %cst_8 = arith.constant 7.812500e-03 : f32
    %13 = vector.broadcast %cst_8 : f32 to vector<1x8xf32>
    %14 = arith.mulf %10, %13 : vector<1x8xf32>
    %15 = arith.mulf %12, %12 : vector<1x8xf32>
    %16 = arith.subf %14, %15 : vector<1x8xf32>
    %cst_9 = arith.constant 9.99999974E-6 : f32
    %17 = vector.broadcast %cst_9 : f32 to vector<1x8xf32>
    %18 = arith.addf %16, %17 : vector<1x8xf32>
    %19 = math.rsqrt %18 : vector<1x8xf32>
    %20 = arith.mulf %1, %19 : vector<1x8xf32>
    %21 = arith.mulf %12, %20 : vector<1x8xf32>
    %22 = arith.subf %2, %21 : vector<1x8xf32>
    %c0_10 = arith.constant 0 : index
    %c0_11 = arith.constant 0 : index
    %c0_12 = arith.constant 0 : index
    %23 = vector.load %arg1[%c0_10, %c0_11, %c0_12] : memref<2x64x8xf32, #tpu.memory_space<vmem>>, vector<2x64x8xf32>
    %24 = vector.shape_cast %23 : vector<2x64x8xf32> to vector<128x8xf32>
    %25 = vector.broadcast %20 : vector<1x8xf32> to vector<128x8xf32>
    %26 = arith.mulf %24, %25 : vector<128x8xf32>
    %27 = vector.broadcast %22 : vector<1x8xf32> to vector<128x8xf32>
    %28 = arith.addf %26, %27 : vector<128x8xf32>
    %cst_13 = arith.constant 0.000000e+00 : f32
    %29 = vector.broadcast %cst_13 : f32 to vector<128x8xf32>
    %30 = arith.maximumf %28, %29 : vector<128x8xf32>
    %31 = vector.shape_cast %30 : vector<128x8xf32> to vector<2x64x8xf32>
    %c0_14 = arith.constant 0 : index
    %c0_15 = arith.constant 0 : index
    %c0_16 = arith.constant 0 : index
    %32 = vector.load %arg5[%c0_14, %c0_15, %c0_16] : memref<2x64x8xf32, #tpu.memory_space<vmem>>, vector<2x64x8xf32>
    tpu.vector_store %arg5[%c0_14, %c0_15, %c0_16], %31 {strides = array<i32>} : memref<2x64x8xf32, #tpu.memory_space<vmem>>, vector<2x64x8xf32>,
    return
  }
  func.func @transform_0(%arg0: i32) -> (i32, i32, i32) {
    %c0_i32 = arith.constant 0 : i32
    %c0_i32_0 = arith.constant 0 : i32
    %c0_i32_1 = arith.constant 0 : i32
    return %arg0, %c0_i32, %c0_i32_0 : i32, i32, i32
  }
  func.func @transform_1(%arg0: i32) -> (i32, i32, i32) {
    %c0_i32 = arith.constant 0 : i32
    %c0_i32_0 = arith.constant 0 : i32
    %c0_i32_1 = arith.constant 0 : i32
    %c0_i32_2 = arith.constant 0 : i32
    return %c0_i32, %c0_i32_0, %c0_i32_1 : i32, i32, i32
  }
  func.func @transform_2(%arg0: i32) -> (i32, i32) {
    %c0_i32 = arith.constant 0 : i32
    %c0_i32_0 = arith.constant 0 : i32
    %c0_i32_1 = arith.constant 0 : i32
    return %c0_i32, %c0_i32_0 : i32, i32
  }
  func.func @transform_3(%arg0: i32) -> (i32, i32) {
    %c0_i32 = arith.constant 0 : i32
    %c0_i32_0 = arith.constant 0 : i32
    %c0_i32_1 = arith.constant 0 : i32
    return %c0_i32, %c0_i32_0 : i32, i32
  }
  func.func @transform_4(%arg0: i32) -> (i32, i32, i32) {
    %c0_i32 = arith.constant 0 : i32
    %c0_i32_0 = arith.constant 0 : i32
    %c0_i32_1 = arith.constant 0 : i32
    return %arg0, %c0_i32, %c0_i32_0 : i32, i32, i32
  }
}

</mosaic_0001>

<bundles_post_ra>
// kernel: down_forward.5
= control target key start
LH: loop header
LB: loop body
LE: loop exit
PB: predicated region body
PF: predicated region fallthrough
CT: control target
= control target key end

     0   :  { %v149_v6 = vmov 1966171168   ;;  %v33_v8 = vlaneseq  ;;  %vm125_vm0 = vcmask 64512   ;;  %s296_s1 = inlined_call_operand.vmem [shape: f32[1,2,8], index: 1, kind: input, shape index: {}]   ;;  %s297_s2 = inlined_call_operand.vmem [shape: f32[1,8], index: 2, kind: input, shape index: {}]   ;;  %s298_s0 = inlined_call_operand.vmem [shape: f32[2,64,8], index: 0, kind: input, shape index: {}]   ;;  %s299_s3 = inlined_call_operand.vmem [shape: f32[1,8], index: 3, kind: input, shape index: {}]   ;;  %s300_s4 = inlined_call_operand.vmem [shape: f32[2,64,8], index: 4, kind: output, shape index: {}]  }
   0x1   :  { %v17_v0 = vld [vmem:[%s296_s1] sm:$0x3]  ;;  %v31_v7 = vunpack.c.l.s4 %v149_v6  ;;  %v50_v21 = vld [vmem:[%s298_s0 + $0x8] sm:$0xff]  ;;  %v51_v22 = vld [vmem:[%s298_s0 + $0x10] sm:$0xff] }
   0x2   :  { %v21_v1 = vmul.f32 0.0078125, %v17_v0  ;;  %v34_v10 = vshrl.u32 %v33_v8, 7  ;;  %v18_v15 = vld [vmem:[%s297_s2] sm:$0x1]  ;;  %v52_v23 = vld [vmem:[%s298_s0 + $0x18] sm:$0xff]  ;;  %v54_v27 = vld [vmem:[%s298_s0 + $0x28] sm:$0xff] }
   0x3   :  { %v32_v9 = vunpack.c.0.s8 %v31_v7  ;;  %v19_v18 = vld [vmem:[%s299_s3] sm:$0x1]  ;;  %v55_v28 = vld [vmem:[%s298_s0 + $0x30] sm:$0xff]  ;;  %v56_v29 = vld [vmem:[%s298_s0 + $0x38] sm:$0xff] }
   0x4   :  { %v22_v2 = vmul.f32 %v21_v1, %v21_v1  ;;  %v68_v17 = vsub.s32 0, %v34_v10  ;;  %v49_v20 = vld [vmem:[%s298_s0] sm:$0xff]  ;;  %v58_v31 = vld [vmem:[%s298_s0 + $0x48] sm:$0xff]  ;;  %v59_v32 = vld [vmem:[%s298_s0 + $0x50] sm:$0xff] }
   0x5   :  { %v35_v11 = vsub.s32 %v32_v9, %v34_v10  ;;  %v53_v24 = vld [vmem:[%s298_s0 + $0x20] sm:$0xff]  ;;  %v60_v37 = vld [vmem:[%s298_s0 + $0x58] sm:$0xff]  ;;  %v62_v39 = vld [vmem:[%s298_s0 + $0x68] sm:$0xff] }
   0x6   :  { %v24_v3 = vrot.slane %v22_v2, 7  ;;  %v57_v30 = vld [vmem:[%s298_s0 + $0x40] sm:$0xff]  ;;  %v63_v0 = vld [vmem:[%s298_s0 + $0x70] sm:$0xff] }
   0x7   :  { %v61_v38 = vld [vmem:[%s298_s0 + $0x60] sm:$0xff] }
   0x8   :  { %v26_v4 = vsub.f32 %v21_v1, %v24_v3 }
   0xa   :  { %v27_v5 = vadd.f32 1e-05, %v26_v4 }
   0xc   :  { %147 = vrsqrt.f32 %v27_v5 }
  0x19   :  { %v148_v12 = vpop.eup %147 }
  0x1a   :  { %v36_v13 = vrot.slane %v148_v12, %v35_v11 }
  0x1c   :  { %v37_v14 = vcombine.high %v36_v13, %v36_v13 }
  0x1e   :  { %v44_v16 = vrot.slane %v37_v14, %v35_v11 }
  0x20   :  { %v46_v19 = vmul.f32 %v44_v16, %v18_v15 }
  0x22   :  { %v47_v25 = vmul.f32 %v46_v19, %v21_v1  ;;  %v69_v26 = vrot.slane %v46_v19, %v68_v17  ;;  %v64_v1 = vld [vmem:[%s298_s0 + $0x78] sm:$0xff] }
  0x24   :  { %v48_v33 = vsub.f32 %v19_v18, %v47_v25  ;;  %v71_v34 = vmul.f32 %v69_v26, %v49_v20  ;;  %v72_v35 = vmul.f32 %v69_v26, %v50_v21  ;;  %v73_v36 = vmul.f32 %v69_v26, %v51_v22 }
  0x25   :  { %v74_v40 = vmul.f32 %v69_v26, %v52_v23  ;;  %v75_v41 = vmul.f32 %v69_v26, %v53_v24  ;;  %v76_v42 = vmul.f32 %v69_v26, %v54_v27  ;;  %v77_v43 = vmul.f32 %v69_v26, %v55_v28 }
  0x26   :  { %v91_v44 = vrot.slane %v48_v33, %v68_v17  ;;  %v78_v45 = vmul.f32 %v69_v26, %v56_v29  ;;  %v79_v46 = vmul.f32 %v69_v26, %v57_v30  ;;  %v80_v47 = vmul.f32 %v69_v26, %v58_v31 }
  0x27   :  { %v81_v48 = vmul.f32 %v69_v26, %v59_v32  ;;  %v82_v49 = vmul.f32 %v69_v26, %v60_v37  ;;  %v83_v50 = vmul.f32 %v69_v26, %v61_v38  ;;  %v84_v51 = vmul.f32 %v69_v26, %v62_v39 }
  0x28   :  { %v93_v52 = vadd.f32 %v91_v44, %v71_v34  ;;  %v94_v53 = vadd.f32 %v91_v44, %v72_v35  ;;  %v95_v54 = vadd.f32 %v91_v44, %v73_v36  ;;  %v96_v55 = vadd.f32 %v91_v44, %v74_v40 }
  0x29   :  { %v97_v56 = vadd.f32 %v91_v44, %v75_v41  ;;  %v98_v57 = vadd.f32 %v91_v44, %v76_v42  ;;  %v99_v58 = vadd.f32 %v91_v44, %v77_v43  ;;  %v100_v59 = vadd.f32 %v91_v44, %v78_v45 }
  0x2a   :  { %v109_v60 = vmax.f32 %v93_v52, 0.0  ;;  %v110_v61 = vmax.f32 %v94_v53, 0.0  ;;  %v111_v62 = vmax.f32 %v95_v54, 0.0  ;;  %v112_v63 = vmax.f32 %v96_v55, 0.0 }
  0x2b   :  { %v113_v2 = vmax.f32 %v97_v56, 0.0  ;;  %v114_v3 = vmax.f32 %v98_v57, 0.0  ;;  %v115_v4 = vmax.f32 %v99_v58, 0.0  ;;  %v116_v5 = vmax.f32 %v100_v59, 0.0 }
  0x2c   :  { %126 = vst.msk [vmem:[%s300_s4] sm:$0xff] %vm125_vm0, %v109_v60  ;;  %127 = vst.msk [vmem:[%s300_s4 + $0x8] sm:$0xff] %vm125_vm0, %v110_v61  ;;  %v101_v6 = vadd.f32 %v91_v44, %v79_v46  ;;  %v102_v7 = vadd.f32 %v91_v44, %v80_v47  ;;  %v103_v8 = vadd.f32 %v91_v44, %v81_v48 }
  0x2d   :  { %128 = vst.msk [vmem:[%s300_s4 + $0x10] sm:$0xff] %vm125_vm0, %v111_v62  ;;  %129 = vst.msk [vmem:[%s300_s4 + $0x18] sm:$0xff] %vm125_vm0, %v112_v63  ;;  %v104_v9 = vadd.f32 %v91_v44, %v82_v49  ;;  %v105_v10 = vadd.f32 %v91_v44, %v83_v50  ;;  %v106_v11 = vadd.f32 %v91_v44, %v84_v51 }
  0x2e   :  { %130 = vst.msk [vmem:[%s300_s4 + $0x20] sm:$0xff] %vm125_vm0, %v113_v2  ;;  %131 = vst.msk [vmem:[%s300_s4 + $0x28] sm:$0xff] %vm125_vm0, %v114_v3  ;;  %v85_v12 = vmul.f32 %v69_v26, %v63_v0  ;;  %v86_v13 = vmul.f32 %v69_v26, %v64_v1  ;;  %v117_v14 = vmax.f32 %v101_v6, 0.0  ;;  %v118_v15 = vmax.f32 %v102_v7, 0.0 }
  0x2f   :  { %132 = vst.msk [vmem:[%s300_s4 + $0x30] sm:$0xff] %vm125_vm0, %v115_v4  ;;  %133 = vst.msk [vmem:[%s300_s4 + $0x38] sm:$0xff] %vm125_vm0, %v116_v5  ;;  %v119_v16 = vmax.f32 %v103_v8, 0.0  ;;  %v120_v17 = vmax.f32 %v104_v9, 0.0  ;;  %v121_v18 = vmax.f32 %v105_v10, 0.0  ;;  %v122_v19 = vmax.f32 %v106_v11, 0.0 }
  0x30   :  { %v107_v20 = vadd.f32 %v91_v44, %v85_v12  ;;  %v108_v21 = vadd.f32 %v91_v44, %v86_v13  ;;  %134 = vst.msk [vmem:[%s300_s4 + $0x40] sm:$0xff] %vm125_vm0, %v117_v14  ;;  %135 = vst.msk [vmem:[%s300_s4 + $0x48] sm:$0xff] %vm125_vm0, %v118_v15 }
  0x31   :  { %136 = vst.msk [vmem:[%s300_s4 + $0x50] sm:$0xff] %vm125_vm0, %v119_v16  ;;  %137 = vst.msk [vmem:[%s300_s4 + $0x58] sm:$0xff] %vm125_vm0, %v120_v17 }
  0x32   :  { %138 = vst.msk [vmem:[%s300_s4 + $0x60] sm:$0xff] %vm125_vm0, %v121_v18  ;;  %139 = vst.msk [vmem:[%s300_s4 + $0x68] sm:$0xff] %vm125_vm0, %v122_v19  ;;  %v123_v22 = vmax.f32 %v107_v20, 0.0  ;;  %v124_v23 = vmax.f32 %v108_v21, 0.0 }
  0x34   :  { %140 = vst.msk [vmem:[%s300_s4 + $0x70] sm:$0xff] %vm125_vm0, %v123_v22  ;;  %141 = vst.msk [vmem:[%s300_s4 + $0x78] sm:$0xff] %vm125_vm0, %v124_v23 }

// kernel: down_forward.4
= control target key start
LH: loop header
LB: loop body
LE: loop exit
PB: predicated region body
PF: predicated region fallthrough
CT: control target
= control target key end

     0   :  { %vm130_vm0 = vcmask 64512   ;;  %vm132_vm1 = vcmask 58368   ;;  %v1447_v0 = vmov 0.0   ;;  %s1448_s23 = smov 16   ;;  %s1449_s24 = smov 8   ;;  %v38_v11 = vlaneseq  ;;  %s2120_s1 = inlined_call_operand.vmem [shape: f32[1,2,8], index: 1, kind: input, shape index: {}]   ;;  %s2121_s2 = inlined_call_operand.vmem [shape: f32[1,8], index: 2, kind: input, shape index: {}]   ;;  %s2122_s0 = inlined_call_operand.vmem [shape: f32[2,64,8], index: 0, kind: input, shape index: {}]   ;;  %s2123_s3 = inlined_call_operand.vmem [shape: f32[1,8], index: 3, kind: input, shape index: {}]   ;;  %s2124_s4 = inlined_call_operand.vmem [shape: f32[72,8], index: 4, kind: input, shape index: {}]   ;;  %s2125_s5 = inlined_call_operand.vmem [shape: f32[2,64,8], index: 5, kind: output, shape index: {0}]   ;;  %s2126_s6 = inlined_call_operand.vmem [shape: f32[1,2,8], index: 6, kind: output, shape index: {1}]  }
   0x1   :  { %131 = vst.msk [vmem:[#allocation2] sm:$0xff] %vm130_vm0, %v1447_v0  ;;  %134 = vst.msk [vmem:[#allocation2 + $0x10] sm:$0xff] %vm130_vm0, %v1447_v0  ;;  %v22_v1 = vld [vmem:[%s2120_s1] sm:$0x3]  ;;  %v1450_v9 = vmov 1966171168  }
   0x2   :  { %133 = vst.msk [vmem:[#allocation2 + $0x8] sm:$0x3] %vm132_vm1, %v1447_v0  ;;  %135 = vst.msk [vmem:[#allocation2 + $0x18] sm:$0x3] %vm132_vm1, %v1447_v0  ;;  %v26_v2 = vmul.f32 0.0078125, %v22_v1  ;;  %v36_v10 = vunpack.c.l.s4 %v1450_v9  ;;  %v39_v13 = vshrl.u32 %v38_v11, 7 }
   0x3   :  { %136 = vst.msk [vmem:[#allocation2 + $0x20] sm:$0xff] %vm130_vm0, %v1447_v0  ;;  %138 = vst.msk [vmem:[#allocation2 + $0x30] sm:$0xff] %vm130_vm0, %v1447_v0  ;;  %v23_v18 = vld [vmem:[%s2121_s2] sm:$0x1]  ;;  %v55_v25 = vld [vmem:[%s2122_s0 + $0x8] sm:$0xff]  ;;  %s1451_s22 = smov 24  }
   0x4   :  { %137 = vst.msk [vmem:[#allocation2 + $0x28] sm:$0x3] %vm132_vm1, %v1447_v0  ;;  %139 = vst.msk [vmem:[#allocation2 + $0x38] sm:$0x3] %vm132_vm1, %v1447_v0  ;;  %v27_v3 = vmul.f32 %v26_v2, %v26_v2  ;;  %v37_v12 = vunpack.c.0.s8 %v36_v10  ;;  %v73_v20 = vsub.s32 0, %v39_v13  ;;  %v54_v23 = vld [vmem:[%s2122_s0] sm:$0xff] }
   0x5   :  { %140 = vst.msk [vmem:[#allocation2 + $0x40] sm:$0xff] %vm130_vm0, %v1447_v0  ;;  %142 = vst.msk [vmem:[#allocation2 + $0x50] sm:$0xff] %vm130_vm0, %v1447_v0  ;;  %v24_v21 = vld [vmem:[%s2123_s3] sm:$0x1]  ;;  %v56_v26 = vld [vmem:[%s2122_s0 + $0x10] sm:$0xff]  ;;  %s1452_s1 = smov 32  }
   0x6   :  { %141 = vst.msk [vmem:[#allocation2 + $0x48] sm:$0x3] %vm132_vm1, %v1447_v0  ;;  %143 = vst.msk [vmem:[#allocation2 + $0x58] sm:$0x3] %vm132_vm1, %v1447_v0  ;;  %v29_v4 = vrot.slane %v27_v3, 7  ;;  %v40_v14 = vsub.s32 %v37_v12, %v39_v13  ;;  %v57_v27 = vld [vmem:[%s2122_s0 + $0x18] sm:$0xff] }
   0x7   :  { %144 = vst.msk [vmem:[#allocation2 + $0x60] sm:$0xff] %vm130_vm0, %v1447_v0  ;;  %146 = vst.msk [vmem:[#allocation2 + $0x70] sm:$0xff] %vm130_vm0, %v1447_v0  ;;  %v58_v30 = vld [vmem:[%s2122_s0 + $0x20] sm:$0xff]  ;;  %v59_v31 = vld [vmem:[%s2122_s0 + $0x28] sm:$0xff]  ;;  %s1453_s27 = smov 40   ;;  %s1454_s30 = smov 48  }
   0x8   :  { %145 = vst.msk [vmem:[#allocation2 + $0x68] sm:$0x3] %vm132_vm1, %v1447_v0  ;;  %147 = vst.msk [vmem:[#allocation2 + $0x78] sm:$0x3] %vm132_vm1, %v1447_v0  ;;  %v31_v7 = vsub.f32 %v26_v2, %v29_v4  ;;  %v189_v24 = vld [vmem:[#allocation2] sm:$0xff]  ;;  %v60_v32 = vld [vmem:[%s2122_s0 + $0x30] sm:$0xff] }
   0x9   :  { %148 = vst.msk [vmem:[#allocation2 + $0x80] sm:$0xff] %vm130_vm0, %v1447_v0  ;;  %150 = vst.msk [vmem:[#allocation2 + $0x90] sm:$0xff] %vm130_vm0, %v1447_v0  ;;  %v318_v5 = vld [vmem:[#allocation2 + $0x2] sm:$0xff]  ;;  %v61_v33 = vld [vmem:[%s2122_s0 + $0x38] sm:$0xff]  ;;  %s1455_s13 = smov 56   ;;  %s1456_s25 = smov 64  }
   0xa   :  { %149 = vst.msk [vmem:[#allocation2 + $0x88] sm:$0x3] %vm132_vm1, %v1447_v0  ;;  %151 = vst.msk [vmem:[#allocation2 + $0x98] sm:$0x3] %vm132_vm1, %v1447_v0  ;;  %v221_v6 = vld [vmem:[#allocation2 + $0x1] sm:$0xff]  ;;  %350 = vrot.lane.b32.xlu1 %v318_v5, %s1448_s23  ;;  %vm301_vm2 = vcmask 130112  }
   0xb   :  { %152 = vst.msk [vmem:[#allocation2 + $0xa0] sm:$0xff] %vm130_vm0, %v1447_v0  ;;  %154 = vst.msk [vmem:[#allocation2 + $0xb0] sm:$0xff] %vm130_vm0, %v1447_v0  ;;  %253 = vrot.lane.b32.xlu0 %v221_v6, %s1449_s24  ;;  %v32_v8 = vadd.f32 1e-05, %v31_v7  ;;  %v62_v38 = vld [vmem:[%s2122_s0 + $0x40] sm:$0xff]  ;;  %v63_v43 = vld [vmem:[%s2122_s0 + $0x48] sm:$0xff] }
   0xc   :  { %153 = vst.msk [vmem:[#allocation2 + $0xa8] sm:$0x3] %vm132_vm1, %v1447_v0  ;;  %155 = vst.msk [vmem:[#allocation2 + $0xb8] sm:$0x3] %vm132_vm1, %v1447_v0  ;;  %vm398_vm3 = vcmask 195712   ;;  %vm495_vm4 = vcmask 261312  }
   0xd   :  { %156 = vst.msk [vmem:[#allocation2 + $0xc0] sm:$0xff] %vm130_vm0, %v1447_v0  ;;  %158 = vst.msk [vmem:[#allocation2 + $0xd0] sm:$0xff] %vm130_vm0, %v1447_v0  ;;  %1445 = vrsqrt.f32 %v32_v8  ;;  %vm592_vm5 = vcmask 326912   ;;  %vm689_vm6 = vcmask 392512   ;;  %vm787_vm7 = vcmask 458112  }
   0xe   :  { %157 = vst.msk [vmem:[#allocation2 + $0xc8] sm:$0x3] %vm132_vm1, %v1447_v0  ;;  %159 = vst.msk [vmem:[#allocation2 + $0xd8] sm:$0x3] %vm132_vm1, %v1447_v0  ;;  %vm884_vm8 = vcmask 523712   ;;  %vm981_vm9 = vcmask 589312  }
   0xf   :  { %160 = vst.msk [vmem:[#allocation2 + $0xe0] sm:$0xff] %vm130_vm0, %v1447_v0  ;;  %162 = vst.msk [vmem:[#allocation2 + $0xf0] sm:$0xff] %vm130_vm0, %v1447_v0  ;;  %vm1023_vm10 = vcmask 588800   ;;  %vm1323_vm11 = vcmask 1040384  }
  0x10   :  { %161 = vst.msk [vmem:[#allocation2 + $0xe8] sm:$0x3] %vm132_vm1, %v1447_v0  ;;  %163 = vst.msk [vmem:[#allocation2 + $0xf8] sm:$0x3] %vm132_vm1, %v1447_v0 }
  0x11   :  { %164 = vst.msk [vmem:[#allocation2 + $0x100] sm:$0xff] %vm130_vm0, %v1447_v0  ;;  %166 = vst.msk [vmem:[#allocation2 + $0x110] sm:$0xff] %vm130_vm0, %v1447_v0 }
  0x12   :  { %165 = vst.msk [vmem:[#allocation2 + $0x108] sm:$0x3] %vm132_vm1, %v1447_v0  ;;  %167 = vst.msk [vmem:[#allocation2 + $0x118] sm:$0x3] %vm132_vm1, %v1447_v0 }
  0x13   :  { %168 = vst.msk [vmem:[#allocation2 + $0x120] sm:$0xff] %vm130_vm0, %v1447_v0  ;;  %170 = vst.msk [vmem:[#allocation2 + $0x130] sm:$0xff] %vm130_vm0, %v1447_v0 }
  0x14   :  { %169 = vst.msk [vmem:[#allocation2 + $0x128] sm:$0x3] %vm132_vm1, %v1447_v0  ;;  %171 = vst.msk [vmem:[#allocation2 + $0x138] sm:$0x3] %vm132_vm1, %v1447_v0 }
  0x15   :  { %205 = vst.msk [vmem:[#allocation3] sm:$0xff] %vm130_vm0, %v189_v24  ;;  %v1022_v24 = vld [vmem:[%s2124_s4 + $0x40] sm:$0xff] }
  0x16   :  { %1375 = vmatprep.subr.mxu0 %v1022_v24  ;;  %1417 = vmatprep.subr.mxu1 %v1022_v24 }
  0x17   :  { %1376 = vmatpush3.msra.mxu0 %v1022_v24  ;;  %1426 = vmatpush3.msra.mxu1 %v1022_v24 }
  0x1a   :  { %v1446_v15 = vpop.eup %1445 }
  0x1b   :  { %v41_v16 = vrot.slane %v1446_v15, %v40_v14 }
  0x1d   :  { %v42_v17 = vcombine.high %v41_v16, %v41_v16  ;;  %v64_v16 = vld [vmem:[%s2122_s0 + $0x50] sm:$0xff] }
  0x1f   :  { %v49_v19 = vrot.slane %v42_v17, %v40_v14 }
  0x21   :  { %v51_v22 = vmul.f32 %v49_v19, %v23_v18 }
  0x23   :  { %v52_v28 = vmul.f32 %v51_v22, %v26_v2  ;;  %v1556_v29 = vrot.slane %v51_v22, %v73_v20  ;;  %v65_v22 = vld [vmem:[%s2122_s0 + $0x58] sm:$0xff] }
  0x25   :  { %v53_v34 = vsub.f32 %v24_v21, %v52_v28  ;;  %v76_v35 = vmul.f32 %v1556_v29, %v54_v23  ;;  %v77_v36 = vmul.f32 %v1556_v29, %v55_v25  ;;  %v78_v37 = vmul.f32 %v1556_v29, %v56_v26 }
  0x26   :  { %v79_v39 = vmul.f32 %v1556_v29, %v57_v27  ;;  %v80_v40 = vmul.f32 %v1556_v29, %v58_v30  ;;  %v81_v41 = vmul.f32 %v1556_v29, %v59_v31  ;;  %v82_v42 = vmul.f32 %v1556_v29, %v60_v32  ;;  %v1021_v27 = vld [vmem:[%s2124_s4 + $0x38] sm:$0xff]  ;;  %v1020_v31 = vld [vmem:[%s2124_s4 + $0x30] sm:$0xff]  ;;  %v1019_v32 = vld [vmem:[%s2124_s4 + $0x28] sm:$0xff] }
  0x27   :  { %v1583_v44 = vrot.slane %v53_v34, %v73_v20  ;;  %v83_v45 = vmul.f32 %v1556_v29, %v61_v33  ;;  %v84_v46 = vmul.f32 %v1556_v29, %v62_v38  ;;  %v85_v47 = vmul.f32 %v1556_v29, %v63_v43  ;;  %1377 = vmatprep.subr.mxu0 %v1021_v27  ;;  %v1018_v33 = vld [vmem:[%s2124_s4 + $0x20] sm:$0xff]  ;;  %v1017_v34 = vld [vmem:[%s2124_s4 + $0x18] sm:$0xff] }
  0x28   :  { %v86_v17 = vmul.f32 %v1556_v29, %v64_v16  ;;  %v87_v23 = vmul.f32 %v1556_v29, %v65_v22  ;;  %1418 = vmatprep.subr.mxu1 %v1021_v27  ;;  %1378 = vmatpush3.msra.mxu0 %v1021_v27  ;;  %v1014_v43 = vld [vmem:[%s2124_s4] sm:$0xff] }
  0x29   :  { %v98_v48 = vadd.f32 %v1583_v44, %v76_v35  ;;  %v99_v49 = vadd.f32 %v1583_v44, %v77_v36  ;;  %v100_v50 = vadd.f32 %v1583_v44, %v78_v37  ;;  %v101_v51 = vadd.f32 %v1583_v44, %v79_v39  ;;  %1427 = vmatpush3.msra.mxu1 %v1021_v27  ;;  %v66_v36 = vld [vmem:[%s2122_s0 + $0x60] sm:$0xff]  ;;  %v1016_v37 = vld [vmem:[%s2124_s4 + $0x10] sm:$0xff]  ;;  %v1015_v39 = vld [vmem:[%s2124_s4 + $0x8] sm:$0xff] }
  0x2a   :  { %v102_v52 = vadd.f32 %v1583_v44, %v80_v40  ;;  %v103_v53 = vadd.f32 %v1583_v44, %v81_v41  ;;  %v104_v54 = vadd.f32 %v1583_v44, %v82_v42  ;;  %v105_v55 = vadd.f32 %v1583_v44, %v83_v45  ;;  %1379 = vmatprep.subr.mxu0 %v1020_v31  ;;  %v908_v27 = vld [vmem:[#allocation2 + $0x92] sm:$0xff] }
  0x2b   :  { %v114_v56 = vmax.f32 %v98_v48, 0.0  ;;  %v115_v57 = vmax.f32 %v99_v49, 0.0  ;;  %v116_v58 = vmax.f32 %v100_v50, 0.0  ;;  %v117_v59 = vmax.f32 %v101_v51, 0.0  ;;  %1419 = vmatprep.subr.mxu1 %v1020_v31  ;;  %1380 = vmatpush3.msra.mxu0 %v1020_v31 }
  0x2c   :  { %v118_v60 = vmax.f32 %v102_v52, 0.0  ;;  %v119_v61 = vmax.f32 %v103_v53, 0.0  ;;  %v120_v62 = vmax.f32 %v104_v54, 0.0  ;;  %v121_v63 = vmax.f32 %v105_v55, 0.0  ;;  %1428 = vmatpush3.msra.mxu1 %v1020_v31  ;;  %1381 = vmatprep.subr.mxu0 %v1019_v32  ;;  %v68_v54 = vld [vmem:[%s2122_s0 + $0x70] sm:$0xff] }
  0x2d   :  { %173 = vst.msk [vmem:[#allocation2 + $0x11] sm:$0xff] %vm130_vm0, %v114_v56  ;;  %174 = vst.msk [vmem:[#allocation2 + $0x21] sm:$0xff] %vm130_vm0, %v115_v57  ;;  %v106_v0 = vadd.f32 %v1583_v44, %v84_v46  ;;  %v107_v1 = vadd.f32 %v1583_v44, %v85_v47  ;;  %v108_v18 = vadd.f32 %v1583_v44, %v86_v17  ;;  %1420 = vmatprep.subr.mxu1 %v1019_v32  ;;  %v67_v47 = vld [vmem:[%s2122_s0 + $0x68] sm:$0xff]  ;;  %v714_v17 = vld [vmem:[#allocation2 + $0x90] sm:$0xff] }
  0x2e   :  { %175 = vst.msk [vmem:[#allocation2 + $0x31] sm:$0xff] %vm130_vm0, %v116_v58  ;;  %176 = vst.msk [vmem:[#allocation2 + $0x41] sm:$0xff] %vm130_vm0, %v117_v59  ;;  %v109_v25 = vadd.f32 %v1583_v44, %v87_v23  ;;  %1382 = vmatpush3.msra.mxu0 %v1019_v32  ;;  %1429 = vmatpush3.msra.mxu1 %v1019_v32  ;;  %v88_v38 = vmul.f32 %v1556_v29, %v66_v36 }
  0x2f   :  { %177 = vst.msk [vmem:[#allocation2 + $0x51] sm:$0xff] %vm130_vm0, %v118_v60  ;;  %178 = vst.msk [vmem:[#allocation2 + $0x61] sm:$0xff] %vm130_vm0, %v119_v61  ;;  %v122_v2 = vmax.f32 %v106_v0, 0.0  ;;  %v123_v3 = vmax.f32 %v107_v1, 0.0  ;;  %v124_v21 = vmax.f32 %v108_v18, 0.0  ;;  %1383 = vmatprep.subr.mxu0 %v1018_v33  ;;  %1421 = vmatprep.subr.mxu1 %v1018_v33  ;;  %v89_v48 = vmul.f32 %v1556_v29, %v67_v47 }
  0x30   :  { %179 = vst.msk [vmem:[#allocation2 + $0x71] sm:$0xff] %vm130_vm0, %v120_v62  ;;  %180 = vst.msk [vmem:[#allocation2 + $0x81] sm:$0xff] %vm130_vm0, %v121_v63  ;;  %v125_v28 = vmax.f32 %v109_v25, 0.0  ;;  %1384 = vmatpush3.msra.mxu0 %v1018_v33  ;;  %1430 = vmatpush3.msra.mxu1 %v1018_v33  ;;  %v110_v40 = vadd.f32 %v1583_v44, %v88_v38  ;;  %v90_v55 = vmul.f32 %v1556_v29, %v68_v54  ;;  %v69_v63 = vld [vmem:[%s2122_s0 + $0x78] sm:$0xff] }
  0x31   :  { %181 = vst.msk [vmem:[#allocation2 + $0xb1] sm:$0xff] %vm130_vm0, %v122_v2  ;;  %182 = vst.msk [vmem:[#allocation2 + $0xc1] sm:$0xff] %vm130_vm0, %v123_v3  ;;  %1385 = vmatprep.subr.mxu0 %v1017_v34  ;;  %1422 = vmatprep.subr.mxu1 %v1017_v34  ;;  %v111_v49 = vadd.f32 %v1583_v44, %v89_v48  ;;  %v91_v0 = vmul.f32 %v1556_v29, %v69_v63 }
  0x32   :  { %183 = vst.msk [vmem:[#allocation2 + $0xd1] sm:$0xff] %vm130_vm0, %v124_v21  ;;  %184 = vst.msk [vmem:[#allocation2 + $0xe1] sm:$0xff] %vm130_vm0, %v125_v28  ;;  %1386 = vmatpush3.msra.mxu0 %v1017_v34  ;;  %1431 = vmatpush3.msra.mxu1 %v1017_v34  ;;  %v126_v42 = vmax.f32 %v110_v40, 0.0  ;;  %v112_v56 = vadd.f32 %v1583_v44, %v90_v55 }
  0x33   :  { %1387 = vmatprep.subr.mxu0 %v1016_v37  ;;  %1423 = vmatprep.subr.mxu1 %v1016_v37  ;;  %v127_v51 = vmax.f32 %v111_v49, 0.0  ;;  %v113_v1 = vadd.f32 %v1583_v44, %v91_v0 }
  0x34   :  { %v319_v4 = vld [vmem:[#allocation2 + $0x12] sm:$0xff]  ;;  %v416_v6 = vld [vmem:[#allocation2 + $0x20] sm:$0xff]  ;;  %1388 = vmatpush3.msra.mxu0 %v1016_v37  ;;  %1432 = vmatpush3.msra.mxu1 %v1016_v37  ;;  %185 = vst.msk [vmem:[#allocation2 + $0xf1] sm:$0xff] %vm130_vm0, %v126_v42  ;;  %v128_v58 = vmax.f32 %v112_v56, 0.0 }
  0x35   :  { %v222_v5 = vld [vmem:[#allocation2 + $0x11] sm:$0xff]  ;;  %352 = vrot.lane.b32.xlu1 %v319_v4, %s1448_s23  ;;  %207 = vst.msk [vmem:[#allocation3 + $0x10] sm:$0xff] %vm130_vm0, %v416_v6  ;;  %v1614_v9 = vld [vmem:[#allocation2 + $0x40] sm:$0xff]  ;;  %1389 = vmatprep.subr.mxu0 %v1015_v39  ;;  %186 = vst.msk [vmem:[#allocation2 + $0x101] sm:$0xff] %vm130_vm0, %v127_v51  ;;  %v129_v3 = vmax.f32 %v113_v1, 0.0 }
  0x36   :  { %255 = vrot.lane.b32.xlu0 %v222_v5, %s1449_s24  ;;  %v415_v7 = vld [vmem:[#allocation2 + $0x10] sm:$0xff]  ;;  %209 = vst.msk [vmem:[#allocation3 + $0x20] sm:$0xff] %vm130_vm0, %v1614_v9  ;;  %v1624_v11 = vld [vmem:[#allocation2 + $0x60] sm:$0xff]  ;;  %1424 = vmatprep.subr.mxu1 %v1015_v39  ;;  %187 = vst.msk [vmem:[#allocation2 + $0x111] sm:$0xff] %vm130_vm0, %v128_v58 }
  0x37   :  { %v1611_v8 = vld [vmem:[#allocation2 + $0x30] sm:$0xff]  ;;  %206 = vst.msk [vmem:[#allocation3 + $0x8] sm:$0xff] %vm130_vm0, %v415_v7  ;;  %v223_v12 = vld [vmem:[#allocation2 + $0x21] sm:$0xff]  ;;  %211 = vst.msk [vmem:[#allocation3 + $0x30] sm:$0xff] %vm130_vm0, %v1624_v11  ;;  %1390 = vmatpush3.msra.mxu0 %v1015_v39  ;;  %1433 = vmatpush3.msra.mxu1 %v1015_v39 }
  0x38   :  { %208 = vst.msk [vmem:[#allocation3 + $0x18] sm:$0xff] %vm130_vm0, %v1611_v8  ;;  %v1618_v10 = vld [vmem:[#allocation2 + $0x50] sm:$0xff]  ;;  %v1638_v15 = vld [vmem:[#allocation2 + $0xc0] sm:$0xff]  ;;  %1391 = vmatprep.subr.mxu0 %v1014_v43  ;;  %1425 = vmatprep.subr.mxu1 %v1014_v43  ;;  %188 = vst.msk [vmem:[#allocation2 + $0x121] sm:$0xff] %vm130_vm0, %v129_v3 }
  0x39   :  { %449 = vrot.lane.b32.xlu1 %v416_v6, %s1451_s22  ;;  %210 = vst.msk [vmem:[#allocation3 + $0x28] sm:$0xff] %vm130_vm0, %v1618_v10  ;;  %v1628_v13 = vld [vmem:[#allocation2 + $0x70] sm:$0xff]  ;;  %215 = vst.msk [vmem:[#allocation3 + $0x50] sm:$0xff] %vm130_vm0, %v1638_v15  ;;  %v320_v19 = vld [vmem:[#allocation2 + $0x22] sm:$0xff]  ;;  %1392 = vmatpush3.msra.mxu0 %v1014_v43 }
  0x3a   :  { %447 = vrot.lane.b32.xlu0 %v415_v7, %s1451_s22  ;;  %212 = vst.msk [vmem:[#allocation3 + $0x38] sm:$0xff] %vm130_vm0, %v1628_v13  ;;  %v1634_v14 = vld [vmem:[#allocation2 + $0xb0] sm:$0xff]  ;;  %v1693_v35 = vld [vmem:[#allocation2 + $0xe0] sm:$0xff]  ;;  %1434 = vmatpush3.msra.mxu1 %v1014_v43 }
  0x3b   :  { %214 = vst.msk [vmem:[#allocation3 + $0x48] sm:$0xff] %vm130_vm0, %v1634_v14  ;;  %v224_v20 = vld [vmem:[#allocation2 + $0x31] sm:$0xff]  ;;  %217 = vst.msk [vmem:[#allocation3 + $0x60] sm:$0xff] %vm130_vm0, %v1693_v35  ;;  %v515_v41 = vld [vmem:[#allocation2 + $0x41] sm:$0xff] }
  0x3c   :  { %v1664_v26 = vld [vmem:[#allocation2 + $0x32] sm:$0xff]  ;;  %v322_v45 = vld [vmem:[#allocation2 + $0x42] sm:$0xff] }
  0x3d   :  { %257 = vrot.lane.b32.xlu1 %v223_v12, %s1449_s24  ;;  %v1669_v30 = vld [vmem:[#allocation2 + $0xd0] sm:$0xff]  ;;  %v1744_v53 = vld [vmem:[#allocation2 + $0x100] sm:$0xff] }
  0x3e   :  { %544 = vrot.lane.b32.xlu0 %v222_v5, %s1452_s1  ;;  %216 = vst.msk [vmem:[#allocation3 + $0x58] sm:$0xff] %vm130_vm0, %v1669_v30  ;;  %v226_v46 = vld [vmem:[#allocation2 + $0x51] sm:$0xff]  ;;  %219 = vst.msk [vmem:[#allocation3 + $0x70] sm:$0xff] %vm130_vm0, %v1744_v53  ;;  %v517_v57 = vld [vmem:[#allocation2 + $0x61] sm:$0xff] }
  0x3f   :  { %v323_v50 = vld [vmem:[#allocation2 + $0x52] sm:$0xff]  ;;  %v324_v61 = vld [vmem:[#allocation2 + $0x62] sm:$0xff] }
  0x40   :  { %v1733_v52 = vld [vmem:[#allocation2 + $0xf0] sm:$0xff]  ;;  %v197_v5 = vld [vmem:[#allocation2 + $0xa0] sm:$0xff] }
  0x41   :  { %641 = vrot.lane.b32.xlu1 %v319_v4, %s1453_s27  ;;  %218 = vst.msk [vmem:[#allocation3 + $0x68] sm:$0xff] %vm130_vm0, %v1733_v52  ;;  %v228_v62 = vld [vmem:[#allocation2 + $0x71] sm:$0xff]  ;;  %213 = vst.msk [vmem:[#allocation3 + $0x40] sm:$0xff] %vm130_vm0, %v197_v5  ;;  %v422_v29 = vld [vmem:[#allocation2 + $0x80] sm:$0xff] }
  0x42   :  { %546 = vrot.lane.b32.xlu0 %v223_v12, %s1452_s1  ;;  %v325_v2 = vld [vmem:[#allocation2 + $0x72] sm:$0xff]  ;;  %v519_v44 = vld [vmem:[#allocation2 + $0x81] sm:$0xff] }
  0x43   :  { %v1778_v4 = vld [vmem:[#allocation2 + $0x110] sm:$0xff]  ;;  %v326_v7 = vld [vmem:[#allocation2 + $0xa2] sm:$0xff] }
  0x44   :  { %220 = vst.msk [vmem:[#allocation3 + $0x78] sm:$0xff] %vm130_vm0, %v1778_v4  ;;  %v521_v24 = vld [vmem:[#allocation2 + $0xc1] sm:$0xff]  ;;  %v232_v33 = vld [vmem:[#allocation2 + $0xd1] sm:$0xff] }
  0x45   :  { %354 = vrot.lane.b32.xlu1 %v320_v19, %s1448_s23  ;;  %v328_v32 = vld [vmem:[#allocation2 + $0xc2] sm:$0xff]  ;;  %v329_v39 = vld [vmem:[#allocation2 + $0xd2] sm:$0xff] }
  0x46   :  { %259 = vrot.lane.b32.xlu0 %v224_v20, %s1449_s24  ;;  %v330_v56 = vld [vmem:[#allocation2 + $0xe2] sm:$0xff] }
  0x49   :  { %739 = vrot.lane.b32.xlu1 %v416_v6, %s1454_s30  ;;  %v229_v6 = vld [vmem:[#allocation2 + $0xa1] sm:$0xff] }
  0x4a   :  { %643 = vrot.lane.b32.xlu0 %v320_v19, %s1453_s27 }
  0x4d   :  { %451 = vrot.lane.b32.xlu1 %v1611_v8, %s1451_s22 }
  0x4e   :  { %356 = vrot.lane.b32.xlu0 %v1664_v26, %s1448_s23 }
  0x51   :  { %836 = vrot.lane.b32.xlu1 %v223_v12, %s1455_s13  ;;  %v327_v12 = vld [vmem:[#allocation2 + $0xb2] sm:$0xff] }
  0x52   :  { %741 = vrot.lane.b32.xlu0 %v1611_v8, %s1454_s30  ;;  %v230_v8 = vld [vmem:[#allocation2 + $0xb1] sm:$0xff] }
  0x55   :  { %548 = vrot.lane.b32.xlu1 %v224_v20, %s1452_s1 }
  0x56   :  { %453 = vrot.lane.b32.xlu0 %v1614_v9, %s1451_s22 }
  0x59   :  { %933 = vrot.lane.b32.xlu1 %v320_v19, %s1456_s25 }
  0x5a   :  { %838 = vrot.lane.b32.xlu0 %v224_v20, %s1455_s13 }
  0x5d   :  { %550 = vrot.lane.b32.xlu1 %v515_v41, %s1452_s1 }
  0x5e   :  { %261 = vrot.lane.b32.xlu0 %v515_v41, %s1449_s24 }
  0x61   :  { %935 = vrot.lane.b32.xlu1 %v1664_v26, %s1456_s25 }
  0x62   :  { %645 = vrot.lane.b32.xlu0 %v1664_v26, %s1453_s27 }
  0x65   :  { %358 = vrot.lane.b32.xlu1 %v322_v45, %s1448_s23 }
  0x66   :  { %263 = vrot.lane.b32.xlu0 %v226_v46, %s1449_s24 }
  0x69   :  { %743 = vrot.lane.b32.xlu1 %v1614_v9, %s1454_s30  ;;  %v616_v9 = vld [vmem:[#allocation2 + $0x82] sm:$0xff] }
  0x6a   :  { %647 = vrot.lane.b32.xlu0 %v322_v45, %s1453_s27 }
  0x6d   :  { %455 = vrot.lane.b32.xlu1 %v1618_v10, %s1451_s22 }
  0x6e   :  { %360 = vrot.lane.b32.xlu0 %v323_v50, %s1448_s23 }
  0x71   :  { %840 = vrot.lane.b32.xlu1 %v515_v41, %s1455_s13 }
  0x72   :  { %745 = vrot.lane.b32.xlu0 %v1618_v10, %s1454_s30 }
  0x75   :  { %552 = vrot.lane.b32.xlu1 %v226_v46, %s1452_s1 }
  0x76   :  { %457 = vrot.lane.b32.xlu0 %v1624_v11, %s1451_s22 }
  0x79   :  { %937 = vrot.lane.b32.xlu1 %v322_v45, %s1456_s25 }
  0x7a   :  { %842 = vrot.lane.b32.xlu0 %v226_v46, %s1455_s13 }
  0x7c   :  { %v351_v59 = vpop.permute.xlu1 %350 }
  0x7d   :  { %v254_v60 = vpop.permute.xlu0 %253  ;;  %554 = vrot.lane.b32.xlu1 %v517_v57, %s1452_s1 }
  0x7e   :  { %265 = vrot.lane.b32.xlu0 %v517_v57, %s1449_s24  ;;  %302 = vst.msk [vmem:[#allocation3] sm:$0xff] %vm301_vm2, %v254_v60 }
  0x7f   :  { %399 = vst.msk [vmem:[#allocation3] sm:$0xff] %vm398_vm3, %v351_v59 }
  0x81   :  { %939 = vrot.lane.b32.xlu1 %v323_v50, %s1456_s25 }
  0x82   :  { %649 = vrot.lane.b32.xlu0 %v323_v50, %s1453_s27 }
  0x85   :  { %362 = vrot.lane.b32.xlu1 %v324_v61, %s1448_s23 }
  0x86   :  { %267 = vrot.lane.b32.xlu0 %v228_v62, %s1449_s24 }
  0x89   :  { %747 = vrot.lane.b32.xlu1 %v1624_v11, %s1454_s30 }
  0x8a   :  { %651 = vrot.lane.b32.xlu0 %v324_v61, %s1453_s27 }
  0x8d   :  { %459 = vrot.lane.b32.xlu1 %v1628_v13, %s1451_s22 }
  0x8e   :  { %364 = vrot.lane.b32.xlu0 %v325_v2, %s1448_s23 }
  0x91   :  { %844 = vrot.lane.b32.xlu1 %v517_v57, %s1455_s13  ;;  %v234_v57 = vld [vmem:[#allocation2 + $0xf1] sm:$0xff] }
  0x92   :  { %749 = vrot.lane.b32.xlu0 %v1628_v13, %s1454_s30 }
  0x95   :  { %556 = vrot.lane.b32.xlu1 %v228_v62, %s1452_s1 }
  0x96   :  { %461 = vrot.lane.b32.xlu0 %v422_v29, %s1451_s22 }
  0x99   :  { %941 = vrot.lane.b32.xlu1 %v324_v61, %s1456_s25 }
  0x9a   :  { %846 = vrot.lane.b32.xlu0 %v228_v62, %s1455_s13  ;;  %v331_v62 = vld [vmem:[#allocation2 + $0xf2] sm:$0xff] }
  0x9d   :  { %558 = vrot.lane.b32.xlu1 %v519_v44, %s1452_s1 }
  0x9e   :  { %269 = vrot.lane.b32.xlu0 %v229_v6, %s1449_s24 }
  0xa1   :  { %943 = vrot.lane.b32.xlu1 %v325_v2, %s1456_s25 }
  0xa2   :  { %653 = vrot.lane.b32.xlu0 %v325_v2, %s1453_s27 }
  0xa5   :  { %366 = vrot.lane.b32.xlu1 %v326_v7, %s1448_s23 }
  0xa6   :  { %271 = vrot.lane.b32.xlu0 %v230_v8, %s1449_s24 }
  0xa7   :  { %v353_v10 = vpop.permute.xlu1 %352 }
  0xa8   :  { %v256_v11 = vpop.permute.xlu0 %255 }
  0xa9   :  { %303 = vst.msk [vmem:[#allocation3 + $0x8] sm:$0xff] %vm301_vm2, %v256_v11  ;;  %751 = vrot.lane.b32.xlu1 %v422_v29, %s1454_s30  ;;  %v236_v11 = vld [vmem:[#allocation2 + $0x111] sm:$0xff] }
  0xaa   :  { %655 = vrot.lane.b32.xlu0 %v616_v9, %s1453_s27  ;;  %400 = vst.msk [vmem:[#allocation3 + $0x8] sm:$0xff] %vm398_vm3, %v353_v10 }
  0xab   :  { %v450_v13 = vpop.permute.xlu1 %449 }
  0xac   :  { %v448_v16 = vpop.permute.xlu0 %447  ;;  %497 = vst.msk [vmem:[#allocation3 + $0x8] sm:$0xff] %vm495_vm4, %v450_v13 }
  0xad   :  { %496 = vst.msk [vmem:[#allocation3] sm:$0xff] %vm495_vm4, %v448_v16  ;;  %463 = vrot.lane.b32.xlu1 %v1634_v14, %s1451_s22  ;;  %v811_v14 = vld [vmem:[#allocation2 + $0x91] sm:$0xff] }
  0xae   :  { %368 = vrot.lane.b32.xlu0 %v327_v12, %s1448_s23 }
  0xaf   :  { %v258_v18 = vpop.permute.xlu1 %257 }
  0xb0   :  { %v545_v19 = vpop.permute.xlu0 %544  ;;  %304 = vst.msk [vmem:[#allocation3 + $0x10] sm:$0xff] %vm301_vm2, %v258_v18 }
  0xb1   :  { %593 = vst.msk [vmem:[#allocation3] sm:$0xff] %vm592_vm5, %v545_v19  ;;  %848 = vrot.lane.b32.xlu1 %v519_v44, %s1455_s13  ;;  %v333_v19 = vld [vmem:[#allocation2 + $0x112] sm:$0xff] }
  0xb2   :  { %753 = vrot.lane.b32.xlu0 %v714_v17, %s1454_s30 }
  0xb3   :  { %v642_v20 = vpop.permute.xlu1 %641 }
  0xb4   :  { %v547_v21 = vpop.permute.xlu0 %546  ;;  %690 = vst.msk [vmem:[#allocation3] sm:$0xff] %vm689_vm6, %v642_v20 }
  0xb5   :  { %594 = vst.msk [vmem:[#allocation3 + $0x8] sm:$0xff] %vm592_vm5, %v547_v21  ;;  %560 = vrot.lane.b32.xlu1 %v230_v8, %s1452_s1 }
  0xb6   :  { %465 = vrot.lane.b32.xlu0 %v1638_v15, %s1451_s22 }
  0xb7   :  { %v355_v22 = vpop.permute.xlu1 %354 }
  0xb8   :  { %v260_v23 = vpop.permute.xlu0 %259  ;;  %401 = vst.msk [vmem:[#allocation3 + $0x10] sm:$0xff] %vm398_vm3, %v355_v22 }
  0xb9   :  { %305 = vst.msk [vmem:[#allocation3 + $0x18] sm:$0xff] %vm301_vm2, %v260_v23  ;;  %945 = vrot.lane.b32.xlu1 %v616_v9, %s1456_s25 }
  0xba   :  { %850 = vrot.lane.b32.xlu0 %v811_v14, %s1455_s13 }
  0xbb   :  { %v740_v25 = vpop.permute.xlu1 %739 }
  0xbc   :  { %v644_v26 = vpop.permute.xlu0 %643  ;;  %788 = vst.msk [vmem:[#allocation3] sm:$0xff] %vm787_vm7, %v740_v25 }
  0xbd   :  { %691 = vst.msk [vmem:[#allocation3 + $0x8] sm:$0xff] %vm689_vm6, %v644_v26  ;;  %562 = vrot.lane.b32.xlu1 %v521_v24, %s1452_s1 }
  0xbe   :  { %273 = vrot.lane.b32.xlu0 %v521_v24, %s1449_s24 }
  0xbf   :  { %v452_v28 = vpop.permute.xlu1 %451 }
  0xc0   :  { %v357_v31 = vpop.permute.xlu0 %356  ;;  %498 = vst.msk [vmem:[#allocation3 + $0x10] sm:$0xff] %vm495_vm4, %v452_v28 }
  0xc1   :  { %402 = vst.msk [vmem:[#allocation3 + $0x18] sm:$0xff] %vm398_vm3, %v357_v31  ;;  %947 = vrot.lane.b32.xlu1 %v908_v27, %s1456_s25 }
  0xc2   :  { %657 = vrot.lane.b32.xlu0 %v327_v12, %s1453_s27  ;;  %v332_v12 = vld [vmem:[#allocation2 + $0x102] sm:$0xff] }
  0xc3   :  { %v837_v34 = vpop.permute.xlu1 %836 }
  0xc4   :  { %v742_v36 = vpop.permute.xlu0 %741  ;;  %885 = vst.msk [vmem:[#allocation3] sm:$0xff] %vm884_vm8, %v837_v34 }
  0xc5   :  { %789 = vst.msk [vmem:[#allocation3 + $0x8] sm:$0xff] %vm787_vm7, %v742_v36  ;;  %370 = vrot.lane.b32.xlu1 %v328_v32, %s1448_s23 }
  0xc6   :  { %275 = vrot.lane.b32.xlu0 %v232_v33, %s1449_s24 }
  0xc7   :  { %v549_v37 = vpop.permute.xlu1 %548 }
  0xc8   :  { %v454_v38 = vpop.permute.xlu0 %453  ;;  %595 = vst.msk [vmem:[#allocation3 + $0x10] sm:$0xff] %vm592_vm5, %v549_v37  ;;  %v722_v37 = vld [vmem:[#allocation2 + $0x130] sm:$0xff] }
  0xc9   :  { %499 = vst.msk [vmem:[#allocation3 + $0x18] sm:$0xff] %vm495_vm4, %v454_v38  ;;  %755 = vrot.lane.b32.xlu1 %v1638_v15, %s1454_s30 }
  0xca   :  { %659 = vrot.lane.b32.xlu0 %v328_v32, %s1453_s27 }
  0xcb   :  { %v934_v40 = vpop.permute.xlu1 %933 }
  0xcc   :  { %v839_v41 = vpop.permute.xlu0 %838  ;;  %982 = vst.msk [vmem:[#allocation3] sm:$0xff] %vm981_vm9, %v934_v40  ;;  %v819_v40 = vld [vmem:[#allocation2 + $0x131] sm:$0xff] }
  0xcd   :  { %886 = vst.msk [vmem:[#allocation3 + $0x8] sm:$0xff] %vm884_vm8, %v839_v41  ;;  %467 = vrot.lane.b32.xlu1 %v1669_v30, %s1451_s22 }
  0xce   :  { %372 = vrot.lane.b32.xlu0 %v329_v39, %s1448_s23 }
  0xcf   :  { %v551_v42 = vpop.permute.xlu1 %550 }
  0xd0   :  { %v262_v43 = vpop.permute.xlu0 %261  ;;  %596 = vst.msk [vmem:[#allocation3 + $0x18] sm:$0xff] %vm592_vm5, %v551_v42 }
  0xd1   :  { %306 = vst.msk [vmem:[#allocation3 + $0x20] sm:$0xff] %vm301_vm2, %v262_v43  ;;  %852 = vrot.lane.b32.xlu1 %v521_v24, %s1455_s13  ;;  %v916_v43 = vld [vmem:[#allocation2 + $0x132] sm:$0xff] }
  0xd2   :  { %757 = vrot.lane.b32.xlu0 %v1669_v30, %s1454_s30  ;;  %v523_v30 = vld [vmem:[#allocation2 + $0xe1] sm:$0xff] }
  0xd3   :  { %v936_v15 = vpop.permute.xlu1 %935  ;;  %v998_v46 = vld [vmem:[#allocation3] sm:$0xff] }
  0xd4   :  { %v646_v45 = vpop.permute.xlu0 %645  ;;  %983 = vst.msk [vmem:[#allocation3 + $0x8] sm:$0xff] %vm981_vm9, %v936_v15  ;;  %1393 = vmatprep.mubr.msk.f32.mxu0 %vm1023_vm10, %v998_v46 }
  0xd5   :  { %692 = vst.msk [vmem:[#allocation3 + $0x10] sm:$0xff] %vm689_vm6, %v646_v45  ;;  %564 = vrot.lane.b32.xlu1 %v232_v33, %s1452_s1 }
  0xd6   :  { %469 = vrot.lane.b32.xlu0 %v1693_v35, %s1451_s22 }
  0xd7   :  { %v359_v47 = vpop.permute.xlu1 %358 }
  0xd8   :  { %v264_v48 = vpop.permute.xlu0 %263  ;;  %403 = vst.msk [vmem:[#allocation3 + $0x20] sm:$0xff] %vm398_vm3, %v359_v47 }
  0xd9   :  { %307 = vst.msk [vmem:[#allocation3 + $0x28] sm:$0xff] %vm301_vm2, %v264_v48  ;;  %949 = vrot.lane.b32.xlu1 %v328_v32, %s1456_s25 }
  0xda   :  { %854 = vrot.lane.b32.xlu0 %v232_v33, %s1455_s13  ;;  %v624_v33 = vld [vmem:[#allocation2 + $0x122] sm:$0xff] }
  0xdb   :  { %v744_v49 = vpop.permute.xlu1 %743  ;;  %v999_v51 = vld [vmem:[#allocation3 + $0x8] sm:$0xff] }
  0xdc   :  { %v648_v50 = vpop.permute.xlu0 %647  ;;  %790 = vst.msk [vmem:[#allocation3 + $0x10] sm:$0xff] %vm787_vm7, %v744_v49  ;;  %1394 = vmatmul.mubr.msk.f32.vlgmr.msra.gmra.mxu0 %vm1023_vm10, %v999_v51 }
  0xdd   :  { %693 = vst.msk [vmem:[#allocation3 + $0x18] sm:$0xff] %vm689_vm6, %v648_v50  ;;  %566 = vrot.lane.b32.xlu1 %v523_v30, %s1452_s1 }
  0xde   :  { %277 = vrot.lane.b32.xlu0 %v523_v30, %s1449_s24 }
  0xdf   :  { %v456_v54 = vpop.permute.xlu1 %455 }
  0xe0   :  { %v361_v55 = vpop.permute.xlu0 %360  ;;  %500 = vst.msk [vmem:[#allocation3 + $0x20] sm:$0xff] %vm495_vm4, %v456_v54 }
  0xe1   :  { %404 = vst.msk [vmem:[#allocation3 + $0x28] sm:$0xff] %vm398_vm3, %v361_v55  ;;  %951 = vrot.lane.b32.xlu1 %v329_v39, %s1456_s25 }
  0xe2   :  { %661 = vrot.lane.b32.xlu0 %v329_v39, %s1453_s27 }
  0xe3   :  { %v841_v58 = vpop.permute.xlu1 %840 }
  0xe4   :  { %v746_v59 = vpop.permute.xlu0 %745  ;;  %887 = vst.msk [vmem:[#allocation3 + $0x10] sm:$0xff] %vm884_vm8, %v841_v58 }
  0xe5   :  { %791 = vst.msk [vmem:[#allocation3 + $0x18] sm:$0xff] %vm787_vm7, %v746_v59  ;;  %374 = vrot.lane.b32.xlu1 %v330_v56, %s1448_s23 }
  0xe6   :  { %279 = vrot.lane.b32.xlu0 %v234_v57, %s1449_s24 }
  0xe7   :  { %v553_v60 = vpop.permute.xlu1 %552 }
  0xe8   :  { %v458_v61 = vpop.permute.xlu0 %457  ;;  %597 = vst.msk [vmem:[#allocation3 + $0x20] sm:$0xff] %vm592_vm5, %v553_v60 }
  0xe9   :  { %501 = vst.msk [vmem:[#allocation3 + $0x28] sm:$0xff] %vm495_vm4, %v458_v61  ;;  %759 = vrot.lane.b32.xlu1 %v1693_v35, %s1454_s30 }
  0xea   :  { %663 = vrot.lane.b32.xlu0 %v330_v56, %s1453_s27 }
  0xeb   :  { %v938_v63 = vpop.permute.xlu1 %937 }
  0xec   :  { %v843_v0 = vpop.permute.xlu0 %842  ;;  %984 = vst.msk [vmem:[#allocation3 + $0x10] sm:$0xff] %vm981_vm9, %v938_v63 }
  0xed   :  { %888 = vst.msk [vmem:[#allocation3 + $0x18] sm:$0xff] %vm884_vm8, %v843_v0  ;;  %471 = vrot.lane.b32.xlu1 %v1733_v52, %s1451_s22 }
  0xee   :  { %376 = vrot.lane.b32.xlu0 %v331_v62, %s1448_s23 }
  0xef   :  { %v555_v1 = vpop.permute.xlu1 %554 }
  0xf0   :  { %v266_v2 = vpop.permute.xlu0 %265  ;;  %598 = vst.msk [vmem:[#allocation3 + $0x28] sm:$0xff] %vm592_vm5, %v555_v1 }
  0xf1   :  { %308 = vst.msk [vmem:[#allocation3 + $0x30] sm:$0xff] %vm301_vm2, %v266_v2  ;;  %856 = vrot.lane.b32.xlu1 %v523_v30, %s1455_s13 }
  0xf2   :  { %761 = vrot.lane.b32.xlu0 %v1733_v52, %s1454_s30  ;;  %v525_v52 = vld [vmem:[#allocation2 + $0x101] sm:$0xff] }
  0xf3   :  { %v940_v35 = vpop.permute.xlu1 %939  ;;  %v1000_v5 = vld [vmem:[#allocation3 + $0x10] sm:$0xff] }
  0xf4   :  { %v650_v3 = vpop.permute.xlu0 %649  ;;  %985 = vst.msk [vmem:[#allocation3 + $0x18] sm:$0xff] %vm981_vm9, %v940_v35  ;;  %1396 = vmatprep.mubr.msk.f32.mxu0 %vm1023_vm10, %v1000_v5 }
  0xf5   :  { %694 = vst.msk [vmem:[#allocation3 + $0x20] sm:$0xff] %vm689_vm6, %v650_v3  ;;  %568 = vrot.lane.b32.xlu1 %v234_v57, %s1452_s1 }
  0xf6   :  { %473 = vrot.lane.b32.xlu0 %v1744_v53, %s1451_s22 }
  0xf7   :  { %v363_v29 = vpop.permute.xlu1 %362 }
  0xf8   :  { %v268_v44 = vpop.permute.xlu0 %267  ;;  %405 = vst.msk [vmem:[#allocation3 + $0x30] sm:$0xff] %vm398_vm3, %v363_v29 }
  0xf9   :  { %309 = vst.msk [vmem:[#allocation3 + $0x38] sm:$0xff] %vm301_vm2, %v268_v44  ;;  %953 = vrot.lane.b32.xlu1 %v330_v56, %s1456_s25 }
  0xfa   :  { %858 = vrot.lane.b32.xlu0 %v234_v57, %s1455_s13 }
  0xfb   :  { %v748_v6 = vpop.permute.xlu1 %747  ;;  %v1001_v8 = vld [vmem:[#allocation3 + $0x18] sm:$0xff] }
  0xfc   :  { %v652_v7 = vpop.permute.xlu0 %651  ;;  %792 = vst.msk [vmem:[#allocation3 + $0x20] sm:$0xff] %vm787_vm7, %v748_v6  ;;  %1397 = vmatmul.mubr.msk.f32.gmra.mxu0 %vm1023_vm10, %v1001_v8 }
  0xfd   :  { %695 = vst.msk [vmem:[#allocation3 + $0x28] sm:$0xff] %vm689_vm6, %v652_v7  ;;  %570 = vrot.lane.b32.xlu1 %v525_v52, %s1452_s1 }
  0xfe   :  { %281 = vrot.lane.b32.xlu0 %v525_v52, %s1449_s24 }
  0xff   :  { %v460_v9 = vpop.permute.xlu1 %459 }
 0x100   :  { %v365_v10 = vpop.permute.xlu0 %364  ;;  %502 = vst.msk [vmem:[#allocation3 + $0x30] sm:$0xff] %vm495_vm4, %v460_v9 }
 0x101   :  { %406 = vst.msk [vmem:[#allocation3 + $0x38] sm:$0xff] %vm398_vm3, %v365_v10  ;;  %955 = vrot.lane.b32.xlu1 %v331_v62, %s1456_s25 }
 0x102   :  { %665 = vrot.lane.b32.xlu0 %v331_v62, %s1453_s27 }
 0x103   :  { %v845_v13 = vpop.permute.xlu1 %844 }
 0x104   :  { %v750_v16 = vpop.permute.xlu0 %749  ;;  %889 = vst.msk [vmem:[#allocation3 + $0x20] sm:$0xff] %vm884_vm8, %v845_v13 }
 0x105   :  { %793 = vst.msk [vmem:[#allocation3 + $0x28] sm:$0xff] %vm787_vm7, %v750_v16  ;;  %378 = vrot.lane.b32.xlu1 %v332_v12, %s1448_s23 }
 0x106   :  { %283 = vrot.lane.b32.xlu0 %v236_v11, %s1449_s24 }
 0x107   :  { %v557_v17 = vpop.permute.xlu1 %556 }
 0x108   :  { %v462_v18 = vpop.permute.xlu0 %461  ;;  %599 = vst.msk [vmem:[#allocation3 + $0x30] sm:$0xff] %vm592_vm5, %v557_v17 }
 0x109   :  { %503 = vst.msk [vmem:[#allocation3 + $0x38] sm:$0xff] %vm495_vm4, %v462_v18  ;;  %763 = vrot.lane.b32.xlu1 %v1744_v53, %s1454_s30  ;;  %v430_v53 = vld [vmem:[#allocation2 + $0x120] sm:$0xff] }
 0x10a   :  { %667 = vrot.lane.b32.xlu0 %v332_v12, %s1453_s27 }
 0x10b   :  { %v942_v20 = vpop.permute.xlu1 %941 }
 0x10c   :  { %v847_v21 = vpop.permute.xlu0 %846  ;;  %986 = vst.msk [vmem:[#allocation3 + $0x20] sm:$0xff] %vm981_vm9, %v942_v20 }
 0x10d   :  { %890 = vst.msk [vmem:[#allocation3 + $0x28] sm:$0xff] %vm884_vm8, %v847_v21  ;;  %475 = vrot.lane.b32.xlu1 %v1778_v4, %s1451_s22 }
 0x10e   :  { %380 = vrot.lane.b32.xlu0 %v333_v19, %s1448_s23 }
 0x10f   :  { %v559_v14 = vpop.permute.xlu1 %558 }
 0x110   :  { %v270_v22 = vpop.permute.xlu0 %269  ;;  %600 = vst.msk [vmem:[#allocation3 + $0x38] sm:$0xff] %vm592_vm5, %v559_v14 }
 0x111   :  { %310 = vst.msk [vmem:[#allocation3 + $0x40] sm:$0xff] %vm301_vm2, %v270_v22  ;;  %860 = vrot.lane.b32.xlu1 %v525_v52, %s1455_s13 }
 0x112   :  { %765 = vrot.lane.b32.xlu0 %v1778_v4, %s1454_s30  ;;  %v527_v4 = vld [vmem:[#allocation2 + $0x121] sm:$0xff] }
 0x113   :  { %v944_v23 = vpop.permute.xlu1 %943  ;;  %v1002_v25 = vld [vmem:[#allocation3 + $0x20] sm:$0xff] }
 0x114   :  { %v654_v24 = vpop.permute.xlu0 %653  ;;  %987 = vst.msk [vmem:[#allocation3 + $0x28] sm:$0xff] %vm981_vm9, %v944_v23  ;;  %1399 = vmatprep.mubr.msk.f32.mxu0 %vm1023_vm10, %v1002_v25 }
 0x115   :  { %696 = vst.msk [vmem:[#allocation3 + $0x30] sm:$0xff] %vm689_vm6, %v654_v24  ;;  %572 = vrot.lane.b32.xlu1 %v236_v11, %s1452_s1 }
 0x116   :  { %477 = vrot.lane.b32.xlu0 %v430_v53, %s1451_s22 }
 0x117   :  { %v367_v26 = vpop.permute.xlu1 %366 }
 0x118   :  { %v272_v27 = vpop.permute.xlu0 %271  ;;  %407 = vst.msk [vmem:[#allocation3 + $0x40] sm:$0xff] %vm398_vm3, %v367_v26 }
 0x119   :  { %311 = vst.msk [vmem:[#allocation3 + $0x48] sm:$0xff] %vm301_vm2, %v272_v27  ;;  %957 = vrot.lane.b32.xlu1 %v332_v12, %s1456_s25 }
 0x11a   :  { %862 = vrot.lane.b32.xlu0 %v236_v11, %s1455_s13 }
 0x11b   :  { %v752_v28 = vpop.permute.xlu1 %751  ;;  %v1003_v32 = vld [vmem:[#allocation3 + $0x28] sm:$0xff] }
 0x11c   :  { %v656_v31 = vpop.permute.xlu0 %655  ;;  %794 = vst.msk [vmem:[#allocation3 + $0x30] sm:$0xff] %vm787_vm7, %v752_v28  ;;  %1400 = vmatmul.mubr.msk.f32.gmra.mxu0 %vm1023_vm10, %v1003_v32 }
 0x11d   :  { %697 = vst.msk [vmem:[#allocation3 + $0x38] sm:$0xff] %vm689_vm6, %v656_v31  ;;  %669 = vrot.lane.b32.xlu1 %v333_v19, %s1453_s27 }
 0x11e   :  { %574 = vrot.lane.b32.xlu0 %v527_v4, %s1452_s1 }
 0x11f   :  { %v464_v34 = vpop.permute.xlu1 %463 }
 0x120   :  { %v369_v36 = vpop.permute.xlu0 %368  ;;  %504 = vst.msk [vmem:[#allocation3 + $0x40] sm:$0xff] %vm495_vm4, %v464_v34 }
 0x121   :  { %408 = vst.msk [vmem:[#allocation3 + $0x48] sm:$0xff] %vm398_vm3, %v369_v36  ;;  %671 = vrot.lane.b32.xlu1 %v624_v33, %s1453_s27 }
 0x122   :  { %959 = vrot.lane.b32.xlu0 %v333_v19, %s1456_s25 }
 0x123   :  { %v849_v38 = vpop.permute.xlu1 %848 }
 0x124   :  { %v754_v39 = vpop.permute.xlu0 %753  ;;  %891 = vst.msk [vmem:[#allocation3 + $0x30] sm:$0xff] %vm884_vm8, %v849_v38 }
 0x125   :  { %795 = vst.msk [vmem:[#allocation3 + $0x38] sm:$0xff] %vm787_vm7, %v754_v39  ;;  %769 = vrot.lane.b32.xlu1 %v722_v37, %s1454_s30 }
 0x126   :  { %767 = vrot.lane.b32.xlu0 %v430_v53, %s1454_s30 }
 0x127   :  { %v561_v41 = vpop.permute.xlu1 %560 }
 0x128   :  { %v466_v42 = vpop.permute.xlu0 %465  ;;  %601 = vst.msk [vmem:[#allocation3 + $0x40] sm:$0xff] %vm592_vm5, %v561_v41 }
 0x129   :  { %505 = vst.msk [vmem:[#allocation3 + $0x48] sm:$0xff] %vm495_vm4, %v466_v42  ;;  %866 = vrot.lane.b32.xlu1 %v819_v40, %s1455_s13 }
 0x12a   :  { %864 = vrot.lane.b32.xlu0 %v527_v4, %s1455_s13 }
 0x12b   :  { %v946_v15 = vpop.permute.xlu1 %945 }
 0x12c   :  { %v851_v45 = vpop.permute.xlu0 %850  ;;  %988 = vst.msk [vmem:[#allocation3 + $0x30] sm:$0xff] %vm981_vm9, %v946_v15 }
 0x12d   :  { %892 = vst.msk [vmem:[#allocation3 + $0x38] sm:$0xff] %vm884_vm8, %v851_v45  ;;  %963 = vrot.lane.b32.xlu1 %v916_v43, %s1456_s25 }
 0x12e   :  { %961 = vrot.lane.b32.xlu0 %v624_v33, %s1456_s25 }
 0x12f   :  { %v563_v46 = vpop.permute.xlu1 %562 }
 0x130   :  { %v274_v47 = vpop.permute.xlu0 %273  ;;  %602 = vst.msk [vmem:[#allocation3 + $0x48] sm:$0xff] %vm592_vm5, %v563_v46 }
 0x131   :  { %312 = vst.msk [vmem:[#allocation3 + $0x50] sm:$0xff] %vm301_vm2, %v274_v47 }
 0x133   :  { %v948_v48 = vpop.permute.xlu1 %947  ;;  %v1004_v49 = vld [vmem:[#allocation3 + $0x30] sm:$0xff] }
 0x134   :  { %v658_v30 = vpop.permute.xlu0 %657  ;;  %989 = vst.msk [vmem:[#allocation3 + $0x38] sm:$0xff] %vm981_vm9, %v948_v48  ;;  %1402 = vmatprep.mubr.msk.f32.mxu0 %vm1023_vm10, %v1004_v49 }
 0x135   :  { %698 = vst.msk [vmem:[#allocation3 + $0x40] sm:$0xff] %vm689_vm6, %v658_v30 }
 0x137   :  { %v371_v50 = vpop.permute.xlu1 %370 }
 0x138   :  { %v276_v51 = vpop.permute.xlu0 %275  ;;  %409 = vst.msk [vmem:[#allocation3 + $0x50] sm:$0xff] %vm398_vm3, %v371_v50 }
 0x139   :  { %313 = vst.msk [vmem:[#allocation3 + $0x58] sm:$0xff] %vm301_vm2, %v276_v51 }
 0x13b   :  { %v756_v54 = vpop.permute.xlu1 %755  ;;  %v1005_v56 = vld [vmem:[#allocation3 + $0x38] sm:$0xff] }
 0x13c   :  { %v660_v55 = vpop.permute.xlu0 %659  ;;  %796 = vst.msk [vmem:[#allocation3 + $0x40] sm:$0xff] %vm787_vm7, %v756_v54  ;;  %1403 = vmatmul.mubr.msk.f32.gmra.mxu0 %vm1023_vm10, %v1005_v56 }
 0x13d   :  { %699 = vst.msk [vmem:[#allocation3 + $0x48] sm:$0xff] %vm689_vm6, %v660_v55 }
 0x13f   :  { %v468_v57 = vpop.permute.xlu1 %467 }
 0x140   :  { %v373_v58 = vpop.permute.xlu0 %372  ;;  %506 = vst.msk [vmem:[#allocation3 + $0x50] sm:$0xff] %vm495_vm4, %v468_v57 }
 0x141   :  { %410 = vst.msk [vmem:[#allocation3 + $0x58] sm:$0xff] %vm398_vm3, %v373_v58 }
 0x143   :  { %v853_v59 = vpop.permute.xlu1 %852 }
 0x144   :  { %v758_v60 = vpop.permute.xlu0 %757  ;;  %893 = vst.msk [vmem:[#allocation3 + $0x40] sm:$0xff] %vm884_vm8, %v853_v59 }
 0x145   :  { %797 = vst.msk [vmem:[#allocation3 + $0x48] sm:$0xff] %vm787_vm7, %v758_v60 }
 0x147   :  { %v565_v61 = vpop.permute.xlu1 %564 }
 0x148   :  { %v470_v62 = vpop.permute.xlu0 %469  ;;  %603 = vst.msk [vmem:[#allocation3 + $0x50] sm:$0xff] %vm592_vm5, %v565_v61 }
 0x149   :  { %507 = vst.msk [vmem:[#allocation3 + $0x58] sm:$0xff] %vm495_vm4, %v470_v62 }
 0x14b   :  { %v950_v63 = vpop.permute.xlu1 %949 }
 0x14c   :  { %v855_v0 = vpop.permute.xlu0 %854  ;;  %990 = vst.msk [vmem:[#allocation3 + $0x40] sm:$0xff] %vm981_vm9, %v950_v63 }
 0x14d   :  { %894 = vst.msk [vmem:[#allocation3 + $0x48] sm:$0xff] %vm884_vm8, %v855_v0 }
 0x14f   :  { %v567_v1 = vpop.permute.xlu1 %566 }
 0x150   :  { %v278_v2 = vpop.permute.xlu0 %277  ;;  %604 = vst.msk [vmem:[#allocation3 + $0x58] sm:$0xff] %vm592_vm5, %v567_v1 }
 0x151   :  { %314 = vst.msk [vmem:[#allocation3 + $0x60] sm:$0xff] %vm301_vm2, %v278_v2 }
 0x153   :  { %v952_v35 = vpop.permute.xlu1 %951  ;;  %v1006_v5 = vld [vmem:[#allocation3 + $0x40] sm:$0xff] }
 0x154   :  { %v662_v3 = vpop.permute.xlu0 %661  ;;  %991 = vst.msk [vmem:[#allocation3 + $0x48] sm:$0xff] %vm981_vm9, %v952_v35  ;;  %1405 = vmatprep.mubr.msk.f32.mxu1 %vm1023_vm10, %v1006_v5 }
 0x155   :  { %700 = vst.msk [vmem:[#allocation3 + $0x50] sm:$0xff] %vm689_vm6, %v662_v3 }
 0x157   :  { %v375_v29 = vpop.permute.xlu1 %374 }
 0x158   :  { %v280_v44 = vpop.permute.xlu0 %279  ;;  %411 = vst.msk [vmem:[#allocation3 + $0x60] sm:$0xff] %vm398_vm3, %v375_v29 }
 0x159   :  { %315 = vst.msk [vmem:[#allocation3 + $0x68] sm:$0xff] %vm301_vm2, %v280_v44 }
 0x15b   :  { %v760_v52 = vpop.permute.xlu1 %759  ;;  %v1007_v7 = vld [vmem:[#allocation3 + $0x48] sm:$0xff] }
 0x15c   :  { %v664_v6 = vpop.permute.xlu0 %663  ;;  %798 = vst.msk [vmem:[#allocation3 + $0x50] sm:$0xff] %vm787_vm7, %v760_v52  ;;  %1406 = vmatmul.mubr.msk.f32.vlgmr.msra.gmra.mxu1 %vm1023_vm10, %v1007_v7 }
 0x15d   :  { %701 = vst.msk [vmem:[#allocation3 + $0x58] sm:$0xff] %vm689_vm6, %v664_v6 }
 0x15f   :  { %v472_v8 = vpop.permute.xlu1 %471 }
 0x160   :  { %v377_v9 = vpop.permute.xlu0 %376  ;;  %508 = vst.msk [vmem:[#allocation3 + $0x60] sm:$0xff] %vm495_vm4, %v472_v8 }
 0x161   :  { %412 = vst.msk [vmem:[#allocation3 + $0x68] sm:$0xff] %vm398_vm3, %v377_v9 }
 0x163   :  { %v857_v10 = vpop.permute.xlu1 %856 }
 0x164   :  { %v762_v11 = vpop.permute.xlu0 %761  ;;  %895 = vst.msk [vmem:[#allocation3 + $0x50] sm:$0xff] %vm884_vm8, %v857_v10 }
 0x165   :  { %799 = vst.msk [vmem:[#allocation3 + $0x58] sm:$0xff] %vm787_vm7, %v762_v11 }
 0x167   :  { %v569_v12 = vpop.permute.xlu1 %568 }
 0x168   :  { %v474_v13 = vpop.permute.xlu0 %473  ;;  %605 = vst.msk [vmem:[#allocation3 + $0x60] sm:$0xff] %vm592_vm5, %v569_v12 }
 0x169   :  { %509 = vst.msk [vmem:[#allocation3 + $0x68] sm:$0xff] %vm495_vm4, %v474_v13 }
 0x16b   :  { %v954_v16 = vpop.permute.xlu1 %953 }
 0x16c   :  { %v859_v17 = vpop.permute.xlu0 %858  ;;  %992 = vst.msk [vmem:[#allocation3 + $0x50] sm:$0xff] %vm981_vm9, %v954_v16 }
 0x16d   :  { %896 = vst.msk [vmem:[#allocation3 + $0x58] sm:$0xff] %vm884_vm8, %v859_v17 }
 0x16f   :  { %v571_v18 = vpop.permute.xlu1 %570 }
 0x170   :  { %v282_v19 = vpop.permute.xlu0 %281  ;;  %606 = vst.msk [vmem:[#allocation3 + $0x68] sm:$0xff] %vm592_vm5, %v571_v18 }
 0x171   :  { %316 = vst.msk [vmem:[#allocation3 + $0x70] sm:$0xff] %vm301_vm2, %v282_v19 }
 0x173   :  { %v956_v20 = vpop.permute.xlu1 %955  ;;  %v1008_v14 = vld [vmem:[#allocation3 + $0x50] sm:$0xff] }
 0x174   :  { %v666_v21 = vpop.permute.xlu0 %665  ;;  %993 = vst.msk [vmem:[#allocation3 + $0x58] sm:$0xff] %vm981_vm9, %v956_v20  ;;  %1408 = vmatprep.mubr.msk.f32.mxu1 %vm1023_vm10, %v1008_v14 }
 0x175   :  { %702 = vst.msk [vmem:[#allocation3 + $0x60] sm:$0xff] %vm689_vm6, %v666_v21 }
 0x177   :  { %v379_v53 = vpop.permute.xlu1 %378 }
 0x178   :  { %v284_v22 = vpop.permute.xlu0 %283  ;;  %413 = vst.msk [vmem:[#allocation3 + $0x70] sm:$0xff] %vm398_vm3, %v379_v53 }
 0x179   :  { %317 = vst.msk [vmem:[#allocation3 + $0x78] sm:$0xff] %vm301_vm2, %v284_v22 }
 0x17b   :  { %v764_v24 = vpop.permute.xlu1 %763  ;;  %v1009_v25 = vld [vmem:[#allocation3 + $0x58] sm:$0xff] }
 0x17c   :  { %v668_v23 = vpop.permute.xlu0 %667  ;;  %800 = vst.msk [vmem:[#allocation3 + $0x60] sm:$0xff] %vm787_vm7, %v764_v24  ;;  %1409 = vmatmul.mubr.msk.f32.gmra.mxu1 %vm1023_vm10, %v1009_v25 }
 0x17d   :  { %703 = vst.msk [vmem:[#allocation3 + $0x68] sm:$0xff] %vm689_vm6, %v668_v23 }
 0x17f   :  { %v476_v27 = vpop.permute.xlu1 %475 }
 0x180   :  { %v381_v26 = vpop.permute.xlu0 %380  ;;  %510 = vst.msk [vmem:[#allocation3 + $0x70] sm:$0xff] %vm495_vm4, %v476_v27 }
 0x181   :  { %414 = vst.msk [vmem:[#allocation3 + $0x78] sm:$0xff] %vm398_vm3, %v381_v26 }
 0x183   :  { %v861_v28 = vpop.permute.xlu1 %860 }
 0x184   :  { %v766_v4 = vpop.permute.xlu0 %765  ;;  %897 = vst.msk [vmem:[#allocation3 + $0x60] sm:$0xff] %vm884_vm8, %v861_v28 }
 0x185   :  { %801 = vst.msk [vmem:[#allocation3 + $0x68] sm:$0xff] %vm787_vm7, %v766_v4 }
 0x187   :  { %v573_v32 = vpop.permute.xlu1 %572 }
 0x188   :  { %v478_v31 = vpop.permute.xlu0 %477  ;;  %607 = vst.msk [vmem:[#allocation3 + $0x70] sm:$0xff] %vm592_vm5, %v573_v32 }
 0x189   :  { %511 = vst.msk [vmem:[#allocation3 + $0x78] sm:$0xff] %vm495_vm4, %v478_v31 }
 0x18b   :  { %v958_v34 = vpop.permute.xlu1 %957 }
 0x18c   :  { %v863_v33 = vpop.permute.xlu0 %862  ;;  %994 = vst.msk [vmem:[#allocation3 + $0x60] sm:$0xff] %vm981_vm9, %v958_v34 }
 0x18d   :  { %898 = vst.msk [vmem:[#allocation3 + $0x68] sm:$0xff] %vm884_vm8, %v863_v33 }
 0x18f   :  { %v670_v37 = vpop.permute.xlu1 %669 }
 0x190   :  { %v575_v36 = vpop.permute.xlu0 %574  ;;  %704 = vst.msk [vmem:[#allocation3 + $0x70] sm:$0xff] %vm689_vm6, %v670_v37 }
 0x191   :  { %608 = vst.msk [vmem:[#allocation3 + $0x78] sm:$0xff] %vm592_vm5, %v575_v36 }
 0x193   :  { %v672_v39 = vpop.permute.xlu1 %671  ;;  %v1010_v40 = vld [vmem:[#allocation3 + $0x60] sm:$0xff] }
 0x194   :  { %v960_v38 = vpop.permute.xlu0 %959  ;;  %705 = vst.msk [vmem:[#allocation3 + $0x78] sm:$0xff] %vm689_vm6, %v672_v39  ;;  %1411 = vmatprep.mubr.msk.f32.mxu1 %vm1023_vm10, %v1010_v40 }
 0x195   :  { %995 = vst.msk [vmem:[#allocation3 + $0x68] sm:$0xff] %vm981_vm9, %v960_v38 }
 0x197   :  { %v770_v42 = vpop.permute.xlu1 %769 }
 0x198   :  { %v768_v41 = vpop.permute.xlu0 %767  ;;  %803 = vst.msk [vmem:[#allocation3 + $0x78] sm:$0xff] %vm787_vm7, %v770_v42 }
 0x199   :  { %802 = vst.msk [vmem:[#allocation3 + $0x70] sm:$0xff] %vm787_vm7, %v768_v41 }
 0x19b   :  { %v867_v15 = vpop.permute.xlu1 %866 }
 0x19c   :  { %v865_v43 = vpop.permute.xlu0 %864  ;;  %v1011_v45 = vld [vmem:[#allocation3 + $0x68] sm:$0xff]  ;;  %900 = vst.msk [vmem:[#allocation3 + $0x78] sm:$0xff] %vm884_vm8, %v867_v15  ;;  %v1395_v46 = vpop.f32.mrf.mxu0 }
 0x19d   :  { %899 = vst.msk [vmem:[#allocation3 + $0x70] sm:$0xff] %vm884_vm8, %v865_v43  ;;  %1412 = vmatmul.mubr.msk.f32.gmra.mxu1 %vm1023_vm10, %v1011_v45  ;;  %v1234_v47 = vsel %vm130_vm0, %v1395_v46, 0.0  ;;  %v1271_v48 = vmul.f32 %v1395_v46, %v1395_v46 }
 0x19e   :  { %1218 = vst.msk [vmem:[%s2125_s5 + $0x8] sm:$0xff] %vm130_vm0, %v1395_v46  ;;  %v1138_v30 = vpop.f32.mrf.mxu0 }
 0x19f   :  { %v1287_v49 = vsel %vm130_vm0, %v1271_v48, 0.0  ;;  %1217 = vst.msk [vmem:[%s2125_s5] sm:$0xff] %vm130_vm0, %v1138_v30  ;;  %v1233_v50 = vsel %vm130_vm0, %v1138_v30, 0.0  ;;  %v1270_v51 = vmul.f32 %v1138_v30, %v1138_v30  ;;  %v964_v55 = vpop.permute.xlu1 %963 }
 0x1a0   :  { %v962_v54 = vpop.permute.xlu0 %961  ;;  %v1235_v56 = vadd.f32 %v1234_v47, %v1233_v50  ;;  %997 = vst.msk [vmem:[#allocation3 + $0x78] sm:$0xff] %vm981_vm9, %v964_v55 }
 0x1a1   :  { %996 = vst.msk [vmem:[#allocation3 + $0x70] sm:$0xff] %vm981_vm9, %v962_v54  ;;  %v1286_v57 = vsel %vm130_vm0, %v1270_v51, 0.0 }
 0x1a2   :  { %v1288_v58 = vadd.f32 %v1287_v49, %v1286_v57 }
 0x1a7   :  { %v1013_v60 = vld [vmem:[#allocation3 + $0x78] sm:$0xff] }
 0x1a8   :  { %v1012_v59 = vld [vmem:[#allocation3 + $0x70] sm:$0xff] }
 0x1a9   :  { %1414 = vmatprep.mubr.msk.f32.mxu1 %vm1023_vm10, %v1012_v59 }
 0x1aa   :  { %1415 = vmatmul.mubr.msk.f32.gmra.mxu1 %vm1023_vm10, %v1013_v60 }
 0x1bc   :  { %v1398_v61 = vpop.f32.mrf.mxu0 }
 0x1bd   :  { %1220 = vst.msk [vmem:[%s2125_s5 + $0x18] sm:$0xff] %vm130_vm0, %v1398_v61  ;;  %v1273_v63 = vmul.f32 %v1398_v61, %v1398_v61  ;;  %v1238_v35 = vsel %vm130_vm0, %v1398_v61, 0.0 }
 0x1be   :  { %v1148_v62 = vpop.f32.mrf.mxu0 }
 0x1bf   :  { %1219 = vst.msk [vmem:[%s2125_s5 + $0x10] sm:$0xff] %vm130_vm0, %v1148_v62  ;;  %v1236_v0 = vsel %vm130_vm0, %v1148_v62, 0.0  ;;  %v1272_v1 = vmul.f32 %v1148_v62, %v1148_v62  ;;  %v1291_v44 = vsel %vm130_vm0, %v1273_v63, 0.0 }
 0x1c0   :  { %v1237_v2 = vadd.f32 %v1236_v0, %v1235_v56 }
 0x1c1   :  { %v1289_v3 = vsel %vm130_vm0, %v1272_v1, 0.0 }
 0x1c2   :  { %v1290_v5 = vadd.f32 %v1289_v3, %v1288_v58  ;;  %v1239_v29 = vadd.f32 %v1238_v35, %v1237_v2 }
 0x1c4   :  { %v1292_v52 = vadd.f32 %v1291_v44, %v1290_v5 }
 0x1dc   :  { %v1401_v6 = vpop.f32.mrf.mxu0 }
 0x1dd   :  { %1222 = vst.msk [vmem:[%s2125_s5 + $0x28] sm:$0xff] %vm130_vm0, %v1401_v6  ;;  %v1275_v8 = vmul.f32 %v1401_v6, %v1401_v6  ;;  %v1242_v12 = vsel %vm130_vm0, %v1401_v6, 0.0 }
 0x1de   :  { %v1158_v7 = vpop.f32.mrf.mxu0 }
 0x1df   :  { %1221 = vst.msk [vmem:[%s2125_s5 + $0x20] sm:$0xff] %vm130_vm0, %v1158_v7  ;;  %v1240_v9 = vsel %vm130_vm0, %v1158_v7, 0.0  ;;  %v1274_v10 = vmul.f32 %v1158_v7, %v1158_v7  ;;  %v1295_v18 = vsel %vm130_vm0, %v1275_v8, 0.0 }
 0x1e0   :  { %v1241_v11 = vadd.f32 %v1240_v9, %v1239_v29 }
 0x1e1   :  { %v1293_v13 = vsel %vm130_vm0, %v1274_v10, 0.0 }
 0x1e2   :  { %v1294_v16 = vadd.f32 %v1293_v13, %v1292_v52  ;;  %v1243_v17 = vadd.f32 %v1242_v12, %v1241_v11 }
 0x1e4   :  { %v1296_v19 = vadd.f32 %v1295_v18, %v1294_v16 }
 0x1fc   :  { %v1404_v20 = vpop.f32.mrf.mxu0 }
 0x1fd   :  { %1224 = vst.msk [vmem:[%s2125_s5 + $0x38] sm:$0xff] %vm130_vm0, %v1404_v20  ;;  %v1277_v14 = vmul.f32 %v1404_v20, %v1404_v20  ;;  %v1246_v24 = vsel %vm130_vm0, %v1404_v20, 0.0 }
 0x1fe   :  { %v1168_v21 = vpop.f32.mrf.mxu0 }
 0x1ff   :  { %1223 = vst.msk [vmem:[%s2125_s5 + $0x30] sm:$0xff] %vm130_vm0, %v1168_v21  ;;  %v1244_v22 = vsel %vm130_vm0, %v1168_v21, 0.0  ;;  %v1276_v53 = vmul.f32 %v1168_v21, %v1168_v21  ;;  %v1299_v4 = vsel %vm130_vm0, %v1277_v14, 0.0 }
 0x200   :  { %v1245_v23 = vadd.f32 %v1244_v22, %v1243_v17 }
 0x201   :  { %v1297_v25 = vsel %vm130_vm0, %v1276_v53, 0.0 }
 0x202   :  { %v1247_v26 = vadd.f32 %v1246_v24, %v1245_v23  ;;  %v1298_v27 = vadd.f32 %v1297_v25, %v1296_v19 }
 0x204   :  { %v1300_v28 = vadd.f32 %v1299_v4, %v1298_v27 }
 0x21c   :  { %v1407_v31 = vpop.f32.mrf.mxu1 }
 0x21d   :  { %1226 = vst.msk [vmem:[%s2125_s5 + $0x48] sm:$0xff] %vm130_vm0, %v1407_v31  ;;  %v1279_v33 = vmul.f32 %v1407_v31, %v1407_v31  ;;  %v1250_v38 = vsel %vm130_vm0, %v1407_v31, 0.0 }
 0x21e   :  { %v1178_v32 = vpop.f32.mrf.mxu1 }
 0x21f   :  { %1225 = vst.msk [vmem:[%s2125_s5 + $0x40] sm:$0xff] %vm130_vm0, %v1178_v32  ;;  %v1248_v34 = vsel %vm130_vm0, %v1178_v32, 0.0  ;;  %v1278_v36 = vmul.f32 %v1178_v32, %v1178_v32  ;;  %v1303_v42 = vsel %vm130_vm0, %v1279_v33, 0.0 }
 0x220   :  { %v1249_v37 = vadd.f32 %v1248_v34, %v1247_v26 }
 0x221   :  { %v1301_v39 = vsel %vm130_vm0, %v1278_v36, 0.0 }
 0x222   :  { %v1302_v40 = vadd.f32 %v1301_v39, %v1300_v28  ;;  %v1251_v41 = vadd.f32 %v1250_v38, %v1249_v37 }
 0x224   :  { %v1304_v43 = vadd.f32 %v1303_v42, %v1302_v40 }
 0x23c   :  { %v1410_v15 = vpop.f32.mrf.mxu1 }
 0x23d   :  { %1228 = vst.msk [vmem:[%s2125_s5 + $0x58] sm:$0xff] %vm130_vm0, %v1410_v15  ;;  %v1281_v51 = vmul.f32 %v1410_v15, %v1410_v15  ;;  %v1254_v56 = vsel %vm130_vm0, %v1410_v15, 0.0 }
 0x23e   :  { %v1188_v45 = vpop.f32.mrf.mxu1 }
 0x23f   :  { %1227 = vst.msk [vmem:[%s2125_s5 + $0x50] sm:$0xff] %vm130_vm0, %v1188_v45  ;;  %v1280_v46 = vmul.f32 %v1188_v45, %v1188_v45  ;;  %v1252_v48 = vsel %vm130_vm0, %v1188_v45, 0.0  ;;  %v1307_v59 = vsel %vm130_vm0, %v1281_v51, 0.0 }
 0x240   :  { %v1253_v50 = vadd.f32 %v1252_v48, %v1251_v41 }
 0x241   :  { %v1305_v49 = vsel %vm130_vm0, %v1280_v46, 0.0 }
 0x242   :  { %v1306_v55 = vadd.f32 %v1305_v49, %v1304_v43  ;;  %v1255_v58 = vadd.f32 %v1254_v56, %v1253_v50 }
 0x244   :  { %v1308_v62 = vadd.f32 %v1307_v59, %v1306_v55 }
 0x25d   :  { %v1413_v47 = vpop.f32.mrf.mxu1 }
 0x25e   :  { %1230 = vst.msk [vmem:[%s2125_s5 + $0x68] sm:$0xff] %vm130_vm0, %v1413_v47  ;;  %v1283_v63 = vmul.f32 %v1413_v47, %v1413_v47  ;;  %v1258_v2 = vsel %vm130_vm0, %v1413_v47, 0.0 }
 0x25f   :  { %v1198_v30 = vpop.f32.mrf.mxu1 }
 0x260   :  { %1229 = vst.msk [vmem:[%s2125_s5 + $0x60] sm:$0xff] %vm130_vm0, %v1198_v30  ;;  %v1282_v54 = vmul.f32 %v1198_v30, %v1198_v30  ;;  %v1256_v57 = vsel %vm130_vm0, %v1198_v30, 0.0  ;;  %v1311_v5 = vsel %vm130_vm0, %v1283_v63, 0.0 }
 0x261   :  { %v1257_v61 = vadd.f32 %v1256_v57, %v1255_v58 }
 0x262   :  { %v1309_v60 = vsel %vm130_vm0, %v1282_v54, 0.0 }
 0x263   :  { %v1310_v0 = vadd.f32 %v1309_v60, %v1308_v62  ;;  %v1259_v3 = vadd.f32 %v1258_v2, %v1257_v61 }
 0x265   :  { %v1312_v7 = vadd.f32 %v1311_v5, %v1310_v0 }
 0x26a   :  { %v1416_v1 = vpop.f32.mrf.mxu1 }
 0x26b   :  { %1232 = vst.msk [vmem:[%s2125_s5 + $0x78] sm:$0xff] %vm130_vm0, %v1416_v1  ;;  %v1285_v29 = vmul.f32 %v1416_v1, %v1416_v1  ;;  %v1262_v8 = vsel %vm130_vm0, %v1416_v1, 0.0 }
 0x26c   :  { %v1208_v35 = vpop.f32.mrf.mxu1 }
 0x26d   :  { %1231 = vst.msk [vmem:[%s2125_s5 + $0x70] sm:$0xff] %vm130_vm0, %v1208_v35  ;;  %v1260_v44 = vsel %vm130_vm0, %v1208_v35, 0.0  ;;  %v1284_v52 = vmul.f32 %v1208_v35, %v1208_v35  ;;  %v1315_v12 = vsel %vm130_vm0, %v1285_v29, 0.0 }
 0x26e   :  { %v1261_v6 = vadd.f32 %v1260_v44, %v1259_v3 }
 0x26f   :  { %v1313_v9 = vsel %vm130_vm0, %v1284_v52, 0.0 }
 0x270   :  { %v1263_v10 = vadd.f32 %v1262_v8, %v1261_v6  ;;  %v1314_v11 = vadd.f32 %v1313_v9, %v1312_v7 }
 0x272   :  { %v1264_v13 = vrot.slane %v1263_v10, 4  ;;  %v1316_v16 = vadd.f32 %v1315_v12, %v1314_v11 }
 0x274   :  { %v1265_v17 = vadd.f32 %v1264_v13, %v1263_v10  ;;  %v1317_v18 = vrot.slane %v1316_v16, 4 }
 0x276   :  { %v1266_v19 = vrot.slane %v1265_v17, 2  ;;  %v1318_v20 = vadd.f32 %v1317_v18, %v1316_v16 }
 0x278   :  { %v1267_v21 = vadd.f32 %v1266_v19, %v1265_v17  ;;  %v1319_v14 = vrot.slane %v1318_v20, 2 }
 0x27a   :  { %v1268_v22 = vrot.slane %v1267_v21, 1  ;;  %v1320_v53 = vadd.f32 %v1319_v14, %v1318_v20 }
 0x27c   :  { %v1321_v23 = vrot.slane %v1320_v53, 1  ;;  %v1269_v24 = vadd.f32 %v1268_v22, %v1267_v21 }
 0x27e   :  { %v1322_v25 = vadd.f32 %v1321_v23, %v1320_v53 }
 0x280   :  { %v1324_v26 = vsel %vm1323_vm11, %v1269_v24, %v1322_v25 }
 0x281   :  { %1325 = vst.msk [vmem:[%s2126_s6] sm:$0x3] %vm132_vm1, %v1324_v26 }

// kernel: down_forward.3
= control target key start
LH: loop header
LB: loop body
LE: loop exit
PB: predicated region body
PF: predicated region fallthrough
CT: control target
= control target key end

     0   :  { %vm1485_vm0 = vcmask 25600   ;;  %vm2638_vm1 = vcmask 31744   ;;  %v145_v0 = vlaneseq  ;;  %v4262_v1 = vmov 0.0   ;;  %s4264_s13 = smov 8   ;;  %s4265_s14 = smov 4   ;;  %s5817_s0 = inlined_call_operand.vmem [shape: f32[2,16,16,4], index: 0, kind: input, shape index: {}]   ;;  %s5818_s1 = inlined_call_operand.vmem [shape: f32[36,8], index: 1, kind: input, shape index: {}]   ;;  %s5819_s2 = inlined_call_operand.vmem [shape: f32[2,64,8], index: 2, kind: output, shape index: {0}]   ;;  %s5820_s3 = inlined_call_operand.vmem [shape: f32[1,2,8], index: 3, kind: output, shape index: {1}]  }
   0x1   :  { %2639 = vst.msk [vmem:[#allocation2] sm:$0xff] %vm2638_vm1, %v4262_v1  ;;  %2641 = vst.msk [vmem:[#allocation2 + $0x10] sm:$0xff] %vm2638_vm1, %v4262_v1  ;;  %v13_v2 = vld [vmem:[%s5817_s0] sm:$0xff]  ;;  %v14_v3 = vld [vmem:[%s5817_s0 + $0x8] sm:$0xff]  ;;  %v4263_v6 = vmov 1983009808  }
   0x2   :  { %2640 = vst.msk [vmem:[#allocation2 + $0x8] sm:$0x3] %vm1485_vm0, %v4262_v1  ;;  %2642 = vst.msk [vmem:[#allocation2 + $0x18] sm:$0x3] %vm1485_vm0, %v4262_v1  ;;  %v15_v4 = vld [vmem:[%s5817_s0 + $0x10] sm:$0xff]  ;;  %v16_v5 = vld [vmem:[%s5817_s0 + $0x18] sm:$0xff]  ;;  %v143_v7 = vunpack.c.l.s4 %v4263_v6  ;;  %v141_v14 = vcombine.high %v13_v2, %v13_v2  ;;  %v158_v16 = vcombine.high %v14_v3, %v14_v3 }
   0x3   :  { %2643 = vst.msk [vmem:[#allocation2 + $0x20] sm:$0xff] %vm2638_vm1, %v4262_v1  ;;  %2645 = vst.msk [vmem:[#allocation2 + $0x30] sm:$0xff] %vm2638_vm1, %v4262_v1  ;;  %v146_v8 = vshrl.u32 %v145_v0, 7  ;;  %v4347_v9 = vld [vmem:[%s5817_s0 + $0x20] sm:$0xff]  ;;  %v4352_v10 = vld [vmem:[%s5817_s0 + $0x28] sm:$0xff]  ;;  %v175_v17 = vcombine.high %v15_v4, %v15_v4  ;;  %v192_v21 = vcombine.high %v16_v5, %v16_v5  ;;  %vm2807_vm2 = vcmask 1041409  }
   0x4   :  { %2644 = vst.msk [vmem:[#allocation2 + $0x28] sm:$0x3] %vm1485_vm0, %v4262_v1  ;;  %2646 = vst.msk [vmem:[#allocation2 + $0x38] sm:$0x3] %vm1485_vm0, %v4262_v1  ;;  %v4357_v11 = vld [vmem:[%s5817_s0 + $0x30] sm:$0xff]  ;;  %v4362_v12 = vld [vmem:[%s5817_s0 + $0x38] sm:$0xff]  ;;  %v144_v15 = vunpack.c.0.s8 %v143_v7  ;;  %v209_v22 = vcombine.high %v4347_v9, %v4347_v9  ;;  %v226_v23 = vcombine.high %v4352_v10, %v4352_v10 }
   0x5   :  { %2647 = vst.msk [vmem:[#allocation2 + $0x40] sm:$0xff] %vm2638_vm1, %v4262_v1  ;;  %2649 = vst.msk [vmem:[#allocation2 + $0x50] sm:$0xff] %vm2638_vm1, %v4262_v1  ;;  %v4367_v13 = vld [vmem:[%s5817_s0 + $0x40] sm:$0xff]  ;;  %v4372_v18 = vld [vmem:[%s5817_s0 + $0x48] sm:$0xff]  ;;  %v243_v24 = vcombine.high %v4357_v11, %v4357_v11  ;;  %v260_v28 = vcombine.high %v4362_v12, %v4362_v12  ;;  %vm2809_vm3 = vcmask 1042434   ;;  %vm2811_vm4 = vcmask 1043459  }
   0x6   :  { %2648 = vst.msk [vmem:[#allocation2 + $0x48] sm:$0x3] %vm1485_vm0, %v4262_v1  ;;  %2650 = vst.msk [vmem:[#allocation2 + $0x58] sm:$0x3] %vm1485_vm0, %v4262_v1  ;;  %v4377_v19 = vld [vmem:[%s5817_s0 + $0x50] sm:$0xff]  ;;  %v4382_v20 = vld [vmem:[%s5817_s0 + $0x58] sm:$0xff]  ;;  %v4400_v27 = vsub.s32 %v144_v15, %v146_v8  ;;  %v277_v29 = vcombine.high %v4367_v13, %v4367_v13  ;;  %v294_v30 = vcombine.high %v4372_v18, %v4372_v18 }
   0x7   :  { %2651 = vst.msk [vmem:[#allocation2 + $0x60] sm:$0xff] %vm2638_vm1, %v4262_v1  ;;  %2653 = vst.msk [vmem:[#allocation2 + $0x70] sm:$0xff] %vm2638_vm1, %v4262_v1  ;;  %v4393_v25 = vld [vmem:[%s5817_s0 + $0x60] sm:$0xff]  ;;  %v4398_v26 = vld [vmem:[%s5817_s0 + $0x68] sm:$0xff]  ;;  %v311_v31 = vcombine.high %v4377_v19, %v4377_v19  ;;  %v328_v32 = vcombine.high %v4382_v20, %v4382_v20  ;;  %vm2813_vm5 = vcmask 1044484   ;;  %vm2815_vm6 = vcmask 1045509  }
   0x8   :  { %2652 = vst.msk [vmem:[#allocation2 + $0x68] sm:$0x3] %vm1485_vm0, %v4262_v1  ;;  %2654 = vst.msk [vmem:[#allocation2 + $0x78] sm:$0x3] %vm1485_vm0, %v4262_v1  ;;  %v345_v33 = vcombine.high %v4393_v25, %v4393_v25  ;;  %v362_v34 = vcombine.high %v4398_v26, %v4398_v26  ;;  %v148_v37 = vrot.slane %v13_v2, %v4400_v27  ;;  %vm2817_vm7 = vcmask 1046534   ;;  %s4266_s15 = smov 12  }
   0x9   :  { %2655 = vst.msk [vmem:[#allocation2 + $0x80] sm:$0xff] %vm2638_vm1, %v4262_v1  ;;  %2657 = vst.msk [vmem:[#allocation2 + $0x90] sm:$0xff] %vm2638_vm1, %v4262_v1  ;;  %v3088_v35 = vld [vmem:[#allocation2 + $0x2] sm:$0xff]  ;;  %v155_v38 = vrot.slane %v141_v14, %v4400_v27  ;;  %v165_v39 = vrot.slane %v14_v3, %v4400_v27  ;;  %v172_v40 = vrot.slane %v158_v16, %v4400_v27  ;;  %vm2819_vm8 = vcmask 1047559   ;;  %s4267_s16 = smov 16   ;;  %s4268_s21 = smov 20  }
   0xa   :  { %2656 = vst.msk [vmem:[#allocation2 + $0x88] sm:$0x3] %vm1485_vm0, %v4262_v1  ;;  %2658 = vst.msk [vmem:[#allocation2 + $0x98] sm:$0x3] %vm1485_vm0, %v4262_v1  ;;  %v2991_v36 = vld [vmem:[#allocation2 + $0x1] sm:$0xff]  ;;  %3120 = vrot.lane.b32.xlu1 %v3088_v35, %s4264_s13  ;;  %v182_v41 = vrot.slane %v15_v4, %v4400_v27  ;;  %v189_v42 = vrot.slane %v175_v17, %v4400_v27  ;;  %v199_v43 = vrot.slane %v16_v5, %v4400_v27  ;;  %s4269_s22 = smov 24  }
   0xb   :  { %2659 = vst.msk [vmem:[#allocation2 + $0xa0] sm:$0xff] %vm2638_vm1, %v4262_v1  ;;  %2661 = vst.msk [vmem:[#allocation2 + $0xb0] sm:$0xff] %vm2638_vm1, %v4262_v1  ;;  %3023 = vrot.lane.b32.xlu0 %v2991_v36, %s4265_s14  ;;  %v156_v44 = vcombine.high %v148_v37, %v148_v37  ;;  %v157_v45 = vcombine.high %v155_v38, %v155_v38  ;;  %v173_v46 = vcombine.high %v165_v39, %v165_v39  ;;  %s4270_s25 = smov 28   ;;  %s4271_s5 = smov 32   ;;  %vm3071_vm9 = vcmask 64544  }
   0xc   :  { %2660 = vst.msk [vmem:[#allocation2 + $0xa8] sm:$0x3] %vm1485_vm0, %v4262_v1  ;;  %2662 = vst.msk [vmem:[#allocation2 + $0xb8] sm:$0x3] %vm1485_vm0, %v4262_v1  ;;  %v174_v47 = vcombine.high %v172_v40, %v172_v40  ;;  %v190_v48 = vcombine.high %v182_v41, %v182_v41  ;;  %v191_v49 = vcombine.high %v189_v42, %v189_v42  ;;  %v1486_v52 = vsel %vm1485_vm0, %v148_v37, -inf }
   0xd   :  { %2663 = vst.msk [vmem:[#allocation2 + $0xc0] sm:$0xff] %vm2638_vm1, %v4262_v1  ;;  %2665 = vst.msk [vmem:[#allocation2 + $0xd0] sm:$0xff] %vm2638_vm1, %v4262_v1  ;;  %v206_v50 = vrot.slane %v192_v21, %v4400_v27  ;;  %v207_v51 = vcombine.high %v199_v43, %v199_v43  ;;  %v1487_v53 = vsel %vm1485_vm0, %v182_v41, -inf  ;;  %v1495_v54 = vsel %vm1485_vm0, %v156_v44, -inf }
   0xe   :  { %2664 = vst.msk [vmem:[#allocation2 + $0xc8] sm:$0x3] %vm1485_vm0, %v4262_v1  ;;  %2666 = vst.msk [vmem:[#allocation2 + $0xd8] sm:$0x3] %vm1485_vm0, %v4262_v1  ;;  %v1504_v55 = vsel %vm1485_vm0, %v155_v38, -inf  ;;  %v1488_v57 = vmax.f32 %v1486_v52, %v1487_v53  ;;  %v1496_v58 = vsel %vm1485_vm0, %v190_v48, -inf }
   0xf   :  { %2667 = vst.msk [vmem:[#allocation2 + $0xe0] sm:$0xff] %vm2638_vm1, %v4262_v1  ;;  %2669 = vst.msk [vmem:[#allocation2 + $0xf0] sm:$0xff] %vm2638_vm1, %v4262_v1  ;;  %v208_v56 = vcombine.high %v206_v50, %v206_v50  ;;  %v1505_v59 = vsel %vm1485_vm0, %v189_v42, -inf  ;;  %v1497_v60 = vmax.f32 %v1495_v54, %v1496_v58  ;;  %v1513_v62 = vsel %vm1485_vm0, %v157_v45, -inf }
  0x10   :  { %2668 = vst.msk [vmem:[#allocation2 + $0xe8] sm:$0x3] %vm1485_vm0, %v4262_v1  ;;  %2670 = vst.msk [vmem:[#allocation2 + $0xf8] sm:$0x3] %vm1485_vm0, %v4262_v1  ;;  %v1506_v61 = vmax.f32 %v1504_v55, %v1505_v59  ;;  %v1514_v63 = vsel %vm1485_vm0, %v191_v49, -inf  ;;  %v1489_v0 = vrot.slane %v1488_v57, 4 }
  0x11   :  { %2671 = vst.msk [vmem:[#allocation2 + $0x100] sm:$0xff] %vm2638_vm1, %v4262_v1  ;;  %2673 = vst.msk [vmem:[#allocation2 + $0x110] sm:$0xff] %vm2638_vm1, %v4262_v1  ;;  %v1522_v2 = vsel %vm1485_vm0, %v165_v39, -inf  ;;  %v1523_v3 = vsel %vm1485_vm0, %v199_v43, -inf  ;;  %v1498_v4 = vrot.slane %v1497_v60, 4  ;;  %v1531_v7 = vsel %vm1485_vm0, %v173_v46, -inf }
  0x12   :  { %2672 = vst.msk [vmem:[#allocation2 + $0x108] sm:$0x3] %vm1485_vm0, %v4262_v1  ;;  %2674 = vst.msk [vmem:[#allocation2 + $0x118] sm:$0x3] %vm1485_vm0, %v4262_v1  ;;  %v1507_v5 = vrot.slane %v1506_v61, 4  ;;  %v1524_v6 = vmax.f32 %v1522_v2, %v1523_v3  ;;  %v1490_v8 = vmax.f32 %v1488_v57, %v1489_v0  ;;  %v1532_v15 = vsel %vm1485_vm0, %v207_v51, -inf }
  0x13   :  { %2675 = vst.msk [vmem:[#allocation2 + $0x120] sm:$0xff] %vm2638_vm1, %v4262_v1  ;;  %2677 = vst.msk [vmem:[#allocation2 + $0x130] sm:$0xff] %vm2638_vm1, %v4262_v1  ;;  %v1540_v16 = vsel %vm1485_vm0, %v172_v40, -inf  ;;  %v1499_v17 = vmax.f32 %v1497_v60, %v1498_v4  ;;  %v1533_v36 = vmax.f32 %v1531_v7, %v1532_v15  ;;  %v1541_v39 = vsel %vm1485_vm0, %v206_v50, -inf }
  0x14   :  { %2676 = vst.msk [vmem:[#allocation2 + $0x128] sm:$0x3] %vm1485_vm0, %v4262_v1  ;;  %2678 = vst.msk [vmem:[#allocation2 + $0x138] sm:$0x3] %vm1485_vm0, %v4262_v1  ;;  %v1515_v1 = vmax.f32 %v1513_v62, %v1514_v63  ;;  %v1508_v21 = vmax.f32 %v1506_v61, %v1507_v5  ;;  %v1525_v35 = vrot.slane %v1524_v6, 4  ;;  %v1491_v37 = vrot.slane %v1490_v8, 2 }
  0x15   :  { %v1549_v41 = vsel %vm1485_vm0, %v174_v47, -inf  ;;  %v1500_v42 = vrot.slane %v1499_v17, 2  ;;  %v1534_v45 = vrot.slane %v1533_v36, 4  ;;  %v1542_v48 = vmax.f32 %v1540_v16, %v1541_v39 }
  0x16   :  { %v1516_v14 = vrot.slane %v1515_v1, 4  ;;  %v1509_v43 = vrot.slane %v1508_v21, 2  ;;  %v1526_v44 = vmax.f32 %v1524_v6, %v1525_v35  ;;  %v1492_v46 = vmax.f32 %v1490_v8, %v1491_v37 }
  0x17   :  { %v1550_v49 = vsel %vm1485_vm0, %v208_v56, -inf  ;;  %v1501_v51 = vmax.f32 %v1499_v17, %v1500_v42  ;;  %v1535_v54 = vmax.f32 %v1533_v36, %v1534_v45  ;;  %v1543_v57 = vrot.slane %v1542_v48, 4 }
  0x18   :  { %v1517_v38 = vmax.f32 %v1515_v1, %v1516_v14  ;;  %v1510_v52 = vmax.f32 %v1508_v21, %v1509_v43  ;;  %v1527_v53 = vrot.slane %v1526_v44, 2  ;;  %v1493_v55 = vrot.slane %v1492_v46, 1 }
  0x19   :  { %v1551_v47 = vmax.f32 %v1549_v41, %v1550_v49  ;;  %v1502_v58 = vrot.slane %v1501_v51, 1  ;;  %v1536_v61 = vrot.slane %v1535_v54, 2  ;;  %v1544_v0 = vmax.f32 %v1542_v48, %v1543_v57 }
  0x1a   :  { %v1518_v40 = vrot.slane %v1517_v38, 2  ;;  %v1511_v59 = vrot.slane %v1510_v52, 1  ;;  %v1528_v60 = vmax.f32 %v1526_v44, %v1527_v53  ;;  %v1494_v62 = vmax.f32 %v1492_v46, %v1493_v55 }
  0x1b   :  { %v1552_v1 = vrot.slane %v1551_v47, 4  ;;  %v1503_v2 = vmax.f32 %v1501_v51, %v1502_v58  ;;  %v1537_v4 = vmax.f32 %v1535_v54, %v1536_v61  ;;  %v1545_v6 = vrot.slane %v1544_v0, 2 }
  0x1c   :  { %v1519_v50 = vmax.f32 %v1517_v38, %v1518_v40  ;;  %v1512_v56 = vmax.f32 %v1510_v52, %v1511_v59  ;;  %v1529_v3 = vrot.slane %v1528_v60, 1  ;;  %v216_v8 = vrot.slane %v4347_v9, %v4400_v27 }
  0x1d   :  { %v1553_v7 = vmax.f32 %v1551_v47, %v1552_v1  ;;  %v1538_v15 = vrot.slane %v1537_v4, 1  ;;  %v2808_v16 = vsel %vm2807_vm2, %v1503_v2, %v1494_v62  ;;  %v223_v17 = vrot.slane %v209_v22, %v4400_v27 }
  0x1e   :  { %v1520_v63 = vrot.slane %v1519_v50, 1  ;;  %v1530_v14 = vmax.f32 %v1528_v60, %v1529_v3  ;;  %v1546_v21 = vmax.f32 %v1544_v0, %v1545_v6  ;;  %v2810_v36 = vsel %vm2809_vm3, %v1512_v56, %v2808_v16 }
  0x1f   :  { %v1554_v35 = vrot.slane %v1553_v7, 2  ;;  %v224_v37 = vcombine.high %v216_v8, %v216_v8  ;;  %v1539_v38 = vmax.f32 %v1537_v4, %v1538_v15  ;;  %v225_v41 = vcombine.high %v223_v17, %v223_v17 }
  0x20   :  { %v1521_v5 = vmax.f32 %v1519_v50, %v1520_v63  ;;  %v233_v42 = vrot.slane %v4352_v10, %v4400_v27  ;;  %v1547_v43 = vrot.slane %v1546_v21, 1  ;;  %v240_v9 = vrot.slane %v226_v23, %v4400_v27 }
  0x21   :  { %v1555_v44 = vmax.f32 %v1553_v7, %v1554_v35  ;;  %v250_v40 = vrot.slane %v4357_v11, %v4400_v27  ;;  %v257_v48 = vrot.slane %v243_v24, %v4400_v27  ;;  %v267_v53 = vrot.slane %v4362_v12, %v4400_v27 }
  0x22   :  { %v2812_v39 = vsel %vm2811_vm4, %v1521_v5, %v2810_v36  ;;  %v241_v46 = vcombine.high %v233_v42, %v233_v42  ;;  %v1548_v49 = vmax.f32 %v1546_v21, %v1547_v43  ;;  %v242_v52 = vcombine.high %v240_v9, %v240_v9 }
  0x23   :  { %v2814_v45 = vsel %vm2813_vm5, %v1530_v14, %v2812_v39  ;;  %v1556_v51 = vrot.slane %v1555_v44, 1  ;;  %v258_v54 = vcombine.high %v250_v40, %v250_v40  ;;  %v259_v10 = vcombine.high %v257_v48, %v257_v48 }
  0x24   :  { %v2816_v22 = vsel %vm2815_vm6, %v1539_v38, %v2814_v45  ;;  %v274_v23 = vrot.slane %v260_v28, %v4400_v27  ;;  %v1558_v55 = vsel %vm1485_vm0, %v216_v8, -inf  ;;  %v275_v11 = vcombine.high %v267_v53, %v267_v53 }
  0x25   :  { %v1557_v50 = vmax.f32 %v1555_v44, %v1556_v51  ;;  %v2818_v57 = vsel %vm2817_vm7, %v1548_v49, %v2816_v22  ;;  %v1559_v24 = vsel %vm1485_vm0, %v250_v40, -inf  ;;  %v1567_v59 = vsel %vm1485_vm0, %v224_v37, -inf }
  0x26   :  { %v276_v47 = vcombine.high %v274_v23, %v274_v23  ;;  %v1560_v58 = vmax.f32 %v1558_v55, %v1559_v24  ;;  %v1568_v60 = vsel %vm1485_vm0, %v258_v54, -inf  ;;  %v1576_v12 = vsel %vm1485_vm0, %v223_v17, -inf }
  0x27   :  { %v2820_v61 = vsel %vm2819_vm8, %v1557_v50, %v2818_v57  ;;  %v1569_v62 = vmax.f32 %v1567_v59, %v1568_v60  ;;  %v1577_v28 = vsel %vm1485_vm0, %v257_v48, -inf  ;;  %v1585_v1 = vsel %vm1485_vm0, %v225_v41, -inf }
  0x28   :  { %2943 = vst.msk [vmem:[#allocation2 + $0x11] sm:$0xff] %vm2638_vm1, %v2820_v61  ;;  %v1561_v63 = vrot.slane %v1560_v58, 4  ;;  %v1578_v0 = vmax.f32 %v1576_v12, %v1577_v28  ;;  %v1586_v2 = vsel %vm1485_vm0, %v259_v10, -inf  ;;  %v1594_v4 = vsel %vm1485_vm0, %v233_v42, -inf }
  0x29   :  { %v1570_v56 = vrot.slane %v1569_v62, 4  ;;  %v1587_v3 = vmax.f32 %v1585_v1, %v1586_v2  ;;  %v1595_v5 = vsel %vm1485_vm0, %v267_v53, -inf  ;;  %v1603_v14 = vsel %vm1485_vm0, %v241_v46, -inf }
  0x2a   :  { %v1562_v6 = vmax.f32 %v1560_v58, %v1561_v63  ;;  %v1579_v7 = vrot.slane %v1578_v0, 4  ;;  %v1596_v8 = vmax.f32 %v1594_v4, %v1595_v5  ;;  %v1604_v17 = vsel %vm1485_vm0, %v275_v11, -inf }
  0x2b   :  { %v1571_v15 = vmax.f32 %v1569_v62, %v1570_v56  ;;  %v1588_v16 = vrot.slane %v1587_v3, 4  ;;  %v1612_v21 = vsel %vm1485_vm0, %v240_v9, -inf  ;;  %v1605_v38 = vmax.f32 %v1603_v14, %v1604_v17 }
  0x2c   :  { %v1563_v35 = vrot.slane %v1562_v6, 2  ;;  %v1580_v36 = vmax.f32 %v1578_v0, %v1579_v7  ;;  %v1597_v37 = vrot.slane %v1596_v8, 4  ;;  %v1613_v42 = vsel %vm1485_vm0, %v274_v23, -inf }
  0x2d   :  { %v1572_v39 = vrot.slane %v1571_v15, 2  ;;  %v1589_v41 = vmax.f32 %v1587_v3, %v1588_v16  ;;  %v1621_v43 = vsel %vm1485_vm0, %v242_v52, -inf  ;;  %v1606_v46 = vrot.slane %v1605_v38, 4 }
  0x2e   :  { %v1564_v44 = vmax.f32 %v1562_v6, %v1563_v35  ;;  %v1581_v45 = vrot.slane %v1580_v36, 2  ;;  %v1598_v22 = vmax.f32 %v1596_v8, %v1597_v37  ;;  %v1614_v9 = vmax.f32 %v1612_v21, %v1613_v42 }
  0x2f   :  { %v4489_v40 = vld [vmem:[#allocation2 + $0x12] sm:$0xff]  ;;  %v1573_v49 = vmax.f32 %v1571_v15, %v1572_v39  ;;  %v1590_v51 = vrot.slane %v1589_v41, 2  ;;  %v1622_v53 = vsel %vm1485_vm0, %v276_v47, -inf  ;;  %v1607_v23 = vmax.f32 %v1605_v38, %v1606_v46 }
  0x30   :  { %v2992_v48 = vld [vmem:[#allocation2 + $0x11] sm:$0xff]  ;;  %3122 = vrot.lane.b32.xlu1 %v4489_v40, %s4264_s13  ;;  %v1565_v54 = vrot.slane %v1564_v44, 1  ;;  %v1582_v10 = vmax.f32 %v1580_v36, %v1581_v45  ;;  %v1599_v52 = vrot.slane %v1598_v22, 2  ;;  %v1615_v57 = vrot.slane %v1614_v9, 4 }
  0x31   :  { %3025 = vrot.lane.b32.xlu0 %v2992_v48, %s4265_s14  ;;  %v1574_v55 = vrot.slane %v1573_v49, 1  ;;  %v1591_v50 = vmax.f32 %v1589_v41, %v1590_v51  ;;  %v1623_v11 = vmax.f32 %v1621_v43, %v1622_v53  ;;  %v3185_v24 = vld [vmem:[#allocation2 + $0x10] sm:$0xff]  ;;  %v1608_v61 = vrot.slane %v1607_v23, 2 }
  0x32   :  { %v1566_v58 = vmax.f32 %v1564_v44, %v1565_v54  ;;  %v1583_v59 = vrot.slane %v1582_v10, 1  ;;  %v1600_v60 = vmax.f32 %v1598_v22, %v1599_v52  ;;  %v1616_v12 = vmax.f32 %v1614_v9, %v1615_v57 }
  0x33   :  { %v1575_v62 = vmax.f32 %v1573_v49, %v1574_v55  ;;  %v1592_v47 = vrot.slane %v1591_v50, 1  ;;  %v1624_v28 = vrot.slane %v1623_v11, 4  ;;  %v1609_v1 = vmax.f32 %v1607_v23, %v1608_v61 }
  0x34   :  { %v1584_v63 = vmax.f32 %v1582_v10, %v1583_v59  ;;  %v1601_v0 = vrot.slane %v1600_v60, 1  ;;  %v284_v2 = vrot.slane %v4367_v13, %v4400_v27  ;;  %v1617_v3 = vrot.slane %v1616_v12, 2 }
  0x35   :  { %3217 = vrot.lane.b32.xlu0 %v3185_v24, %s4266_s15  ;;  %v1593_v56 = vmax.f32 %v1591_v50, %v1592_v47  ;;  %v1625_v4 = vmax.f32 %v1623_v11, %v1624_v28  ;;  %v2821_v5 = vsel %vm2807_vm2, %v1575_v62, %v1566_v58  ;;  %v1610_v7 = vrot.slane %v1609_v1, 1 }
  0x36   :  { %v1602_v6 = vmax.f32 %v1600_v60, %v1601_v0  ;;  %v2822_v8 = vsel %vm2809_vm3, %v1584_v63, %v2821_v5  ;;  %v291_v14 = vrot.slane %v277_v29, %v4400_v27  ;;  %v1618_v15 = vmax.f32 %v1616_v12, %v1617_v3 }
  0x37   :  { %v1626_v16 = vrot.slane %v1625_v4, 2  ;;  %v2823_v17 = vsel %vm2811_vm4, %v1593_v56, %v2822_v8  ;;  %v292_v21 = vcombine.high %v284_v2, %v284_v2  ;;  %v1611_v35 = vmax.f32 %v1609_v1, %v1610_v7 }
  0x38   :  { %v2824_v36 = vsel %vm2813_vm5, %v1602_v6, %v2823_v17  ;;  %v293_v37 = vcombine.high %v291_v14, %v291_v14  ;;  %v301_v38 = vrot.slane %v4372_v18, %v4400_v27  ;;  %v1619_v39 = vrot.slane %v1618_v15, 1 }
  0x39   :  { %3314 = vrot.lane.b32.xlu0 %v2992_v48, %s4267_s16  ;;  %v1627_v41 = vmax.f32 %v1625_v4, %v1626_v16  ;;  %v308_v13 = vrot.slane %v294_v30, %v4400_v27  ;;  %v318_v29 = vrot.slane %v4377_v19, %v4400_v27  ;;  %v2825_v42 = vsel %vm2815_vm6, %v1611_v35, %v2824_v36 }
  0x3a   :  { %v309_v43 = vcombine.high %v301_v38, %v301_v38  ;;  %v325_v44 = vrot.slane %v311_v31, %v4400_v27  ;;  %v335_v45 = vrot.slane %v4382_v20, %v4400_v27  ;;  %v1620_v22 = vmax.f32 %v1618_v15, %v1619_v39 }
  0x3b   :  { %v1628_v46 = vrot.slane %v1627_v41, 1  ;;  %v310_v48 = vcombine.high %v308_v13, %v308_v13  ;;  %v326_v49 = vcombine.high %v318_v29, %v318_v29  ;;  %v342_v30 = vrot.slane %v328_v32, %v4400_v27 }
  0x3c   :  { %v327_v18 = vcombine.high %v325_v44, %v325_v44  ;;  %v343_v51 = vcombine.high %v335_v45, %v335_v45  ;;  %v1630_v9 = vsel %vm1485_vm0, %v284_v2, -inf  ;;  %v2826_v19 = vsel %vm2817_vm7, %v1620_v22, %v2825_v42 }
  0x3d   :  { %v1629_v53 = vmax.f32 %v1627_v41, %v1628_v46  ;;  %v1631_v31 = vsel %vm1485_vm0, %v318_v29, -inf  ;;  %v1639_v54 = vsel %vm1485_vm0, %v292_v21, -inf  ;;  %v344_v10 = vcombine.high %v342_v30, %v342_v30 }
  0x3e   :  { %v1632_v52 = vmax.f32 %v1630_v9, %v1631_v31  ;;  %v1640_v23 = vsel %vm1485_vm0, %v326_v49, -inf  ;;  %v1648_v55 = vsel %vm1485_vm0, %v291_v14, -inf  ;;  %v1649_v32 = vsel %vm1485_vm0, %v325_v44, -inf }
  0x3f   :  { %v2827_v50 = vsel %vm2819_vm8, %v1629_v53, %v2826_v19  ;;  %v1641_v20 = vmax.f32 %v1639_v54, %v1640_v23  ;;  %v1657_v57 = vsel %vm1485_vm0, %v293_v37, -inf  ;;  %v1650_v24 = vmax.f32 %v1648_v55, %v1649_v32 }
  0x40   :  { %2944 = vst.msk [vmem:[#allocation2 + $0x21] sm:$0xff] %vm2638_vm1, %v2827_v50  ;;  %v1633_v11 = vrot.slane %v1632_v52, 4  ;;  %v1658_v58 = vsel %vm1485_vm0, %v327_v18, -inf  ;;  %v1666_v59 = vsel %vm1485_vm0, %v301_v38, -inf  ;;  %v1667_v62 = vsel %vm1485_vm0, %v335_v45, -inf }
  0x41   :  { %v1642_v60 = vrot.slane %v1641_v20, 4  ;;  %v1659_v61 = vmax.f32 %v1657_v57, %v1658_v58  ;;  %v1675_v47 = vsel %vm1485_vm0, %v309_v43, -inf  ;;  %v1651_v28 = vrot.slane %v1650_v24, 4 }
  0x42   :  { %v1634_v12 = vmax.f32 %v1632_v52, %v1633_v11  ;;  %v1668_v63 = vmax.f32 %v1666_v59, %v1667_v62  ;;  %v1676_v0 = vsel %vm1485_vm0, %v343_v51, -inf  ;;  %v1684_v3 = vsel %vm1485_vm0, %v308_v13, -inf  ;;  %v27_v59 = vld [vmem:[%s5817_s0 + $0x70] sm:$0xff] }
  0x43   :  { %v1643_v1 = vmax.f32 %v1641_v20, %v1642_v60  ;;  %v1660_v2 = vrot.slane %v1659_v61, 4  ;;  %v1677_v56 = vmax.f32 %v1675_v47, %v1676_v0  ;;  %v1652_v5 = vmax.f32 %v1650_v24, %v1651_v28 }
  0x44   :  { %v1635_v4 = vrot.slane %v1634_v12, 2  ;;  %v1669_v6 = vrot.slane %v1668_v63, 4  ;;  %v1685_v7 = vsel %vm1485_vm0, %v342_v30, -inf  ;;  %v1693_v36 = vsel %vm1485_vm0, %v310_v48, -inf }
  0x45   :  { %v1644_v8 = vrot.slane %v1643_v1, 2  ;;  %v1661_v14 = vmax.f32 %v1659_v61, %v1660_v2  ;;  %v1678_v15 = vrot.slane %v1677_v56, 4  ;;  %v1686_v16 = vmax.f32 %v1684_v3, %v1685_v7 }
  0x46   :  { %v1636_v17 = vmax.f32 %v1634_v12, %v1635_v4  ;;  %v1653_v21 = vrot.slane %v1652_v5, 2  ;;  %v1670_v35 = vmax.f32 %v1668_v63, %v1669_v6  ;;  %v1694_v45 = vsel %vm1485_vm0, %v344_v10, -inf  ;;  %v28_v12 = vld [vmem:[%s5817_s0 + $0x78] sm:$0xff] }
  0x47   :  { %v4544_v37 = vld [vmem:[#allocation2 + $0x20] sm:$0xff]  ;;  %v1645_v39 = vmax.f32 %v1643_v1, %v1644_v8  ;;  %v1662_v41 = vrot.slane %v1661_v14, 2  ;;  %v1679_v13 = vmax.f32 %v1677_v56, %v1678_v15  ;;  %v1687_v29 = vrot.slane %v1686_v16, 4 }
  0x48   :  { %v4546_v38 = vld [vmem:[#allocation2 + $0x21] sm:$0xff]  ;;  %3219 = vrot.lane.b32.xlu1 %v4544_v37, %s4266_s15  ;;  %v1637_v42 = vrot.slane %v1636_v17, 1  ;;  %v1654_v43 = vmax.f32 %v1652_v5, %v1653_v21  ;;  %v1671_v44 = vrot.slane %v1670_v35, 2  ;;  %v1695_v9 = vmax.f32 %v1693_v36, %v1694_v45 }
  0x49   :  { %3316 = vrot.lane.b32.xlu0 %v4546_v38, %s4267_s16  ;;  %v1646_v22 = vrot.slane %v1645_v39, 1  ;;  %v1663_v46 = vmax.f32 %v1661_v14, %v1662_v41  ;;  %v1680_v48 = vrot.slane %v1679_v13, 2  ;;  %v1688_v49 = vmax.f32 %v1686_v16, %v1687_v29 }
  0x4a   :  { %v1638_v18 = vmax.f32 %v1636_v17, %v1637_v42  ;;  %v1655_v30 = vrot.slane %v1654_v43, 1  ;;  %v1672_v51 = vmax.f32 %v1670_v35, %v1671_v44  ;;  %v1696_v55 = vrot.slane %v1695_v9, 4 }
  0x4b   :  { %v1647_v53 = vmax.f32 %v1645_v39, %v1646_v22  ;;  %v1664_v19 = vrot.slane %v1663_v46, 1  ;;  %v1681_v31 = vmax.f32 %v1679_v13, %v1680_v48  ;;  %v1689_v54 = vrot.slane %v1688_v49, 2 }
  0x4c   :  { %3027 = vrot.lane.b32.xlu1 %v4546_v38, %s4265_s14  ;;  %v1656_v52 = vmax.f32 %v1654_v43, %v1655_v30  ;;  %v1673_v23 = vrot.slane %v1672_v51, 1  ;;  %v352_v10 = vrot.slane %v4393_v25, %v4400_v27  ;;  %v1697_v24 = vmax.f32 %v1695_v9, %v1696_v55 }
  0x4d   :  { %v1665_v50 = vmax.f32 %v1663_v46, %v1664_v19  ;;  %v1682_v20 = vrot.slane %v1681_v31, 1  ;;  %v1690_v32 = vmax.f32 %v1688_v49, %v1689_v54  ;;  %v2828_v57 = vsel %vm2807_vm2, %v1647_v53, %v1638_v18 }
  0x4e   :  { %v1674_v11 = vmax.f32 %v1672_v51, %v1673_v23  ;;  %v2829_v58 = vsel %vm2809_vm3, %v1656_v52, %v2828_v57  ;;  %v359_v60 = vrot.slane %v345_v33, %v4400_v27  ;;  %v360_v28 = vcombine.high %v352_v10, %v352_v10  ;;  %v4575_v33 = vld [vmem:[#allocation2 + $0x22] sm:$0xff] }
  0x4f   :  { %v1683_v61 = vmax.f32 %v1681_v31, %v1682_v20  ;;  %v1691_v62 = vrot.slane %v1690_v32, 1  ;;  %v2830_v47 = vsel %vm2811_vm4, %v1665_v50, %v2829_v58  ;;  %v1698_v63 = vrot.slane %v1697_v24, 2 }
  0x50   :  { %3411 = vrot.lane.b32.xlu1 %v4489_v40, %s4268_s21  ;;  %v2831_v0 = vsel %vm2813_vm5, %v1674_v11, %v2830_v47  ;;  %v361_v1 = vcombine.high %v359_v60, %v359_v60  ;;  %v369_v25 = vrot.slane %v4398_v26, %v4400_v27  ;;  %v376_v3 = vrot.slane %v362_v34, %v4400_v27 }
  0x51   :  { %v1692_v2 = vmax.f32 %v1690_v32, %v1691_v62  ;;  %v2832_v56 = vsel %vm2815_vm6, %v1683_v61, %v2831_v0  ;;  %v379_v4 = vcombine.high %v27_v59, %v27_v59  ;;  %v1699_v5 = vmax.f32 %v1697_v24, %v1698_v63 }
  0x52   :  { %v377_v40 = vcombine.high %v369_v25, %v369_v25  ;;  %v386_v6 = vrot.slane %v27_v59, %v4400_v27  ;;  %v396_v7 = vcombine.high %v28_v12, %v28_v12  ;;  %v378_v14 = vcombine.high %v376_v3, %v376_v3 }
  0x53   :  { %v2833_v8 = vsel %vm2817_vm7, %v1692_v2, %v2832_v56  ;;  %v393_v15 = vrot.slane %v379_v4, %v4400_v27  ;;  %v403_v16 = vrot.slane %v28_v12, %v4400_v27  ;;  %v1700_v17 = vrot.slane %v1699_v5, 1 }
  0x54   :  { %3124 = vrot.lane.b32.xlu1 %v4575_v33, %s4264_s13  ;;  %v394_v21 = vcombine.high %v386_v6, %v386_v6  ;;  %v410_v26 = vrot.slane %v396_v7, %v4400_v27  ;;  %v1702_v34 = vsel %vm1485_vm0, %v352_v10, -inf  ;;  %v1703_v39 = vsel %vm1485_vm0, %v386_v6, -inf }
  0x55   :  { %v395_v35 = vcombine.high %v393_v15, %v393_v15  ;;  %v411_v36 = vcombine.high %v403_v16, %v403_v16  ;;  %v1711_v41 = vsel %vm1485_vm0, %v360_v28, -inf  ;;  %v1701_v13 = vmax.f32 %v1699_v5, %v1700_v17 }
  0x56   :  { %v412_v29 = vcombine.high %v410_v26, %v410_v26  ;;  %v1704_v42 = vmax.f32 %v1702_v34, %v1703_v39  ;;  %v1712_v43 = vsel %vm1485_vm0, %v394_v21, -inf  ;;  %v1720_v45 = vsel %vm1485_vm0, %v359_v60, -inf }
  0x57   :  { %v1713_v44 = vmax.f32 %v1711_v41, %v1712_v43  ;;  %v1721_v22 = vsel %vm1485_vm0, %v393_v15, -inf  ;;  %v1729_v46 = vsel %vm1485_vm0, %v361_v1, -inf  ;;  %v2834_v48 = vsel %vm2819_vm8, %v1701_v13, %v2833_v8 }
  0x58   :  { %3509 = vrot.lane.b32.xlu1 %v4544_v37, %s4269_s22  ;;  %v1705_v49 = vrot.slane %v1704_v42, 4  ;;  %v1722_v18 = vmax.f32 %v1720_v45, %v1721_v22  ;;  %v1730_v30 = vsel %vm1485_vm0, %v395_v35, -inf  ;;  %2945 = vst.msk [vmem:[#allocation2 + $0x31] sm:$0xff] %vm2638_vm1, %v2834_v48  ;;  %v1738_v53 = vsel %vm1485_vm0, %v369_v25, -inf  ;;  %v30_v22 = vld [vmem:[%s5817_s0 + $0x88] sm:$0xff] }
  0x59   :  { %v1714_v51 = vrot.slane %v1713_v44, 4  ;;  %v1731_v9 = vmax.f32 %v1729_v46, %v1730_v30  ;;  %v1739_v19 = vsel %vm1485_vm0, %v403_v16, -inf  ;;  %v1747_v23 = vsel %vm1485_vm0, %v377_v40, -inf }
  0x5a   :  { %v1706_v31 = vmax.f32 %v1704_v42, %v1705_v49  ;;  %v1723_v54 = vrot.slane %v1722_v18, 4  ;;  %v1740_v52 = vmax.f32 %v1738_v53, %v1739_v19  ;;  %v1748_v37 = vsel %vm1485_vm0, %v411_v36, -inf  ;;  %v31_v19 = vld [vmem:[%s5817_s0 + $0x90] sm:$0xff] }
  0x5b   :  { %v1715_v55 = vmax.f32 %v1713_v44, %v1714_v51  ;;  %v1732_v10 = vrot.slane %v1731_v9, 4  ;;  %v1756_v50 = vsel %vm1485_vm0, %v376_v3, -inf  ;;  %v1749_v11 = vmax.f32 %v1747_v23, %v1748_v37  ;;  %v2959_v51 = vld [vmem:[#allocation2] sm:$0xff]  ;;  %v32_v23 = vld [vmem:[%s5817_s0 + $0x98] sm:$0xff] }
  0x5c   :  { %v1707_v20 = vrot.slane %v1706_v31, 2  ;;  %v1724_v32 = vmax.f32 %v1722_v18, %v1723_v54  ;;  %v1741_v57 = vrot.slane %v1740_v52, 4  ;;  %v1757_v59 = vsel %vm1485_vm0, %v410_v26, -inf  ;;  %2975 = vst.msk [vmem:[#allocation3] sm:$0xff] %vm2638_vm1, %v2959_v51 }
  0x5d   :  { %v1716_v24 = vrot.slane %v1715_v55, 2  ;;  %v1733_v58 = vmax.f32 %v1731_v9, %v1732_v10  ;;  %v1765_v60 = vsel %vm1485_vm0, %v378_v14, -inf  ;;  %v1750_v12 = vrot.slane %v1749_v11, 4  ;;  %v29_v14 = vld [vmem:[%s5817_s0 + $0x80] sm:$0xff] }
  0x5e   :  { %v1708_v61 = vmax.f32 %v1706_v31, %v1707_v20  ;;  %v1725_v62 = vrot.slane %v1724_v32, 2  ;;  %v1742_v47 = vmax.f32 %v1740_v52, %v1741_v57  ;;  %v1758_v0 = vmax.f32 %v1756_v50, %v1757_v59 }
  0x5f   :  { %v1717_v28 = vmax.f32 %v1715_v55, %v1716_v24  ;;  %v1734_v63 = vrot.slane %v1733_v58, 2  ;;  %v1766_v1 = vsel %vm1485_vm0, %v412_v29, -inf  ;;  %v4609_v25 = vld [vmem:[#allocation2 + $0x31] sm:$0xff]  ;;  %v1751_v5 = vmax.f32 %v1749_v11, %v1750_v12 }
  0x60   :  { %v4611_v2 = vld [vmem:[#allocation2 + $0x30] sm:$0xff]  ;;  %v1709_v56 = vrot.slane %v1708_v61, 1  ;;  %v1726_v3 = vmax.f32 %v1724_v32, %v1725_v62  ;;  %v1743_v4 = vrot.slane %v1742_v47, 2  ;;  %3029 = vrot.lane.b32.xlu0 %v4609_v25, %s4265_s14  ;;  %v1759_v7 = vrot.slane %v1758_v0, 4 }
  0x61   :  { %3221 = vrot.lane.b32.xlu1 %v4611_v2, %s4266_s15  ;;  %v1718_v40 = vrot.slane %v1717_v28, 1  ;;  %v1735_v6 = vmax.f32 %v1733_v58, %v1734_v63  ;;  %v1767_v8 = vmax.f32 %v1765_v60, %v1766_v1  ;;  %v1752_v21 = vrot.slane %v1751_v5, 2  ;;  %v4628_v46 = vld [vmem:[#allocation2 + $0x32] sm:$0xff] }
  0x62   :  { %v1710_v15 = vmax.f32 %v1708_v61, %v1709_v56  ;;  %v1727_v16 = vrot.slane %v1726_v3, 1  ;;  %v1744_v17 = vmax.f32 %v1742_v47, %v1743_v4  ;;  %v1760_v35 = vmax.f32 %v1758_v0, %v1759_v7 }
  0x63   :  { %v1719_v26 = vmax.f32 %v1717_v28, %v1718_v40  ;;  %v1736_v34 = vrot.slane %v1735_v6, 1  ;;  %v1768_v36 = vrot.slane %v1767_v8, 4  ;;  %v1753_v13 = vmax.f32 %v1751_v5, %v1752_v21 }
  0x64   :  { %v1728_v39 = vmax.f32 %v1726_v3, %v1727_v16  ;;  %v1745_v41 = vrot.slane %v1744_v17, 1  ;;  %v413_v29 = vcombine.high %v29_v14, %v29_v14  ;;  %3413 = vrot.lane.b32.xlu0 %v4575_v33, %s4268_s21  ;;  %v1761_v43 = vrot.slane %v1760_v35, 2 }
  0x65   :  { %3606 = vrot.lane.b32.xlu1 %v4546_v38, %s4270_s25  ;;  %v1737_v42 = vmax.f32 %v1735_v6, %v1736_v34  ;;  %v1769_v44 = vmax.f32 %v1767_v8, %v1768_v36  ;;  %v2835_v45 = vsel %vm2807_vm2, %v1719_v26, %v1710_v15  ;;  %v1754_v49 = vrot.slane %v1753_v13, 1 }
  0x66   :  { %v1746_v48 = vmax.f32 %v1744_v17, %v1745_v41  ;;  %v2836_v18 = vsel %vm2809_vm3, %v1728_v39, %v2835_v45  ;;  %v420_v30 = vrot.slane %v29_v14, %v4400_v27  ;;  %v1762_v9 = vmax.f32 %v1760_v35, %v1761_v43 }
  0x67   :  { %v1770_v38 = vrot.slane %v1769_v44, 2  ;;  %v2837_v53 = vsel %vm2811_vm4, %v1737_v42, %v2836_v18  ;;  %v427_v31 = vrot.slane %v413_v29, %v4400_v27  ;;  %v1755_v54 = vmax.f32 %v1753_v13, %v1754_v49  ;;  %v2960_v18 = vld [vmem:[#allocation2 + $0x10] sm:$0xff] }
  0x68   :  { %v2838_v52 = vsel %vm2813_vm5, %v1746_v48, %v2837_v53  ;;  %v428_v55 = vcombine.high %v420_v30, %v420_v30  ;;  %v430_v10 = vcombine.high %v30_v22, %v30_v22  ;;  %3126 = vrot.lane.b32.xlu0 %v4628_v46, %s4264_s13  ;;  %v1763_v37 = vrot.slane %v1762_v9, 1  ;;  %2976 = vst.msk [vmem:[#allocation3 + $0x8] sm:$0xff] %vm2638_vm1, %v2960_v18 }
  0x69   :  { %3318 = vrot.lane.b32.xlu1 %v4609_v25, %s4267_s16  ;;  %v1771_v50 = vmax.f32 %v1769_v44, %v1770_v38  ;;  %v429_v20 = vcombine.high %v427_v31, %v427_v31  ;;  %v437_v32 = vrot.slane %v30_v22, %v4400_v27  ;;  %v2839_v57 = vsel %vm2815_vm6, %v1755_v54, %v2838_v52 }
  0x6a   :  { %v4649_v11 = vrot.slane %v430_v10, %v4400_v27  ;;  %v447_v24 = vcombine.high %v31_v19, %v31_v19  ;;  %v454_v58 = vrot.slane %v31_v19, %v4400_v27  ;;  %v1764_v59 = vmax.f32 %v1762_v9, %v1763_v37 }
  0x6b   :  { %v1772_v60 = vrot.slane %v1771_v50, 1  ;;  %v445_v61 = vcombine.high %v437_v32, %v437_v32  ;;  %v464_v62 = vcombine.high %v32_v23, %v32_v23  ;;  %v471_v63 = vrot.slane %v32_v23, %v4400_v27 }
  0x6c   :  { %v446_v47 = vcombine.high %v4649_v11, %v4649_v11  ;;  %v461_v12 = vrot.slane %v447_v24, %v4400_v27  ;;  %v462_v28 = vcombine.high %v454_v58, %v454_v58  ;;  %3511 = vrot.lane.b32.xlu0 %v4611_v2, %s4269_s22  ;;  %v2840_v1 = vsel %vm2817_vm7, %v1764_v59, %v2839_v57 }
  0x6d   :  { %v1773_v0 = vmax.f32 %v1771_v50, %v1772_v60  ;;  %3703 = vrot.lane.b32.xlu1 %v4575_v33, %s4271_s5  ;;  %v478_v56 = vrot.slane %v464_v62, %v4400_v27  ;;  %v1774_v3 = vsel %vm1485_vm0, %v420_v30, -inf  ;;  %v479_v5 = vcombine.high %v471_v63, %v471_v63 }
  0x6e   :  { %v463_v4 = vcombine.high %v461_v12, %v461_v12  ;;  %v1775_v40 = vsel %vm1485_vm0, %v454_v58, -inf  ;;  %v1783_v6 = vsel %vm1485_vm0, %v428_v55, -inf  ;;  %v1784_v14 = vsel %vm1485_vm0, %v462_v28, -inf }
  0x6f   :  { %v2841_v7 = vsel %vm2819_vm8, %v1773_v0, %v2840_v1  ;;  %v480_v2 = vcombine.high %v478_v56, %v478_v56  ;;  %v1776_v8 = vmax.f32 %v1774_v3, %v1775_v40  ;;  %v1785_v15 = vmax.f32 %v1783_v6, %v1784_v14  ;;  %v2961_v6 = vld [vmem:[#allocation2 + $0x20] sm:$0xff] }
  0x70   :  { %2946 = vst.msk [vmem:[#allocation2 + $0x41] sm:$0xff] %vm2638_vm1, %v2841_v7  ;;  %v1792_v33 = vsel %vm1485_vm0, %v427_v31, -inf  ;;  %v1793_v16 = vsel %vm1485_vm0, %v461_v12, -inf  ;;  %v1801_v17 = vsel %vm1485_vm0, %v429_v20, -inf  ;;  %v1802_v34 = vsel %vm1485_vm0, %v463_v4, -inf  ;;  %2977 = vst.msk [vmem:[#allocation3 + $0x10] sm:$0xff] %vm2638_vm1, %v2961_v6 }
  0x71   :  { %v1777_v21 = vrot.slane %v1776_v8, 4  ;;  %v1794_v26 = vmax.f32 %v1792_v33, %v1793_v16  ;;  %v1810_v35 = vsel %vm1485_vm0, %v437_v32, -inf  ;;  %v1786_v36 = vrot.slane %v1785_v15, 4 }
  0x72   :  { %v1803_v39 = vmax.f32 %v1801_v17, %v1802_v34  ;;  %v1811_v41 = vsel %vm1485_vm0, %v471_v63, -inf  ;;  %v1819_v13 = vsel %vm1485_vm0, %v445_v61, -inf  ;;  %v1820_v44 = vsel %vm1485_vm0, %v479_v5, -inf }
  0x73   :  { %v1778_v29 = vmax.f32 %v1776_v8, %v1777_v21  ;;  %v1795_v42 = vrot.slane %v1794_v26, 4  ;;  %v1812_v43 = vmax.f32 %v1810_v35, %v1811_v41  ;;  %v1787_v45 = vmax.f32 %v1785_v15, %v1786_v36  ;;  %v34_v21 = vld [vmem:[%s5817_s0 + $0xa8] sm:$0xff] }
  0x74   :  { %v1804_v22 = vrot.slane %v1803_v39, 4  ;;  %v1821_v48 = vmax.f32 %v1819_v13, %v1820_v44  ;;  %v1828_v49 = vsel %vm1485_vm0, %v4649_v11, -inf  ;;  %v1829_v38 = vsel %vm1485_vm0, %v478_v56, -inf }
  0x75   :  { %v1779_v30 = vrot.slane %v1778_v29, 2  ;;  %v1796_v51 = vmax.f32 %v1794_v26, %v1795_v42  ;;  %v1813_v9 = vrot.slane %v1812_v43, 4  ;;  %v1788_v53 = vrot.slane %v1787_v45, 2 }
  0x76   :  { %v1805_v19 = vmax.f32 %v1803_v39, %v1804_v22  ;;  %v1822_v31 = vrot.slane %v1821_v48, 4  ;;  %v1830_v54 = vmax.f32 %v1828_v49, %v1829_v38  ;;  %v1837_v50 = vsel %vm1485_vm0, %v446_v47, -inf  ;;  %v33_v47 = vld [vmem:[%s5817_s0 + $0xa0] sm:$0xff] }
  0x77   :  { %v4680_v52 = vld [vmem:[#allocation2 + $0x40] sm:$0xff]  ;;  %v1780_v55 = vmax.f32 %v1778_v29, %v1779_v30  ;;  %v1797_v10 = vrot.slane %v1796_v51, 2  ;;  %v1814_v37 = vmax.f32 %v1812_v43, %v1813_v9  ;;  %v1789_v20 = vmax.f32 %v1787_v45, %v1788_v53  ;;  %v35_v29 = vld [vmem:[%s5817_s0 + $0xb0] sm:$0xff]  ;;  %v36_v45 = vld [vmem:[%s5817_s0 + $0xb8] sm:$0xff] }
  0x78   :  { %v4682_v23 = vld [vmem:[#allocation2 + $0x41] sm:$0xff]  ;;  %3223 = vrot.lane.b32.xlu0 %v4680_v52, %s4266_s15  ;;  %v1806_v32 = vrot.slane %v1805_v19, 2  ;;  %v1823_v57 = vmax.f32 %v1821_v48, %v1822_v31  ;;  %v1831_v11 = vrot.slane %v1830_v54, 4  ;;  %v1838_v60 = vsel %vm1485_vm0, %v480_v2, -inf }
  0x79   :  { %3320 = vrot.lane.b32.xlu1 %v4682_v23, %s4267_s16  ;;  %v1781_v24 = vrot.slane %v1780_v55, 1  ;;  %v1798_v58 = vmax.f32 %v1796_v51, %v1797_v10  ;;  %v1815_v59 = vrot.slane %v1814_v37, 2  ;;  %v1790_v61 = vrot.slane %v1789_v20, 1  ;;  %v4697_v7 = vld [vmem:[#allocation2 + $0x42] sm:$0xff] }
  0x7a   :  { %v1807_v62 = vmax.f32 %v1805_v19, %v1806_v32  ;;  %v1824_v12 = vrot.slane %v1823_v57, 2  ;;  %v1832_v28 = vmax.f32 %v1830_v54, %v1831_v11  ;;  %v1839_v56 = vmax.f32 %v1837_v50, %v1838_v60 }
  0x7b   :  { %v1782_v63 = vmax.f32 %v1780_v55, %v1781_v24  ;;  %v1799_v0 = vrot.slane %v1798_v58, 1  ;;  %v1816_v1 = vmax.f32 %v1814_v37, %v1815_v59  ;;  %v1791_v3 = vmax.f32 %v1789_v20, %v1790_v61 }
  0x7c   :  { %3608 = vrot.lane.b32.xlu0 %v4609_v25, %s4270_s25  ;;  %v1808_v4 = vrot.slane %v1807_v62, 1  ;;  %v1825_v5 = vmax.f32 %v1823_v57, %v1824_v12  ;;  %v1833_v40 = vrot.slane %v1832_v28, 2  ;;  %v1840_v14 = vrot.slane %v1839_v56, 4 }
  0x7d   :  { %3705 = vrot.lane.b32.xlu1 %v4628_v46, %s4271_s5  ;;  %v1800_v2 = vmax.f32 %v1798_v58, %v1799_v0  ;;  %v1817_v8 = vrot.slane %v1816_v1, 1  ;;  %v481_v15 = vcombine.high %v33_v47, %v33_v47  ;;  %v2842_v25 = vsel %vm2807_vm2, %v1791_v3, %v1782_v63 }
  0x7e   :  { %v1809_v33 = vmax.f32 %v1807_v62, %v1808_v4  ;;  %v1826_v16 = vrot.slane %v1825_v5, 1  ;;  %v1834_v17 = vmax.f32 %v1832_v28, %v1833_v40  ;;  %v1841_v34 = vmax.f32 %v1839_v56, %v1840_v14 }
  0x7f   :  { %v1818_v26 = vmax.f32 %v1816_v1, %v1817_v8  ;;  %v2843_v35 = vsel %vm2809_vm3, %v1800_v2, %v2842_v25  ;;  %v488_v36 = vrot.slane %v33_v47, %v4400_v27  ;;  %v495_v42 = vrot.slane %v481_v15, %v4400_v27 }
  0x80   :  { %3031 = vrot.lane.b32.xlu0 %v4682_v23, %s4265_s14  ;;  %v1827_v39 = vmax.f32 %v1825_v5, %v1826_v16  ;;  %v1835_v41 = vrot.slane %v1834_v17, 1  ;;  %v2844_v13 = vsel %vm2811_vm4, %v1809_v33, %v2843_v35  ;;  %v1842_v43 = vrot.slane %v1841_v34, 2 }
  0x81   :  { %3128 = vrot.lane.b32.xlu1 %v4697_v7, %s4264_s13  ;;  %v2845_v44 = vsel %vm2813_vm5, %v1818_v26, %v2844_v13  ;;  %v496_v22 = vcombine.high %v488_v36, %v488_v36  ;;  %v498_v48 = vcombine.high %v34_v21, %v34_v21  ;;  %v497_v30 = vcombine.high %v495_v42, %v495_v42 }
  0x82   :  { %v1836_v49 = vmax.f32 %v1834_v17, %v1835_v41  ;;  %v2846_v18 = vsel %vm2815_vm6, %v1827_v39, %v2845_v44  ;;  %v505_v51 = vrot.slane %v34_v21, %v4400_v27  ;;  %v1843_v9 = vmax.f32 %v1841_v34, %v1842_v43  ;;  %v2962_v43 = vld [vmem:[#allocation2 + $0x30] sm:$0xff] }
  0x83   :  { %v512_v38 = vrot.slane %v498_v48, %v4400_v27  ;;  %v515_v53 = vcombine.high %v35_v29, %v35_v29  ;;  %v522_v19 = vrot.slane %v35_v29, %v4400_v27  ;;  %v532_v55 = vcombine.high %v36_v45, %v36_v45  ;;  %2978 = vst.msk [vmem:[#allocation3 + $0x18] sm:$0xff] %vm2638_vm1, %v2962_v43 }
  0x84   :  { %3415 = vrot.lane.b32.xlu0 %v4628_v46, %s4268_s21  ;;  %v2847_v31 = vsel %vm2817_vm7, %v1836_v49, %v2846_v18  ;;  %v513_v54 = vcombine.high %v505_v51, %v505_v51  ;;  %v1846_v10 = vsel %vm1485_vm0, %v488_v36, -inf  ;;  %v1844_v37 = vrot.slane %v1843_v9, 1 }
  0x85   :  { %3513 = vrot.lane.b32.xlu1 %v4680_v52, %s4269_s22  ;;  %v514_v50 = vcombine.high %v512_v38, %v512_v38  ;;  %v529_v20 = vrot.slane %v515_v53, %v4400_v27  ;;  %v530_v32 = vcombine.high %v522_v19, %v522_v19  ;;  %v539_v57 = vrot.slane %v36_v45, %v4400_v27 }
  0x86   :  { %v546_v11 = vrot.slane %v532_v55, %v4400_v27  ;;  %v1847_v46 = vsel %vm1485_vm0, %v522_v19, -inf  ;;  %v1855_v24 = vsel %vm1485_vm0, %v496_v22, -inf  ;;  %v1845_v58 = vmax.f32 %v1843_v9, %v1844_v37  ;;  %v37_v55 = vld [vmem:[%s5817_s0 + $0xc0] sm:$0xff] }
  0x87   :  { %v531_v59 = vcombine.high %v529_v20, %v529_v20  ;;  %v1848_v52 = vmax.f32 %v1846_v10, %v1847_v46  ;;  %v1856_v60 = vsel %vm1485_vm0, %v530_v32, -inf  ;;  %v547_v61 = vcombine.high %v539_v57, %v539_v57 }
  0x88   :  { %v548_v62 = vcombine.high %v546_v11, %v546_v11  ;;  %v1857_v12 = vmax.f32 %v1855_v24, %v1856_v60  ;;  %v1864_v28 = vsel %vm1485_vm0, %v495_v42, -inf  ;;  %v2848_v47 = vsel %vm2819_vm8, %v1845_v58, %v2847_v31 }
  0x89   :  { %v1849_v63 = vrot.slane %v1848_v52, 4  ;;  %v1865_v0 = vsel %vm1485_vm0, %v529_v20, -inf  ;;  %v1873_v1 = vsel %vm1485_vm0, %v497_v30, -inf  ;;  %2947 = vst.msk [vmem:[#allocation2 + $0x51] sm:$0xff] %vm2638_vm1, %v2848_v47  ;;  %v1874_v4 = vsel %vm1485_vm0, %v531_v59, -inf }
  0x8a   :  { %v1858_v56 = vrot.slane %v1857_v12, 4  ;;  %v1866_v3 = vmax.f32 %v1864_v28, %v1865_v0  ;;  %v1882_v5 = vsel %vm1485_vm0, %v505_v51, -inf  ;;  %v1875_v6 = vmax.f32 %v1873_v1, %v1874_v4  ;;  %v38_v1 = vld [vmem:[%s5817_s0 + $0xc8] sm:$0xff] }
  0x8b   :  { %v1850_v40 = vmax.f32 %v1848_v52, %v1849_v63  ;;  %v1883_v2 = vsel %vm1485_vm0, %v539_v57, -inf  ;;  %v1891_v8 = vsel %vm1485_vm0, %v513_v54, -inf  ;;  %v1892_v16 = vsel %vm1485_vm0, %v547_v61, -inf }
  0x8c   :  { %v1859_v14 = vmax.f32 %v1857_v12, %v1858_v56  ;;  %v1867_v15 = vrot.slane %v1866_v3, 4  ;;  %v1884_v33 = vmax.f32 %v1882_v5, %v1883_v2  ;;  %v1876_v25 = vrot.slane %v1875_v6, 4  ;;  %v39_v5 = vld [vmem:[%s5817_s0 + $0xd0] sm:$0xff] }
  0x8d   :  { %v1851_v17 = vrot.slane %v1850_v40, 2  ;;  %v1893_v21 = vmax.f32 %v1891_v8, %v1892_v16  ;;  %v1900_v26 = vsel %vm1485_vm0, %v512_v38, -inf  ;;  %v1901_v39 = vsel %vm1485_vm0, %v546_v11, -inf }
  0x8e   :  { %v1860_v34 = vrot.slane %v1859_v14, 2  ;;  %v1868_v35 = vmax.f32 %v1866_v3, %v1867_v15  ;;  %v1885_v36 = vrot.slane %v1884_v33, 4  ;;  %v1877_v13 = vmax.f32 %v1875_v6, %v1876_v25 }
  0x8f   :  { %v1852_v41 = vmax.f32 %v1850_v40, %v1851_v17  ;;  %v1894_v29 = vrot.slane %v1893_v21, 4  ;;  %v1902_v42 = vmax.f32 %v1900_v26, %v1901_v39  ;;  %v1909_v48 = vsel %vm1485_vm0, %v514_v50, -inf }
  0x90   :  { %v1861_v44 = vmax.f32 %v1859_v14, %v1860_v34  ;;  %v1869_v45 = vrot.slane %v1868_v35, 2  ;;  %v1886_v22 = vmax.f32 %v1884_v33, %v1885_v36  ;;  %v4749_v49 = vld [vmem:[#allocation2 + $0x51] sm:$0xff]  ;;  %v1878_v51 = vrot.slane %v1877_v13, 2 }
  0x91   :  { %v4751_v18 = vld [vmem:[#allocation2 + $0x50] sm:$0xff]  ;;  %v1853_v30 = vrot.slane %v1852_v41, 1  ;;  %v1895_v9 = vmax.f32 %v1893_v21, %v1894_v29  ;;  %v1903_v38 = vrot.slane %v1902_v42, 4  ;;  %3033 = vrot.lane.b32.xlu0 %v4749_v49, %s4265_s14  ;;  %v1910_v54 = vsel %vm1485_vm0, %v548_v62, -inf  ;;  %v40_v14 = vld [vmem:[%s5817_s0 + $0xd8] sm:$0xff] }
  0x92   :  { %3225 = vrot.lane.b32.xlu1 %v4751_v18, %s4266_s15  ;;  %v1862_v53 = vrot.slane %v1861_v44, 1  ;;  %v1870_v19 = vmax.f32 %v1868_v35, %v1869_v45  ;;  %v1887_v31 = vrot.slane %v1886_v22, 2  ;;  %v1879_v37 = vmax.f32 %v1877_v13, %v1878_v51  ;;  %v4766_v28 = vld [vmem:[#allocation2 + $0x52] sm:$0xff] }
  0x93   :  { %v1854_v10 = vmax.f32 %v1852_v41, %v1853_v30  ;;  %v1896_v50 = vrot.slane %v1895_v9, 2  ;;  %v1904_v20 = vmax.f32 %v1902_v42, %v1903_v38  ;;  %v1911_v46 = vmax.f32 %v1909_v48, %v1910_v54 }
  0x94   :  { %v1863_v32 = vmax.f32 %v1861_v44, %v1862_v53  ;;  %v1871_v57 = vrot.slane %v1870_v19, 1  ;;  %v1888_v11 = vmax.f32 %v1886_v22, %v1887_v31  ;;  %v1880_v24 = vrot.slane %v1879_v37, 1 }
  0x95   :  { %v1897_v58 = vmax.f32 %v1895_v9, %v1896_v50  ;;  %v1905_v59 = vrot.slane %v1904_v20, 2  ;;  %v549_v52 = vcombine.high %v37_v55, %v37_v55  ;;  %3417 = vrot.lane.b32.xlu0 %v4697_v7, %s4268_s21  ;;  %v1912_v62 = vrot.slane %v1911_v46, 4 }
  0x96   :  { %3610 = vrot.lane.b32.xlu1 %v4682_v23, %s4270_s25  ;;  %v1872_v60 = vmax.f32 %v1870_v19, %v1871_v57  ;;  %v1889_v61 = vrot.slane %v1888_v11, 1  ;;  %v2849_v12 = vsel %vm2807_vm2, %v1863_v32, %v1854_v10  ;;  %v1881_v47 = vmax.f32 %v1879_v37, %v1880_v24 }
  0x97   :  { %v1898_v63 = vrot.slane %v1897_v58, 1  ;;  %v1906_v0 = vmax.f32 %v1904_v20, %v1905_v59  ;;  %v556_v56 = vrot.slane %v37_v55, %v4400_v27  ;;  %v1913_v4 = vmax.f32 %v1911_v46, %v1912_v62 }
  0x98   :  { %v1890_v3 = vmax.f32 %v1888_v11, %v1889_v61  ;;  %v2850_v23 = vsel %vm2809_vm3, %v1872_v60, %v2849_v12  ;;  %v563_v40 = vrot.slane %v549_v52, %v4400_v27  ;;  %v566_v25 = vcombine.high %v38_v1, %v38_v1 }
  0x99   :  { %v1899_v6 = vmax.f32 %v1897_v58, %v1898_v63  ;;  %v1907_v2 = vrot.slane %v1906_v0, 1  ;;  %v2851_v8 = vsel %vm2811_vm4, %v1881_v47, %v2850_v23  ;;  %v564_v15 = vcombine.high %v556_v56, %v556_v56  ;;  %3130 = vrot.lane.b32.xlu0 %v4766_v28, %s4264_s13 }
  0x9a   :  { %3322 = vrot.lane.b32.xlu1 %v4749_v49, %s4267_s16  ;;  %v1914_v33 = vrot.slane %v1913_v4, 2  ;;  %v2852_v16 = vsel %vm2813_vm5, %v1890_v3, %v2851_v8  ;;  %v565_v17 = vcombine.high %v563_v40, %v563_v40  ;;  %v573_v34 = vrot.slane %v38_v1, %v4400_v27 }
  0x9b   :  { %v1908_v21 = vmax.f32 %v1906_v0, %v1907_v2  ;;  %v2853_v26 = vsel %vm2815_vm6, %v1899_v6, %v2852_v16  ;;  %v583_v35 = vcombine.high %v39_v5, %v39_v5  ;;  %v580_v39 = vrot.slane %v566_v25, %v4400_v27 }
  0x9c   :  { %v1915_v36 = vmax.f32 %v1913_v4, %v1914_v33  ;;  %v590_v41 = vrot.slane %v39_v5, %v4400_v27  ;;  %v600_v13 = vcombine.high %v40_v14, %v40_v14  ;;  %v581_v42 = vcombine.high %v573_v34, %v573_v34 }
  0x9d   :  { %v2854_v29 = vsel %vm2817_vm7, %v1908_v21, %v2853_v26  ;;  %v597_v43 = vrot.slane %v583_v35, %v4400_v27  ;;  %v607_v44 = vrot.slane %v40_v14, %v4400_v27  ;;  %3515 = vrot.lane.b32.xlu0 %v4751_v18, %s4269_s22  ;;  %v582_v22 = vcombine.high %v580_v39, %v580_v39 }
  0x9e   :  { %v1916_v45 = vrot.slane %v1915_v36, 1  ;;  %3707 = vrot.lane.b32.xlu1 %v4697_v7, %s4271_s5  ;;  %v598_v48 = vcombine.high %v590_v41, %v590_v41  ;;  %v614_v30 = vrot.slane %v600_v13, %v4400_v27  ;;  %v1918_v38 = vsel %vm1485_vm0, %v556_v56, -inf }
  0x9f   :  { %v599_v51 = vcombine.high %v597_v43, %v597_v43  ;;  %v615_v9 = vcombine.high %v607_v44, %v607_v44  ;;  %v1919_v53 = vsel %vm1485_vm0, %v590_v41, -inf  ;;  %v1927_v55 = vsel %vm1485_vm0, %v564_v15, -inf }
  0xa0   :  { %v1917_v19 = vmax.f32 %v1915_v36, %v1916_v45  ;;  %v616_v31 = vcombine.high %v614_v30, %v614_v30  ;;  %v1920_v54 = vmax.f32 %v1918_v38, %v1919_v53  ;;  %v1928_v18 = vsel %vm1485_vm0, %v598_v48, -inf }
  0xa1   :  { %v1936_v10 = vsel %vm1485_vm0, %v563_v40, -inf  ;;  %v1937_v7 = vsel %vm1485_vm0, %v597_v43, -inf  ;;  %v1945_v37 = vsel %vm1485_vm0, %v565_v17, -inf  ;;  %v1929_v32 = vmax.f32 %v1927_v55, %v1928_v18 }
  0xa2   :  { %v2855_v50 = vsel %vm2819_vm8, %v1917_v19, %v2854_v29  ;;  %v1921_v20 = vrot.slane %v1920_v54, 4  ;;  %v1938_v57 = vmax.f32 %v1936_v10, %v1937_v7  ;;  %v1946_v11 = vsel %vm1485_vm0, %v599_v51, -inf }
  0xa3   :  { %2948 = vst.msk [vmem:[#allocation2 + $0x61] sm:$0xff] %vm2638_vm1, %v2855_v50  ;;  %v1954_v46 = vsel %vm1485_vm0, %v573_v34, -inf  ;;  %v1955_v24 = vsel %vm1485_vm0, %v607_v44, -inf  ;;  %v1963_v58 = vsel %vm1485_vm0, %v581_v42, -inf  ;;  %v1930_v52 = vrot.slane %v1929_v32, 4  ;;  %v41_v42 = vld [vmem:[%s5817_s0 + $0xe0] sm:$0xff] }
  0xa4   :  { %v1922_v59 = vmax.f32 %v1920_v54, %v1921_v20  ;;  %v1939_v60 = vrot.slane %v1938_v57, 4  ;;  %v1947_v61 = vmax.f32 %v1945_v37, %v1946_v11  ;;  %v1956_v62 = vmax.f32 %v1954_v46, %v1955_v24  ;;  %v4827_v54 = vpop.permute.xlu1 %3120  ;;  %v42_v37 = vld [vmem:[%s5817_s0 + $0xe8] sm:$0xff]  ;;  %v2963_v50 = vld [vmem:[#allocation2 + $0x40] sm:$0xff] }
  0xa5   :  { %v1964_v12 = vsel %vm1485_vm0, %v615_v9, -inf  ;;  %v1972_v47 = vsel %vm1485_vm0, %v580_v39, -inf  ;;  %v1973_v63 = vsel %vm1485_vm0, %v614_v30, -inf  ;;  %v1931_v1 = vmax.f32 %v1929_v32, %v1930_v52  ;;  %2979 = vst.msk [vmem:[#allocation3 + $0x20] sm:$0xff] %vm2638_vm1, %v2963_v50  ;;  %v43_v52 = vld [vmem:[%s5817_s0 + $0xf0] sm:$0xff] }
  0xa6   :  { %v1923_v0 = vrot.slane %v1922_v59, 2  ;;  %v1940_v56 = vmax.f32 %v1938_v57, %v1939_v60  ;;  %v1948_v3 = vrot.slane %v1947_v61, 4  ;;  %v1957_v4 = vrot.slane %v1956_v62, 4 }
  0xa7   :  { %v1965_v23 = vmax.f32 %v1963_v58, %v1964_v12  ;;  %v1974_v5 = vmax.f32 %v1972_v47, %v1973_v63  ;;  %v1981_v40 = vsel %vm1485_vm0, %v582_v22, -inf  ;;  %v1932_v2 = vrot.slane %v1931_v1, 2 }
  0xa8   :  { %v1924_v6 = vmax.f32 %v1922_v59, %v1923_v0  ;;  %v1941_v8 = vrot.slane %v1940_v56, 2  ;;  %v1949_v14 = vmax.f32 %v1947_v61, %v1948_v3  ;;  %v1958_v15 = vmax.f32 %v1956_v62, %v1957_v4  ;;  %v44_v61 = vld [vmem:[%s5817_s0 + $0xf8] sm:$0xff] }
  0xa9   :  { %v1966_v33 = vrot.slane %v1965_v23, 4  ;;  %v1975_v16 = vrot.slane %v1974_v5, 4  ;;  %v1982_v17 = vsel %vm1485_vm0, %v616_v31, -inf  ;;  %v1933_v34 = vmax.f32 %v1931_v1, %v1932_v2 }
  0xaa   :  { %v4816_v25 = vld [vmem:[#allocation2 + $0x60] sm:$0xff]  ;;  %v1925_v26 = vrot.slane %v1924_v6, 1  ;;  %v1942_v35 = vmax.f32 %v1940_v56, %v1941_v8  ;;  %v1950_v36 = vrot.slane %v1949_v14, 2  ;;  %v1959_v39 = vrot.slane %v1958_v15, 2 }
  0xab   :  { %v4818_v21 = vld [vmem:[#allocation2 + $0x61] sm:$0xff]  ;;  %3227 = vrot.lane.b32.xlu0 %v4816_v25, %s4266_s15  ;;  %v1967_v41 = vmax.f32 %v1965_v23, %v1966_v33  ;;  %v1976_v13 = vmax.f32 %v1974_v5, %v1975_v16  ;;  %v1983_v29 = vmax.f32 %v1981_v40, %v1982_v17  ;;  %v1934_v44 = vrot.slane %v1933_v34, 1  ;;  %v4857_v40 = vpop.permute.xlu1 %3122 }
  0xac   :  { %3324 = vrot.lane.b32.xlu1 %v4818_v21, %s4267_s16  ;;  %v1926_v43 = vmax.f32 %v1924_v6, %v1925_v26  ;;  %v1943_v45 = vrot.slane %v1942_v35, 1  ;;  %v1951_v22 = vmax.f32 %v1949_v14, %v1950_v36  ;;  %v1960_v48 = vmax.f32 %v1958_v15, %v1959_v39  ;;  %v4836_v20 = vld [vmem:[#allocation2 + $0x62] sm:$0xff]  ;;  %v4861_v15 = vpop.permute.xlu0 %3023 }
  0xad   :  { %v1968_v30 = vrot.slane %v1967_v41, 2  ;;  %v1977_v51 = vrot.slane %v1976_v13, 2  ;;  %v1984_v9 = vrot.slane %v1983_v29, 4  ;;  %v1935_v38 = vmax.f32 %v1933_v34, %v1934_v44  ;;  %3072 = vst.msk [vmem:[#allocation3] sm:$0xff] %vm3071_vm9, %v4861_v15  ;;  %v46_v15 = vld [vmem:[%s5817_s0 + $0x108] sm:$0xff] }
  0xae   :  { %v1944_v53 = vmax.f32 %v1942_v35, %v1943_v45  ;;  %v1952_v19 = vrot.slane %v1951_v22, 1  ;;  %v617_v31 = vcombine.high %v41_v42, %v41_v42  ;;  %v1961_v55 = vrot.slane %v1960_v48, 1 }
  0xaf   :  { %3612 = vrot.lane.b32.xlu0 %v4749_v49, %s4270_s25  ;;  %v1969_v18 = vmax.f32 %v1967_v41, %v1968_v30  ;;  %v1978_v10 = vmax.f32 %v1976_v13, %v1977_v51  ;;  %v1985_v7 = vmax.f32 %v1983_v29, %v1984_v9  ;;  %v2856_v57 = vsel %vm2807_vm2, %v1935_v38, %v1926_v43 }
  0xb0   :  { %3709 = vrot.lane.b32.xlu1 %v4766_v28, %s4271_s5  ;;  %v1953_v32 = vmax.f32 %v1951_v22, %v1952_v19  ;;  %v624_v11 = vrot.slane %v41_v42, %v4400_v27  ;;  %v631_v49 = vrot.slane %v617_v31, %v4400_v27  ;;  %v1962_v46 = vmax.f32 %v1960_v48, %v1961_v55  ;;  %v4884_v31 = vpop.permute.xlu0 %3025 }
  0xb1   :  { %v1970_v24 = vrot.slane %v1969_v18, 1  ;;  %v1979_v58 = vrot.slane %v1978_v10, 1  ;;  %v1986_v59 = vrot.slane %v1985_v7, 2  ;;  %v2857_v60 = vsel %vm2809_vm3, %v1944_v53, %v2856_v57  ;;  %3073 = vst.msk [vmem:[#allocation3 + $0x8] sm:$0xff] %vm3071_vm9, %v4884_v31 }
  0xb2   :  { %v632_v62 = vcombine.high %v624_v11, %v624_v11  ;;  %v633_v12 = vcombine.high %v631_v49, %v631_v49  ;;  %v634_v47 = vcombine.high %v42_v37, %v42_v37  ;;  %v1990_v56 = vsel %vm1485_vm0, %v624_v11, -inf }
  0xb3   :  { %3035 = vrot.lane.b32.xlu0 %v4818_v21, %s4265_s14  ;;  %v1971_v63 = vmax.f32 %v1969_v18, %v1970_v24  ;;  %v1980_v0 = vmax.f32 %v1978_v10, %v1979_v58  ;;  %v1987_v1 = vmax.f32 %v1985_v7, %v1986_v59  ;;  %v2858_v3 = vsel %vm2811_vm4, %v1953_v32, %v2857_v60 }
  0xb4   :  { %3132 = vrot.lane.b32.xlu1 %v4836_v20, %s4264_s13  ;;  %v641_v4 = vrot.slane %v42_v37, %v4400_v27  ;;  %v648_v23 = vrot.slane %v634_v47, %v4400_v27  ;;  %v651_v5 = vcombine.high %v43_v52, %v43_v52  ;;  %v2859_v2 = vsel %vm2813_vm5, %v1962_v46, %v2858_v3 }
  0xb5   :  { %v1988_v6 = vrot.slane %v1987_v1, 1  ;;  %v658_v8 = vrot.slane %v43_v52, %v4400_v27  ;;  %v668_v14 = vcombine.high %v44_v61, %v44_v61  ;;  %v2860_v33 = vsel %vm2815_vm6, %v1971_v63, %v2859_v2 }
  0xb6   :  { %v649_v16 = vcombine.high %v641_v4, %v641_v4  ;;  %v650_v17 = vcombine.high %v648_v23, %v648_v23  ;;  %v665_v26 = vrot.slane %v651_v5, %v4400_v27  ;;  %v2861_v35 = vsel %vm2817_vm7, %v1980_v0, %v2860_v33  ;;  %v2964_v0 = vld [vmem:[#allocation2 + $0x50] sm:$0xff] }
  0xb7   :  { %3419 = vrot.lane.b32.xlu0 %v4766_v28, %s4268_s21  ;;  %v1989_v34 = vmax.f32 %v1987_v1, %v1988_v6  ;;  %v666_v36 = vcombine.high %v658_v8, %v658_v8  ;;  %v1991_v39 = vsel %vm1485_vm0, %v658_v8, -inf  ;;  %v675_v13 = vrot.slane %v44_v61, %v4400_v27  ;;  %v4897_v6 = vpop.permute.xlu0 %3217  ;;  %2980 = vst.msk [vmem:[#allocation3 + $0x28] sm:$0xff] %vm2638_vm1, %v2964_v0 }
  0xb8   :  { %3517 = vrot.lane.b32.xlu1 %v4816_v25, %s4269_s22  ;;  %v667_v41 = vcombine.high %v665_v26, %v665_v26  ;;  %v682_v29 = vrot.slane %v668_v14, %v4400_v27  ;;  %v1992_v42 = vmax.f32 %v1990_v56, %v1991_v39  ;;  %v1999_v44 = vsel %vm1485_vm0, %v632_v62, -inf }
  0xb9   :  { %v2862_v43 = vsel %vm2819_vm8, %v1989_v34, %v2861_v35  ;;  %v2000_v28 = vsel %vm1485_vm0, %v666_v36, -inf  ;;  %v2008_v45 = vsel %vm1485_vm0, %v631_v49, -inf  ;;  %v683_v25 = vcombine.high %v675_v13, %v675_v13 }
  0xba   :  { %2949 = vst.msk [vmem:[#allocation2 + $0x71] sm:$0xff] %vm2638_vm1, %v2862_v43  ;;  %v684_v22 = vcombine.high %v682_v29, %v682_v29  ;;  %v1993_v48 = vrot.slane %v1992_v42, 4  ;;  %v2001_v30 = vmax.f32 %v1999_v44, %v2000_v28  ;;  %v4878_v51 = vpop.permute.xlu1 %3219  ;;  %v2009_v9 = vsel %vm1485_vm0, %v665_v26, -inf  ;;  %v45_v28 = vld [vmem:[%s5817_s0 + $0x100] sm:$0xff] }
  0xbb   :  { %v2017_v38 = vsel %vm1485_vm0, %v633_v12, -inf  ;;  %v2018_v53 = vsel %vm1485_vm0, %v667_v41, -inf  ;;  %v2026_v19 = vsel %vm1485_vm0, %v641_v4, -inf  ;;  %v2010_v10 = vmax.f32 %v2008_v45, %v2009_v9 }
  0xbc   :  { %v1994_v55 = vmax.f32 %v1992_v42, %v1993_v48  ;;  %v2002_v18 = vrot.slane %v2001_v30, 4  ;;  %v2019_v7 = vmax.f32 %v2017_v38, %v2018_v53  ;;  %v2027_v37 = vsel %vm1485_vm0, %v675_v13, -inf }
  0xbd   :  { %v2035_v50 = vsel %vm1485_vm0, %v649_v16, -inf  ;;  %v2036_v32 = vsel %vm1485_vm0, %v683_v25, -inf  ;;  %v2044_v57 = vsel %vm1485_vm0, %v648_v23, -inf  ;;  %v2011_v46 = vrot.slane %v2010_v10, 4 }
  0xbe   :  { %v1995_v11 = vrot.slane %v1994_v55, 2  ;;  %v2003_v49 = vmax.f32 %v2001_v30, %v2002_v18  ;;  %v2020_v24 = vrot.slane %v2019_v7, 4  ;;  %v3028_v58 = vpop.permute.xlu1 %3027  ;;  %v2028_v59 = vmax.f32 %v2026_v19, %v2027_v37  ;;  %v4920_v19 = vpop.permute.xlu0 %3314 }
  0xbf   :  { %v2037_v52 = vmax.f32 %v2035_v50, %v2036_v32  ;;  %v2045_v60 = vsel %vm1485_vm0, %v682_v29, -inf  ;;  %v2053_v61 = vsel %vm1485_vm0, %v650_v17, -inf  ;;  %v2012_v47 = vmax.f32 %v2010_v10, %v2011_v46  ;;  %3074 = vst.msk [vmem:[#allocation3 + $0x10] sm:$0xff] %vm3071_vm9, %v3028_v58 }
  0xc0   :  { %v1996_v62 = vmax.f32 %v1994_v55, %v1995_v11  ;;  %v2004_v12 = vrot.slane %v2003_v49, 2  ;;  %v2021_v63 = vmax.f32 %v2019_v7, %v2020_v24  ;;  %v2029_v3 = vrot.slane %v2028_v59, 4 }
  0xc1   :  { %v4892_v1 = vld [vmem:[#allocation2 + $0x71] sm:$0xff]  ;;  %v2038_v4 = vrot.slane %v2037_v52, 4  ;;  %v2046_v23 = vmax.f32 %v2044_v57, %v2045_v60  ;;  %v2054_v5 = vsel %vm1485_vm0, %v684_v22, -inf  ;;  %v2013_v14 = vrot.slane %v2012_v47, 2 }
  0xc2   :  { %v4894_v56 = vld [vmem:[#allocation2 + $0x70] sm:$0xff]  ;;  %3037 = vrot.lane.b32.xlu0 %v4892_v1, %s4265_s14  ;;  %v1997_v2 = vrot.slane %v1996_v62, 1  ;;  %v2005_v8 = vmax.f32 %v2003_v49, %v2004_v12  ;;  %v2022_v33 = vrot.slane %v2021_v63, 2  ;;  %v4904_v16 = vpop.permute.xlu1 %3411  ;;  %v2030_v17 = vmax.f32 %v2028_v59, %v2029_v3  ;;  %v48_v3 = vld [vmem:[%s5817_s0 + $0x118] sm:$0xff] }
  0xc3   :  { %3229 = vrot.lane.b32.xlu1 %v4894_v56, %s4266_s15  ;;  %v2039_v26 = vmax.f32 %v2037_v52, %v2038_v4  ;;  %v2047_v34 = vrot.slane %v2046_v23, 4  ;;  %v2055_v35 = vmax.f32 %v2053_v61, %v2054_v5  ;;  %v2014_v41 = vmax.f32 %v2012_v47, %v2013_v14  ;;  %v4913_v48 = vld [vmem:[#allocation2 + $0x72] sm:$0xff]  ;;  %v4947_v4 = vpop.permute.xlu0 %3316 }
  0xc4   :  { %v1998_v36 = vmax.f32 %v1996_v62, %v1997_v2  ;;  %v2006_v39 = vrot.slane %v2005_v8, 1  ;;  %v2023_v13 = vmax.f32 %v2021_v63, %v2022_v33  ;;  %v2031_v29 = vrot.slane %v2030_v17, 2  ;;  %v47_v52 = vld [vmem:[%s5817_s0 + $0x110] sm:$0xff] }
  0xc5   :  { %v2040_v42 = vrot.slane %v2039_v26, 2  ;;  %v2048_v43 = vmax.f32 %v2046_v23, %v2047_v34  ;;  %v2056_v44 = vrot.slane %v2055_v35, 4  ;;  %v2015_v25 = vrot.slane %v2014_v41, 1 }
  0xc6   :  { %3421 = vrot.lane.b32.xlu0 %v4836_v20, %s4268_s21  ;;  %v2007_v45 = vmax.f32 %v2005_v8, %v2006_v39  ;;  %v2024_v22 = vrot.slane %v2023_v13, 1  ;;  %v2032_v30 = vmax.f32 %v2030_v17, %v2031_v29  ;;  %v685_v7 = vcombine.high %v45_v28, %v45_v28 }
  0xc7   :  { %3614 = vrot.lane.b32.xlu1 %v4818_v21, %s4270_s25  ;;  %v2041_v9 = vmax.f32 %v2039_v26, %v2040_v42  ;;  %v2049_v38 = vrot.slane %v2048_v43, 2  ;;  %v2057_v53 = vmax.f32 %v2055_v35, %v2056_v44  ;;  %v3125_v21 = vpop.permute.xlu1 %3124  ;;  %v2016_v55 = vmax.f32 %v2014_v41, %v2015_v25 }
  0xc8   :  { %v2025_v18 = vmax.f32 %v2023_v13, %v2024_v22  ;;  %v2863_v10 = vsel %vm2807_vm2, %v2007_v45, %v1998_v36  ;;  %v2033_v37 = vrot.slane %v2032_v30, 1  ;;  %v692_v11 = vrot.slane %v45_v28, %v4400_v27 }
  0xc9   :  { %v2042_v50 = vrot.slane %v2041_v9, 1  ;;  %v2050_v32 = vmax.f32 %v2048_v43, %v2049_v38  ;;  %v2058_v57 = vrot.slane %v2057_v53, 2  ;;  %v2864_v31 = vsel %vm2809_vm3, %v2016_v55, %v2863_v10 }
  0xca   :  { %3134 = vrot.lane.b32.xlu0 %v4913_v48, %s4264_s13  ;;  %v699_v49 = vrot.slane %v685_v7, %v4400_v27  ;;  %vm5823_vm10 = vcmask 97344   ;;  %v2034_v46 = vmax.f32 %v2032_v30, %v2033_v37  ;;  %v2865_v60 = vsel %vm2811_vm4, %v2025_v18, %v2864_v31 }
  0xcb   :  { %3326 = vrot.lane.b32.xlu1 %v4892_v1, %s4267_s16  ;;  %v2043_v24 = vmax.f32 %v2041_v9, %v2042_v50  ;;  %v2051_v58 = vrot.slane %v2050_v32, 1  ;;  %v2059_v59 = vmax.f32 %v2057_v53, %v2058_v57  ;;  %3170 = vst.msk [vmem:[#allocation3 + $0x8] sm:$0xff] %vm5823_vm10, %v4857_v40  ;;  %3169 = vst.msk [vmem:[#allocation3] sm:$0xff] %vm5823_vm10, %v4827_v54  ;;  %v4949_v54 = vpop.permute.xlu1 %3509  ;;  %v2062_v8 = vsel %vm1485_vm0, %v692_v11, -inf }
  0xcc   :  { %3171 = vst.msk [vmem:[#allocation3 + $0x10] sm:$0xff] %vm5823_vm10, %v3125_v21  ;;  %v700_v61 = vcombine.high %v692_v11, %v692_v11  ;;  %v701_v62 = vcombine.high %v699_v49, %v699_v49  ;;  %v702_v12 = vcombine.high %v46_v15, %v46_v15  ;;  %v2866_v0 = vsel %vm2813_vm5, %v2034_v46, %v2865_v60 }
  0xcd   :  { %v2052_v47 = vmax.f32 %v2050_v32, %v2051_v58  ;;  %v2060_v63 = vrot.slane %v2059_v59, 1  ;;  %v709_v40 = vrot.slane %v46_v15, %v4400_v27  ;;  %v2867_v23 = vsel %vm2815_vm6, %v2043_v24, %v2866_v0 }
  0xce   :  { %3519 = vrot.lane.b32.xlu0 %v4894_v56, %s4269_s22  ;;  %v716_v5 = vrot.slane %v702_v12, %v4400_v27  ;;  %v719_v2 = vcombine.high %v47_v52, %v47_v52  ;;  %v726_v26 = vrot.slane %v47_v52, %v4400_v27  ;;  %v736_v56 = vcombine.high %v48_v3, %v48_v3 }
  0xcf   :  { %3711 = vrot.lane.b32.xlu1 %v4836_v20, %s4271_s5  ;;  %v2061_v14 = vmax.f32 %v2059_v59, %v2060_v63  ;;  %v2868_v33 = vsel %vm2817_vm7, %v2052_v47, %v2867_v23  ;;  %v717_v17 = vcombine.high %v709_v40, %v709_v40  ;;  %v743_v36 = vrot.slane %v48_v3, %v4400_v27 }
  0xd0   :  { %v718_v34 = vcombine.high %v716_v5, %v716_v5  ;;  %v733_v35 = vrot.slane %v719_v2, %v4400_v27  ;;  %v734_v20 = vcombine.high %v726_v26, %v726_v26  ;;  %v2063_v41 = vsel %vm1485_vm0, %v726_v26, -inf }
  0xd1   :  { %v2869_v39 = vsel %vm2819_vm8, %v2061_v14, %v2868_v33  ;;  %v2071_v13 = vsel %vm1485_vm0, %v700_v61, -inf  ;;  %v750_v42 = vrot.slane %v736_v56, %v4400_v27  ;;  %v751_v43 = vcombine.high %v743_v36, %v743_v36 }
  0xd2   :  { %2950 = vst.msk [vmem:[#allocation2 + $0x81] sm:$0xff] %vm2638_vm1, %v2869_v39  ;;  %v735_v29 = vcombine.high %v733_v35, %v733_v35  ;;  %v2064_v44 = vmax.f32 %v2062_v8, %v2063_v41  ;;  %v2072_v28 = vsel %vm1485_vm0, %v734_v20, -inf  ;;  %v2080_v45 = vsel %vm1485_vm0, %v699_v49, -inf  ;;  %v3030_v30 = vpop.permute.xlu0 %3029 }
  0xd3   :  { %v2081_v25 = vsel %vm1485_vm0, %v733_v35, -inf  ;;  %v2089_v22 = vsel %vm1485_vm0, %v701_v62, -inf  ;;  %v4971_v9 = vpop.permute.xlu1 %3221  ;;  %v752_v38 = vcombine.high %v750_v42, %v750_v42  ;;  %v2073_v21 = vmax.f32 %v2071_v13, %v2072_v28  ;;  %3075 = vst.msk [vmem:[#allocation3 + $0x18] sm:$0xff] %vm3071_vm9, %v3030_v30 }
  0xd4   :  { %v2065_v53 = vrot.slane %v2064_v44, 4  ;;  %v2082_v55 = vmax.f32 %v2080_v45, %v2081_v25  ;;  %v2090_v18 = vsel %vm1485_vm0, %v735_v29, -inf  ;;  %v2098_v10 = vsel %vm1485_vm0, %v709_v40, -inf  ;;  %v2999_v45 = vld [vmem:[#allocation2 + $0xa1] sm:$0xff] }
  0xd5   :  { %v2099_v7 = vsel %vm1485_vm0, %v743_v36, -inf  ;;  %v2107_v37 = vsel %vm1485_vm0, %v717_v17, -inf  ;;  %v2074_v32 = vrot.slane %v2073_v21, 4  ;;  %v2091_v15 = vmax.f32 %v2089_v22, %v2090_v18  ;;  %v3096_v25 = vld [vmem:[#allocation2 + $0xa2] sm:$0xff] }
  0xd6   :  { %v2066_v50 = vmax.f32 %v2064_v44, %v2065_v53  ;;  %v2083_v57 = vrot.slane %v2082_v55, 4  ;;  %v2100_v31 = vmax.f32 %v2098_v10, %v2099_v7  ;;  %v2108_v11 = vsel %vm1485_vm0, %v751_v43, -inf  ;;  %v4981_v24 = vpop.permute.xlu0 %3413 }
  0xd7   :  { %v2116_v49 = vsel %vm1485_vm0, %v716_v5, -inf  ;;  %v2117_v46 = vsel %vm1485_vm0, %v750_v42, -inf  ;;  %v2075_v59 = vmax.f32 %v2073_v21, %v2074_v32  ;;  %v2092_v60 = vrot.slane %v2091_v15, 4  ;;  %v4983_v61 = vpop.permute.xlu1 %3606  ;;  %v50_v32 = vld [vmem:[%s5817_s0 + $0x128] sm:$0xff] }
  0xd8   :  { %v2067_v58 = vrot.slane %v2066_v50, 2  ;;  %v2084_v52 = vmax.f32 %v2082_v55, %v2083_v57  ;;  %v2101_v47 = vrot.slane %v2100_v31, 4  ;;  %v2109_v63 = vmax.f32 %v2107_v37, %v2108_v11  ;;  %v2965_v57 = vld [vmem:[#allocation2 + $0x60] sm:$0xff] }
  0xd9   :  { %v4985_v62 = vld [vmem:[#allocation2 + $0x80] sm:$0xff]  ;;  %v2118_v0 = vmax.f32 %v2116_v49, %v2117_v46  ;;  %v2125_v3 = vsel %vm1485_vm0, %v718_v34, -inf  ;;  %v2076_v23 = vrot.slane %v2075_v59, 2  ;;  %v2093_v2 = vmax.f32 %v2091_v15, %v2092_v60  ;;  %2981 = vst.msk [vmem:[#allocation3 + $0x30] sm:$0xff] %vm2638_vm1, %v2965_v57 }
  0xda   :  { %v4987_v12 = vld [vmem:[#allocation2 + $0x81] sm:$0xff]  ;;  %3231 = vrot.lane.b32.xlu0 %v4985_v62, %s4266_s15  ;;  %v2068_v40 = vmax.f32 %v2066_v50, %v2067_v58  ;;  %v2085_v5 = vrot.slane %v2084_v52, 2  ;;  %v2102_v8 = vmax.f32 %v2100_v31, %v2101_v47  ;;  %v2110_v14 = vrot.slane %v2109_v63, 4  ;;  %v3127_v26 = vpop.permute.xlu0 %3126 }
  0xdb   :  { %3328 = vrot.lane.b32.xlu1 %v4987_v12, %s4267_s16  ;;  %v2119_v33 = vrot.slane %v2118_v0, 4  ;;  %v2126_v17 = vsel %vm1485_vm0, %v752_v38, -inf  ;;  %v2077_v56 = vmax.f32 %v2075_v59, %v2076_v23  ;;  %v2094_v34 = vrot.slane %v2093_v2, 2  ;;  %3172 = vst.msk [vmem:[#allocation3 + $0x18] sm:$0xff] %vm5823_vm10, %v3127_v26  ;;  %v3319_v28 = vpop.permute.xlu1 %3318  ;;  %v49_v50 = vld [vmem:[%s5817_s0 + $0x120] sm:$0xff] }
  0xdc   :  { %v2069_v35 = vrot.slane %v2068_v40, 1  ;;  %v2086_v36 = vmax.f32 %v2084_v52, %v2085_v5  ;;  %v2103_v39 = vrot.slane %v2102_v8, 2  ;;  %v2111_v20 = vmax.f32 %v2109_v63, %v2110_v14 }
  0xdd   :  { %v2120_v41 = vmax.f32 %v2118_v0, %v2119_v33  ;;  %v2127_v13 = vmax.f32 %v2125_v3, %v2126_v17  ;;  %v2078_v42 = vrot.slane %v2077_v56, 1  ;;  %v2095_v44 = vmax.f32 %v2093_v2, %v2094_v34 }
  0xde   :  { %3616 = vrot.lane.b32.xlu0 %v4892_v1, %s4270_s25  ;;  %v2070_v29 = vmax.f32 %v2068_v40, %v2069_v35  ;;  %v2087_v43 = vrot.slane %v2086_v36, 1  ;;  %v2104_v22 = vmax.f32 %v2102_v8, %v2103_v39  ;;  %v2112_v30 = vrot.slane %v2111_v20, 2  ;;  %v5027_v52 = vpop.permute.xlu0 %3511 }
  0xdf   :  { %3713 = vrot.lane.b32.xlu1 %v4913_v48, %s4271_s5  ;;  %v2121_v38 = vrot.slane %v2120_v41, 2  ;;  %v2128_v53 = vrot.slane %v2127_v13, 4  ;;  %v2079_v21 = vmax.f32 %v2077_v56, %v2078_v42  ;;  %v2096_v18 = vrot.slane %v2095_v44, 1 }
  0xe0   :  { %v2088_v55 = vmax.f32 %v2086_v36, %v2087_v43  ;;  %vm3265_vm11 = vcmask 130144   ;;  %v2105_v10 = vrot.slane %v2104_v22, 1  ;;  %v2113_v1 = vmax.f32 %v2111_v20, %v2112_v30 }
  0xe1   :  { %v2122_v7 = vmax.f32 %v2120_v41, %v2121_v38  ;;  %v2129_v37 = vmax.f32 %v2127_v13, %v2128_v53  ;;  %3267 = vst.msk [vmem:[#allocation3 + $0x8] sm:$0xff] %vm3265_vm11, %v4878_v51  ;;  %3266 = vst.msk [vmem:[#allocation3] sm:$0xff] %vm3265_vm11, %v4897_v6  ;;  %v2097_v51 = vmax.f32 %v2095_v44, %v2096_v18  ;;  %vm3362_vm12 = vcmask 162944  }
  0xe2   :  { %3268 = vst.msk [vmem:[#allocation3 + $0x10] sm:$0xff] %vm3265_vm11, %v4971_v9  ;;  %3039 = vrot.lane.b32.xlu0 %v2999_v45, %s4265_s14  ;;  %v2870_v15 = vsel %vm2807_vm2, %v2079_v21, %v2070_v29  ;;  %vm5822_vm13 = vcmask 195744   ;;  %v2106_v6 = vmax.f32 %v2104_v22, %v2105_v10  ;;  %v2114_v31 = vrot.slane %v2113_v1, 1 }
  0xe3   :  { %3136 = vrot.lane.b32.xlu1 %v3096_v25, %s4264_s13  ;;  %v2123_v11 = vrot.slane %v2122_v7, 1  ;;  %v2130_v49 = vrot.slane %v2129_v37, 2  ;;  %3363 = vst.msk [vmem:[#allocation3] sm:$0xff] %vm3362_vm12, %v4920_v19  ;;  %3364 = vst.msk [vmem:[#allocation3 + $0x8] sm:$0xff] %vm3362_vm12, %v4947_v4  ;;  %v2871_v9 = vsel %vm2809_vm3, %v2088_v55, %v2870_v15  ;;  %v753_v46 = vcombine.high %v49_v50, %v49_v50  ;;  %v5029_v19 = vpop.permute.xlu1 %3703 }
  0xe4   :  { %3365 = vst.msk [vmem:[#allocation3 + $0x10] sm:$0xff] %vm3362_vm12, %v3319_v28  ;;  %v760_v58 = vrot.slane %v49_v50, %v4400_v27  ;;  %v770_v59 = vcombine.high %v50_v32, %v50_v32  ;;  %v2115_v60 = vmax.f32 %v2113_v1, %v2114_v31  ;;  %v2872_v63 = vsel %vm2811_vm4, %v2097_v51, %v2871_v9 }
  0xe5   :  { %3460 = vst.msk [vmem:[#allocation3] sm:$0xff] %vm5822_vm13, %v4904_v16  ;;  %3461 = vst.msk [vmem:[#allocation3 + $0x8] sm:$0xff] %vm5822_vm13, %v4981_v24  ;;  %v2124_v4 = vmax.f32 %v2122_v7, %v2123_v11  ;;  %v2131_v47 = vmax.f32 %v2129_v37, %v2130_v49  ;;  %v51_v16 = vld [vmem:[%s5817_s0 + $0x130] sm:$0xff]  ;;  %v2873_v0 = vsel %vm2813_vm5, %v2106_v6, %v2872_v63  ;;  %v52_v24 = vld [vmem:[%s5817_s0 + $0x138] sm:$0xff]  ;;  %vm5821_vm14 = vcmask 228544  }
  0xe6   :  { %3423 = vrot.lane.b32.xlu0 %v4913_v48, %s4268_s21  ;;  %v767_v3 = vrot.slane %v753_v46, %v4400_v27  ;;  %v768_v40 = vcombine.high %v760_v58, %v760_v58  ;;  %v2134_v23 = vsel %vm1485_vm0, %v760_v58, -inf  ;;  %v2874_v2 = vsel %vm2815_vm6, %v2115_v60, %v2873_v0  ;;  %3558 = vst.msk [vmem:[#allocation3] sm:$0xff] %vm5821_vm14, %v4949_v54 }
  0xe7   :  { %3521 = vrot.lane.b32.xlu1 %v4985_v62, %s4269_s22  ;;  %v2132_v5 = vrot.slane %v2131_v47, 1  ;;  %v777_v8 = vrot.slane %v50_v32, %v4400_v27  ;;  %v5048_v48 = vrot.slane %v770_v59, %v4400_v27  ;;  %v2875_v14 = vsel %vm2817_vm7, %v2124_v4, %v2874_v2  ;;  %3559 = vst.msk [vmem:[#allocation3 + $0x8] sm:$0xff] %vm5821_vm14, %v5027_v52 }
  0xe8   :  { %v769_v62 = vcombine.high %v767_v3, %v767_v3  ;;  %v787_v33 = vcombine.high %v51_v16, %v51_v16  ;;  %v794_v17 = vrot.slane %v51_v16, %v4400_v27  ;;  %v804_v36 = vcombine.high %v52_v24, %v52_v24 }
  0xe9   :  { %v2133_v26 = vmax.f32 %v2131_v47, %v2132_v5  ;;  %v785_v35 = vcombine.high %v777_v8, %v777_v8  ;;  %v786_v56 = vcombine.high %v5048_v48, %v5048_v48  ;;  %v811_v20 = vrot.slane %v52_v24, %v4400_v27  ;;  %v2966_v24 = vld [vmem:[#allocation2 + $0x70] sm:$0xff] }
  0xea   :  { %v801_v34 = vrot.slane %v787_v33, %v4400_v27  ;;  %v802_v39 = vcombine.high %v794_v17, %v794_v17  ;;  %v2135_v41 = vsel %vm1485_vm0, %v794_v17, -inf  ;;  %v3224_v13 = vpop.permute.xlu0 %3223  ;;  %v5059_v43 = vrot.slane %v804_v36, %v4400_v27  ;;  %2982 = vst.msk [vmem:[#allocation3 + $0x38] sm:$0xff] %vm2638_vm1, %v2966_v24  ;;  %v5090_v17 = vld [vmem:[#allocation2 + $0x82] sm:$0xff] }
  0xeb   :  { %v3321_v29 = vpop.permute.xlu1 %3320  ;;  %v2876_v42 = vsel %vm2819_vm8, %v2133_v26, %v2875_v14  ;;  %v2136_v44 = vmax.f32 %v2134_v23, %v2135_v41  ;;  %v2143_v28 = vsel %vm1485_vm0, %v768_v40, -inf  ;;  %3269 = vst.msk [vmem:[#allocation3 + $0x18] sm:$0xff] %vm3265_vm11, %v3224_v13  ;;  %v819_v25 = vcombine.high %v811_v20, %v811_v20 }
  0xec   :  { %2951 = vst.msk [vmem:[#allocation2 + $0xb1] sm:$0xff] %vm2638_vm1, %v2876_v42  ;;  %v803_v45 = vcombine.high %v801_v34, %v801_v34  ;;  %v2144_v22 = vsel %vm1485_vm0, %v802_v39, -inf  ;;  %v2152_v30 = vsel %vm1485_vm0, %v767_v3, -inf  ;;  %v820_v38 = vcombine.high %v5059_v43, %v5059_v43 }
  0xed   :  { %3366 = vst.msk [vmem:[#allocation3 + $0x18] sm:$0xff] %vm3362_vm12, %v3321_v29  ;;  %v2137_v53 = vrot.slane %v2136_v44, 4  ;;  %v2145_v21 = vmax.f32 %v2143_v28, %v2144_v22  ;;  %v2153_v55 = vsel %vm1485_vm0, %v801_v34, -inf  ;;  %v2161_v10 = vsel %vm1485_vm0, %v769_v62, -inf }
  0xee   :  { %v2154_v18 = vmax.f32 %v2152_v30, %v2153_v55  ;;  %v2162_v1 = vsel %vm1485_vm0, %v803_v45, -inf  ;;  %v2170_v7 = vsel %vm1485_vm0, %v777_v8, -inf  ;;  %v5073_v37 = vpop.permute.xlu0 %3608  ;;  %v2171_v15 = vsel %vm1485_vm0, %v811_v20, -inf }
  0xef   :  { %v5075_v50 = vpop.permute.xlu1 %3705  ;;  %v2138_v32 = vmax.f32 %v2136_v44, %v2137_v53  ;;  %v2146_v57 = vrot.slane %v2145_v21, 4  ;;  %v2163_v51 = vmax.f32 %v2161_v10, %v2162_v1  ;;  %v2172_v31 = vmax.f32 %v2170_v7, %v2171_v15  ;;  %v54_v15 = vld [vmem:[%s5817_s0 + $0x148] sm:$0xff] }
  0xf0   :  { %v2155_v6 = vrot.slane %v2154_v18, 4  ;;  %v2179_v11 = vsel %vm1485_vm0, %v785_v35, -inf  ;;  %v2180_v49 = vsel %vm1485_vm0, %v819_v25, -inf  ;;  %v2188_v47 = vsel %vm1485_vm0, %v5048_v48, -inf }
  0xf1   :  { %v2139_v9 = vrot.slane %v2138_v32, 2  ;;  %v2147_v46 = vmax.f32 %v2145_v21, %v2146_v57  ;;  %v2164_v58 = vrot.slane %v2163_v51, 4  ;;  %v2181_v59 = vmax.f32 %v2179_v11, %v2180_v49 }
  0xf2   :  { %v2156_v60 = vmax.f32 %v2154_v18, %v2155_v6  ;;  %v2173_v4 = vrot.slane %v2172_v31, 4  ;;  %v2189_v63 = vsel %vm1485_vm0, %v5059_v43, -inf  ;;  %v3032_v16 = vpop.permute.xlu0 %3031  ;;  %v2197_v33 = vsel %vm1485_vm0, %v786_v56, -inf }
  0xf3   :  { %v3129_v0 = vpop.permute.xlu1 %3128  ;;  %v3000_v3 = vld [vmem:[#allocation2 + $0xb1] sm:$0xff]  ;;  %v2140_v23 = vmax.f32 %v2138_v32, %v2139_v9  ;;  %v2148_v5 = vrot.slane %v2147_v46, 2  ;;  %v2165_v2 = vmax.f32 %v2163_v51, %v2164_v58  ;;  %v2182_v8 = vrot.slane %v2181_v59, 4  ;;  %3076 = vst.msk [vmem:[#allocation3 + $0x20] sm:$0xff] %vm3071_vm9, %v3032_v16 }
  0xf4   :  { %v3193_v40 = vld [vmem:[#allocation2 + $0xb0] sm:$0xff]  ;;  %3041 = vrot.lane.b32.xlu0 %v3000_v3, %s4265_s14  ;;  %v2157_v48 = vrot.slane %v2156_v60, 2  ;;  %v2174_v14 = vmax.f32 %v2172_v31, %v2173_v4  ;;  %v2190_v62 = vmax.f32 %v2188_v47, %v2189_v63  ;;  %3173 = vst.msk [vmem:[#allocation3 + $0x20] sm:$0xff] %vm5823_vm10, %v3129_v0  ;;  %v2198_v13 = vsel %vm1485_vm0, %v820_v38, -inf  ;;  %v56_v47 = vld [vmem:[%s5817_s0 + $0x158] sm:$0xff] }
  0xf5   :  { %3233 = vrot.lane.b32.xlu1 %v3193_v40, %s4266_s15  ;;  %v2141_v26 = vrot.slane %v2140_v23, 1  ;;  %v2149_v35 = vmax.f32 %v2147_v46, %v2148_v5  ;;  %v2166_v36 = vrot.slane %v2165_v2, 2  ;;  %v2183_v34 = vmax.f32 %v2181_v59, %v2182_v8  ;;  %v5098_v53 = vld [vmem:[#allocation2 + $0xb2] sm:$0xff] }
  0xf6   :  { %v2158_v39 = vmax.f32 %v2156_v60, %v2157_v48  ;;  %v2175_v20 = vrot.slane %v2174_v14, 2  ;;  %v2191_v41 = vrot.slane %v2190_v62, 4  ;;  %v3416_v29 = vpop.permute.xlu0 %3415  ;;  %v2199_v30 = vmax.f32 %v2197_v33, %v2198_v13  ;;  %v3484_v31 = vld [vmem:[#allocation2 + $0x90] sm:$0xff] }
  0xf7   :  { %v2142_v42 = vmax.f32 %v2140_v23, %v2141_v26  ;;  %v2150_v43 = vrot.slane %v2149_v35, 1  ;;  %v2167_v44 = vmax.f32 %v2165_v2, %v2166_v36  ;;  %v2184_v28 = vrot.slane %v2183_v34, 2  ;;  %3462 = vst.msk [vmem:[#allocation3 + $0x10] sm:$0xff] %vm5822_vm13, %v3416_v29  ;;  %v3514_v56 = vpop.permute.xlu1 %3513 }
  0xf8   :  { %3425 = vrot.lane.b32.xlu0 %v5090_v17, %s4268_s21  ;;  %v2159_v45 = vrot.slane %v2158_v39, 1  ;;  %v2176_v25 = vmax.f32 %v2174_v14, %v2175_v20  ;;  %v2192_v22 = vmax.f32 %v2190_v62, %v2191_v41  ;;  %v2200_v7 = vrot.slane %v2199_v30, 4  ;;  %3560 = vst.msk [vmem:[#allocation3 + $0x10] sm:$0xff] %vm5821_vm14, %v3514_v56 }
  0xf9   :  { %3618 = vrot.lane.b32.xlu1 %v4987_v12, %s4270_s25  ;;  %v2151_v38 = vmax.f32 %v2149_v35, %v2150_v43  ;;  %v2168_v21 = vrot.slane %v2167_v44, 1  ;;  %v2185_v55 = vmax.f32 %v2183_v34, %v2184_v28  ;;  %v53_v12 = vld [vmem:[%s5817_s0 + $0x140] sm:$0xff]  ;;  %vm3654_vm15 = vcmask 261344  }
  0xfa   :  { %v2160_v18 = vmax.f32 %v2158_v39, %v2159_v45  ;;  %v2177_v10 = vrot.slane %v2176_v25, 1  ;;  %v2193_v1 = vrot.slane %v2192_v22, 2  ;;  %v2201_v6 = vmax.f32 %v2199_v30, %v2200_v7  ;;  %3655 = vst.msk [vmem:[#allocation3] sm:$0xff] %vm3654_vm15, %v4983_v61  ;;  %3656 = vst.msk [vmem:[#allocation3 + $0x8] sm:$0xff] %vm3654_vm15, %v5073_v37  ;;  %v55_v37 = vld [vmem:[%s5817_s0 + $0x150] sm:$0xff] }
  0xfb   :  { %v2169_v32 = vmax.f32 %v2167_v44, %v2168_v21  ;;  %v2186_v57 = vrot.slane %v2185_v55, 1  ;;  %v2877_v51 = vsel %vm2807_vm2, %v2151_v38, %v2142_v42  ;;  %vm5824_vm14 = vcmask 294144  }
  0xfc   :  { %3138 = vrot.lane.b32.xlu0 %v5098_v53, %s4264_s13  ;;  %v2178_v54 = vmax.f32 %v2176_v25, %v2177_v10  ;;  %v2194_v52 = vmax.f32 %v2192_v22, %v2193_v1  ;;  %v2878_v49 = vsel %vm2809_vm3, %v2160_v18, %v2877_v51  ;;  %v821_v9 = vcombine.high %v53_v12, %v53_v12 }
  0xfd   :  { %3330 = vrot.lane.b32.xlu1 %v3000_v3, %s4267_s16  ;;  %v2187_v11 = vmax.f32 %v2185_v55, %v2186_v57  ;;  %v828_v46 = vrot.slane %v53_v12, %v4400_v27  ;;  %3752 = vst.msk [vmem:[#allocation3] sm:$0xff] %vm5824_vm14, %v5029_v19  ;;  %3753 = vst.msk [vmem:[#allocation3 + $0x8] sm:$0xff] %vm5824_vm14, %v5075_v50  ;;  %v2202_v59 = vrot.slane %v2201_v6, 2 }
  0xfe   :  { %v2195_v58 = vrot.slane %v2194_v52, 1  ;;  %v2879_v61 = vsel %vm2811_vm4, %v2169_v32, %v2878_v49  ;;  %v838_v60 = vcombine.high %v54_v15, %v54_v15  ;;  %v835_v19 = vrot.slane %v821_v9, %v4400_v27 }
  0xff   :  { %v2880_v4 = vsel %vm2813_vm5, %v2178_v54, %v2879_v61  ;;  %v836_v63 = vcombine.high %v828_v46, %v828_v46  ;;  %v845_v50 = vrot.slane %v54_v15, %v4400_v27  ;;  %v2203_v0 = vmax.f32 %v2201_v6, %v2202_v59 }
 0x100   :  { %3523 = vrot.lane.b32.xlu0 %v3484_v31, %s4269_s22  ;;  %v2196_v16 = vmax.f32 %v2194_v52, %v2195_v58  ;;  %v2881_v24 = vsel %vm2815_vm6, %v2187_v11, %v2880_v4  ;;  %v2206_v3 = vsel %vm1485_vm0, %v828_v46, -inf  ;;  %v837_v40 = vcombine.high %v835_v19, %v835_v19 }
 0x101   :  { %3715 = vrot.lane.b32.xlu1 %v5090_v17, %s4271_s5  ;;  %v852_v23 = vrot.slane %v838_v60, %v4400_v27  ;;  %v853_v5 = vcombine.high %v845_v50, %v845_v50  ;;  %v855_v2 = vcombine.high %v55_v37, %v55_v37  ;;  %v2204_v8 = vrot.slane %v2203_v0, 1 }
 0x102   :  { %v2882_v48 = vsel %vm2817_vm7, %v2196_v16, %v2881_v24  ;;  %v862_v14 = vrot.slane %v55_v37, %v4400_v27  ;;  %v872_v62 = vcombine.high %v56_v47, %v56_v47  ;;  %v879_v35 = vrot.slane %v56_v47, %v4400_v27 }
 0x103   :  { %v854_v33 = vcombine.high %v852_v23, %v852_v23  ;;  %v869_v26 = vrot.slane %v855_v2, %v4400_v27  ;;  %v2215_v17 = vsel %vm1485_vm0, %v836_v63, -inf  ;;  %v2205_v36 = vmax.f32 %v2203_v0, %v2204_v8  ;;  %v3034_v41 = vpop.permute.xlu0 %3033 }
 0x104   :  { %v870_v34 = vcombine.high %v862_v14, %v862_v14  ;;  %v886_v39 = vrot.slane %v872_v62, %v4400_v27  ;;  %v2207_v20 = vsel %vm1485_vm0, %v862_v14, -inf  ;;  %v3226_v13 = vpop.permute.xlu1 %3225  ;;  %v887_v42 = vcombine.high %v879_v35, %v879_v35  ;;  %3077 = vst.msk [vmem:[#allocation3 + $0x28] sm:$0xff] %vm3071_vm9, %v3034_v41  ;;  %v3581_v14 = vld [vmem:[#allocation2 + $0x91] sm:$0xff] }
 0x105   :  { %v871_v29 = vcombine.high %v869_v26, %v869_v26  ;;  %v2208_v43 = vmax.f32 %v2206_v3, %v2207_v20  ;;  %v2224_v44 = vsel %vm1485_vm0, %v835_v19, -inf  ;;  %3270 = vst.msk [vmem:[#allocation3 + $0x20] sm:$0xff] %vm3265_vm11, %v3226_v13  ;;  %v2883_v28 = vsel %vm2819_vm8, %v2205_v36, %v2882_v48  ;;  %v3678_v62 = vld [vmem:[#allocation2 + $0x92] sm:$0xff] }
 0x106   :  { %v888_v56 = vcombine.high %v886_v39, %v886_v39  ;;  %v2216_v45 = vsel %vm1485_vm0, %v870_v34, -inf  ;;  %v2225_v25 = vsel %vm1485_vm0, %v869_v26, -inf  ;;  %2952 = vst.msk [vmem:[#allocation2 + $0xc1] sm:$0xff] %vm2638_vm1, %v2883_v28  ;;  %v2233_v21 = vsel %vm1485_vm0, %v837_v40, -inf }
 0x107   :  { %v2209_v22 = vrot.slane %v2208_v43, 4  ;;  %v2217_v30 = vmax.f32 %v2215_v17, %v2216_v45  ;;  %v2226_v38 = vmax.f32 %v2224_v44, %v2225_v25  ;;  %v2234_v55 = vsel %vm1485_vm0, %v871_v29, -inf  ;;  %v3418_v7 = vpop.permute.xlu0 %3417  ;;  %v3788_v29 = vld [vmem:[%s5818_s1 + $0x20] sm:$0xf] }
 0x108   :  { %v2242_v18 = vsel %vm1485_vm0, %v845_v50, -inf  ;;  %v2243_v10 = vsel %vm1485_vm0, %v879_v35, -inf  ;;  %v2251_v1 = vsel %vm1485_vm0, %v853_v5, -inf  ;;  %v3611_v12 = vpop.permute.xlu1 %3610  ;;  %v2235_v15 = vmax.f32 %v2233_v21, %v2234_v55  ;;  %3463 = vst.msk [vmem:[#allocation3 + $0x18] sm:$0xff] %vm5822_vm13, %v3418_v7 }
 0x109   :  { %v2210_v32 = vmax.f32 %v2208_v43, %v2209_v22  ;;  %v2218_v57 = vrot.slane %v2217_v30, 4  ;;  %v2227_v51 = vrot.slane %v2226_v38, 4  ;;  %3657 = vst.msk [vmem:[#allocation3 + $0x10] sm:$0xff] %vm3654_vm15, %v3611_v12  ;;  %v2244_v54 = vmax.f32 %v2242_v18, %v2243_v10 }
 0x10a   :  { %v2252_v52 = vsel %vm1485_vm0, %v887_v42, -inf  ;;  %v2260_v6 = vsel %vm1485_vm0, %v852_v23, -inf  ;;  %v2261_v31 = vsel %vm1485_vm0, %v886_v39, -inf  ;;  %v2236_v46 = vrot.slane %v2235_v15, 4 }
 0x10b   :  { %v2211_v11 = vrot.slane %v2210_v32, 2  ;;  %v2219_v49 = vmax.f32 %v2217_v30, %v2218_v57  ;;  %v2228_v9 = vmax.f32 %v2226_v38, %v2227_v51  ;;  %v2245_v58 = vrot.slane %v2244_v54, 4  ;;  %v3131_v60 = vpop.permute.xlu0 %3130  ;;  %v5190_v30 = vld [vmem:[%s5818_s1 + $0x18] sm:$0xff] }
 0x10c   :  { %v2253_v59 = vmax.f32 %v2251_v1, %v2252_v52  ;;  %v2262_v61 = vmax.f32 %v2260_v6, %v2261_v31  ;;  %v2269_v37 = vsel %vm1485_vm0, %v854_v33, -inf  ;;  %v3323_v4 = vpop.permute.xlu1 %3322  ;;  %v2237_v50 = vmax.f32 %v2235_v15, %v2236_v46  ;;  %3174 = vst.msk [vmem:[#allocation3 + $0x28] sm:$0xff] %vm5823_vm10, %v3131_v60  ;;  %v2967_v1 = vld [vmem:[#allocation2 + $0xa0] sm:$0xff]  ;;  %v58_v6 = vld [vmem:[%s5817_s0 + $0x168] sm:$0xff]  ;;  %v5207_v31 = vld [vmem:[%s5818_s1 + $0x10] sm:$0xff] }
 0x10d   :  { %v2212_v47 = vmax.f32 %v2210_v32, %v2211_v11  ;;  %v2220_v19 = vrot.slane %v2219_v49, 2  ;;  %v2229_v63 = vrot.slane %v2228_v9, 2  ;;  %3367 = vst.msk [vmem:[#allocation3 + $0x20] sm:$0xff] %vm3362_vm12, %v3323_v4  ;;  %v5168_v16 = vld [vmem:[#allocation2 + $0xc0] sm:$0xff]  ;;  %v2246_v24 = vmax.f32 %v2244_v54, %v2245_v58 }
 0x10e   :  { %v5170_v0 = vld [vmem:[#allocation2 + $0xc1] sm:$0xff]  ;;  %v2254_v3 = vrot.slane %v2253_v59, 4  ;;  %v2263_v40 = vrot.slane %v2262_v61, 4  ;;  %v2270_v23 = vsel %vm1485_vm0, %v888_v56, -inf  ;;  %3235 = vrot.lane.b32.xlu0 %v5168_v16, %s4266_s15  ;;  %v2238_v48 = vrot.slane %v2237_v50, 2  ;;  %2983 = vst.msk [vmem:[#allocation3 + $0x40] sm:$0xff] %vm2638_vm1, %v2967_v1 }
 0x10f   :  { %3332 = vrot.lane.b32.xlu1 %v5170_v0, %s4267_s16  ;;  %v2213_v5 = vrot.slane %v2212_v47, 1  ;;  %v2221_v2 = vmax.f32 %v2219_v49, %v2220_v19  ;;  %v2230_v8 = vmax.f32 %v2228_v9, %v2229_v63  ;;  %v2247_v33 = vrot.slane %v2246_v24, 2  ;;  %v3516_v36 = vpop.permute.xlu0 %3515  ;;  %v57_v56 = vld [vmem:[%s5817_s0 + $0x160] sm:$0xff]  ;;  %v59_v49 = vld [vmem:[%s5817_s0 + $0x170] sm:$0xff] }
 0x110   :  { %v2255_v26 = vmax.f32 %v2253_v59, %v2254_v3  ;;  %v2264_v35 = vmax.f32 %v2262_v61, %v2263_v40  ;;  %v2271_v17 = vmax.f32 %v2269_v37, %v2270_v23  ;;  %v3708_v34 = vpop.permute.xlu1 %3707  ;;  %v2239_v13 = vmax.f32 %v2237_v50, %v2238_v48  ;;  %v5192_v38 = vld [vmem:[#allocation2 + $0xc2] sm:$0xff] }
 0x111   :  { %v2214_v39 = vmax.f32 %v2212_v47, %v2213_v5  ;;  %v2222_v20 = vrot.slane %v2221_v2, 1  ;;  %v2231_v41 = vrot.slane %v2230_v8, 1  ;;  %vm5825_vm13 = vcmask 228544   ;;  %3754 = vst.msk [vmem:[#allocation3 + $0x10] sm:$0xff] %vm5824_vm14, %v3708_v34  ;;  %v60_v47 = vld [vmem:[%s5817_s0 + $0x178] sm:$0xff] }
 0x112   :  { %3561 = vst.msk [vmem:[#allocation3 + $0x18] sm:$0xff] %vm5825_vm13, %v3516_v36  ;;  %v2248_v42 = vmax.f32 %v2246_v24, %v2247_v33  ;;  %v2256_v43 = vrot.slane %v2255_v26, 2  ;;  %v2265_v44 = vrot.slane %v2264_v35, 2  ;;  %v2272_v28 = vrot.slane %v2271_v17, 4  ;;  %3620 = vrot.lane.b32.xlu0 %v3581_v14, %s4270_s25  ;;  %v3785_v24 = vld [vmem:[%s5818_s1 + $0x8] sm:$0xff] }
 0x113   :  { %3717 = vrot.lane.b32.xlu1 %v3678_v62, %s4271_s5  ;;  %v2223_v45 = vmax.f32 %v2221_v2, %v2222_v20  ;;  %v2232_v25 = vmax.f32 %v2230_v8, %v2231_v41  ;;  %v2240_v22 = vrot.slane %v2239_v13, 1  ;;  %vm3838_vm10 = vcmask 1043456   ;;  %v3784_v62 = vld [vmem:[%s5818_s1] sm:$0xff] }
 0x114   :  { %v2249_v21 = vrot.slane %v2248_v42, 1  ;;  %v2257_v55 = vmax.f32 %v2255_v26, %v2256_v43  ;;  %v2266_v18 = vmax.f32 %v2264_v35, %v2265_v44  ;;  %v2273_v10 = vmax.f32 %v2271_v17, %v2272_v28  ;;  %4144 = vmatprep.subr.msk.mxu0 %vm3838_vm10, %v3788_v29  ;;  %4178 = vmatprep.subr.msk.mxu1 %vm3838_vm10, %v3788_v29 }
 0x115   :  { %v2241_v7 = vmax.f32 %v2239_v13, %v2240_v22  ;;  %v2884_v12 = vsel %vm2807_vm2, %v2223_v45, %v2214_v39  ;;  %4145 = vmatpush3.msk.msra.mxu0 %vm3838_vm10, %v3788_v29  ;;  %v889_v32 = vcombine.high %v57_v56, %v57_v56  ;;  %v896_v57 = vrot.slane %v57_v56, %v4400_v27 }
 0x116   :  { %v2250_v51 = vmax.f32 %v2248_v42, %v2249_v21  ;;  %v2258_v15 = vrot.slane %v2257_v55, 1  ;;  %v2267_v54 = vrot.slane %v2266_v18, 1  ;;  %v2274_v52 = vrot.slane %v2273_v10, 2  ;;  %4146 = vmatprep.subr.mxu0 %v5190_v30  ;;  %4183 = vmatpush3.msk.msra.mxu1 %vm3838_vm10, %v3788_v29 }
 0x117   :  { %3043 = vrot.lane.b32.xlu0 %v5170_v0, %s4265_s14  ;;  %3140 = vrot.lane.b32.xlu1 %v5192_v38, %s4264_s13  ;;  %v2885_v11 = vsel %vm2809_vm3, %v2232_v25, %v2884_v12  ;;  %v903_v9 = vrot.slane %v889_v32, %v4400_v27  ;;  %v904_v46 = vcombine.high %v896_v57, %v896_v57  ;;  %v2278_v58 = vsel %vm1485_vm0, %v896_v57, -inf }
 0x118   :  { %v2259_v59 = vmax.f32 %v2257_v55, %v2258_v15  ;;  %v2268_v61 = vmax.f32 %v2266_v18, %v2267_v54  ;;  %v2275_v37 = vmax.f32 %v2273_v10, %v2274_v52  ;;  %v2886_v60 = vsel %vm2811_vm4, %v2241_v7, %v2885_v11  ;;  %4147 = vmatpush3.msra.mxu0 %v5190_v30 }
 0x119   :  { %v2887_v4 = vsel %vm2813_vm5, %v2250_v51, %v2886_v60  ;;  %v905_v19 = vcombine.high %v903_v9, %v903_v9  ;;  %v906_v63 = vcombine.high %v58_v6, %v58_v6  ;;  %v913_v50 = vrot.slane %v58_v6, %v4400_v27  ;;  %4148 = vmatprep.subr.mxu0 %v5207_v31 }
 0x11a   :  { %v2276_v3 = vrot.slane %v2275_v37, 1  ;;  %v2888_v40 = vsel %vm2815_vm6, %v2259_v59, %v2887_v4  ;;  %v923_v23 = vcombine.high %v59_v49, %v59_v49  ;;  %v930_v5 = vrot.slane %v59_v49, %v4400_v27  ;;  %4149 = vmatpush3.msra.mxu0 %v5207_v31  ;;  %4179 = vmatprep.subr.mxu1 %v5190_v30  ;;  %v2968_v4 = vld [vmem:[#allocation2 + $0xb0] sm:$0xff] }
 0x11b   :  { %3427 = vrot.lane.b32.xlu0 %v5098_v53, %s4268_s21  ;;  %v2889_v2 = vsel %vm2817_vm7, %v2268_v61, %v2888_v40  ;;  %3525 = vrot.lane.b32.xlu1 %v5168_v16, %s4269_s22  ;;  %v5241_v8 = vrot.slane %v906_v63, %v4400_v27  ;;  %v921_v48 = vcombine.high %v913_v50, %v913_v50  ;;  %v2287_v14 = vsel %vm1485_vm0, %v904_v46, -inf }
 0x11c   :  { %v2277_v33 = vmax.f32 %v2275_v37, %v2276_v3  ;;  %v937_v26 = vrot.slane %v923_v23, %v4400_v27  ;;  %v938_v35 = vcombine.high %v930_v5, %v930_v5  ;;  %v940_v53 = vcombine.high %v60_v47, %v60_v47  ;;  %4150 = vmatprep.subr.mxu0 %v3785_v24 }
 0x11d   :  { %v922_v17 = vcombine.high %v5241_v8, %v5241_v8  ;;  %v947_v16 = vrot.slane %v60_v47, %v4400_v27  ;;  %v2279_v36 = vsel %vm1485_vm0, %v930_v5, -inf  ;;  %v2296_v34 = vsel %vm1485_vm0, %v903_v9, -inf  ;;  %4151 = vmatpush3.msra.mxu0 %v3785_v24  ;;  %v3228_v39 = vpop.permute.xlu0 %3227  ;;  %4184 = vmatpush3.msra.mxu1 %v5190_v30  ;;  %2984 = vst.msk [vmem:[#allocation3 + $0x48] sm:$0xff] %vm2638_vm1, %v2968_v4 }
 0x11e   :  { %v3325_v20 = vpop.permute.xlu1 %3324  ;;  %v2890_v41 = vsel %vm2819_vm8, %v2277_v33, %v2889_v2  ;;  %v939_v13 = vcombine.high %v937_v26, %v937_v26  ;;  %v954_v29 = vrot.slane %v940_v53, %v4400_v27  ;;  %v2280_v42 = vmax.f32 %v2278_v58, %v2279_v36  ;;  %4152 = vmatprep.subr.mxu0 %v3784_v62 }
 0x11f   :  { %3271 = vst.msk [vmem:[#allocation3 + $0x28] sm:$0xff] %vm3265_vm11, %v3228_v39  ;;  %v955_v43 = vcombine.high %v947_v16, %v947_v16  ;;  %v2288_v44 = vsel %vm1485_vm0, %v938_v35, -inf  ;;  %v2297_v28 = vsel %vm1485_vm0, %v937_v26, -inf  ;;  %v2305_v56 = vsel %vm1485_vm0, %v905_v19, -inf  ;;  %4153 = vmatpush3.msra.mxu0 %v3784_v62  ;;  %4180 = vmatprep.subr.mxu1 %v5207_v31 }
 0x120   :  { %2953 = vst.msk [vmem:[#allocation2 + $0xd1] sm:$0xff] %vm2638_vm1, %v2890_v41  ;;  %v956_v45 = vcombine.high %v954_v29, %v954_v29  ;;  %v2281_v25 = vrot.slane %v2280_v42, 4  ;;  %v2289_v22 = vmax.f32 %v2287_v14, %v2288_v44  ;;  %v2298_v30 = vmax.f32 %v2296_v34, %v2297_v28  ;;  %4185 = vmatpush3.msra.mxu1 %v5207_v31  ;;  %v3768_v41 = vld [vmem:[#allocation3] sm:$0xff]  ;;  %v3769_v44 = vld [vmem:[#allocation3 + $0x8] sm:$0xff] }
 0x121   :  { %3368 = vst.msk [vmem:[#allocation3 + $0x28] sm:$0xff] %vm3362_vm12, %v3325_v20  ;;  %v2306_v21 = vsel %vm1485_vm0, %v939_v13, -inf  ;;  %v2314_v55 = vsel %vm1485_vm0, %v913_v50, -inf  ;;  %v2315_v18 = vsel %vm1485_vm0, %v947_v16, -inf  ;;  %v2323_v10 = vsel %vm1485_vm0, %v921_v48, -inf  ;;  %v3613_v1 = vpop.permute.xlu0 %3612  ;;  %4181 = vmatprep.subr.mxu1 %v3785_v24  ;;  %v61_v28 = vld [vmem:[%s5817_s0 + $0x180] sm:$0xff] }
 0x122   :  { %v3710_v7 = vpop.permute.xlu1 %3709  ;;  %v2282_v12 = vmax.f32 %v2280_v42, %v2281_v25  ;;  %v2290_v32 = vrot.slane %v2289_v22, 4  ;;  %v2299_v57 = vrot.slane %v2298_v30, 4  ;;  %v2307_v51 = vmax.f32 %v2305_v56, %v2306_v21  ;;  %3658 = vst.msk [vmem:[#allocation3 + $0x18] sm:$0xff] %vm3654_vm15, %v3613_v1  ;;  %4186 = vmatpush3.msra.mxu1 %v3785_v24 }
 0x123   :  { %v2316_v15 = vmax.f32 %v2314_v55, %v2315_v18  ;;  %v2324_v54 = vsel %vm1485_vm0, %v955_v43, -inf  ;;  %v2332_v52 = vsel %vm1485_vm0, %v5241_v8, -inf  ;;  %v2333_v6 = vsel %vm1485_vm0, %v954_v29, -inf  ;;  %3755 = vst.msk [vmem:[#allocation3 + $0x18] sm:$0xff] %vm5824_vm14, %v3710_v7  ;;  %4182 = vmatprep.subr.mxu1 %v3784_v62  ;;  %v62_v18 = vld [vmem:[%s5817_s0 + $0x188] sm:$0xff] }
 0x124   :  { %v2283_v31 = vrot.slane %v2282_v12, 2  ;;  %v2291_v11 = vmax.f32 %v2289_v22, %v2290_v32  ;;  %v2300_v49 = vmax.f32 %v2298_v30, %v2299_v57  ;;  %v2308_v9 = vrot.slane %v2307_v51, 4  ;;  %4187 = vmatpush3.msra.mxu1 %v3784_v62 }
 0x125   :  { %v2317_v46 = vrot.slane %v2316_v15, 4  ;;  %v2325_v58 = vmax.f32 %v2323_v10, %v2324_v54  ;;  %v2334_v59 = vmax.f32 %v2332_v52, %v2333_v6  ;;  %v2341_v61 = vsel %vm1485_vm0, %v922_v17, -inf  ;;  %v3036_v37 = vpop.permute.xlu0 %3035  ;;  %v3770_v10 = vld [vmem:[#allocation3 + $0x10] sm:$0xff] }
 0x126   :  { %v3133_v60 = vpop.permute.xlu1 %3132  ;;  %v2284_v63 = vmax.f32 %v2282_v12, %v2283_v31  ;;  %v2292_v50 = vrot.slane %v2291_v11, 2  ;;  %v2301_v24 = vrot.slane %v2300_v49, 2  ;;  %v2309_v3 = vmax.f32 %v2307_v51, %v2308_v9  ;;  %3078 = vst.msk [vmem:[#allocation3 + $0x30] sm:$0xff] %vm3071_vm9, %v3036_v37  ;;  %v63_v31 = vld [vmem:[%s5817_s0 + $0x190] sm:$0xff]  ;;  %v64_v37 = vld [vmem:[%s5817_s0 + $0x198] sm:$0xff] }
 0x127   :  { %v5275_v47 = vld [vmem:[#allocation2 + $0xd1] sm:$0xff]  ;;  %v2318_v40 = vmax.f32 %v2316_v15, %v2317_v46  ;;  %v2326_v23 = vrot.slane %v2325_v58, 4  ;;  %v2335_v5 = vrot.slane %v2334_v59, 4  ;;  %v2342_v2 = vsel %vm1485_vm0, %v956_v45, -inf }
 0x128   :  { %v5277_v19 = vld [vmem:[#allocation2 + $0xd0] sm:$0xff]  ;;  %3045 = vrot.lane.b32.xlu0 %v5275_v47, %s4265_s14  ;;  %vm5826_vm10 = vcmask 97344   ;;  %v2285_v8 = vrot.slane %v2284_v63, 1  ;;  %v2293_v48 = vmax.f32 %v2291_v11, %v2292_v50  ;;  %v2302_v14 = vmax.f32 %v2300_v49, %v2301_v24 }
 0x129   :  { %3237 = vrot.lane.b32.xlu1 %v5277_v19, %s4266_s15  ;;  %3175 = vst.msk [vmem:[#allocation3 + $0x30] sm:$0xff] %vm5826_vm10, %v3133_v60  ;;  %v2310_v62 = vrot.slane %v2309_v3, 2  ;;  %v2319_v33 = vrot.slane %v2318_v40, 2  ;;  %v2327_v26 = vmax.f32 %v2325_v58, %v2326_v23  ;;  %v2336_v35 = vmax.f32 %v2334_v59, %v2335_v5  ;;  %v3420_v17 = vpop.permute.xlu0 %3419  ;;  %v5296_v56 = vld [vmem:[#allocation2 + $0xd2] sm:$0xff] }
 0x12a   :  { %v2343_v53 = vmax.f32 %v2341_v61, %v2342_v2  ;;  %v3518_v16 = vpop.permute.xlu1 %3517  ;;  %v2286_v36 = vmax.f32 %v2284_v63, %v2285_v8  ;;  %v2294_v34 = vrot.slane %v2293_v48, 1  ;;  %v2303_v39 = vrot.slane %v2302_v14, 1  ;;  %v3771_v52 = vld [vmem:[#allocation3 + $0x18] sm:$0xff] }
 0x12b   :  { %v2311_v20 = vmax.f32 %v2309_v3, %v2310_v62  ;;  %vm5827_vm13 = vcmask 195744   ;;  %v2320_v13 = vmax.f32 %v2318_v40, %v2319_v33  ;;  %v2328_v29 = vrot.slane %v2327_v26, 2 }
 0x12c   :  { %3464 = vst.msk [vmem:[#allocation3 + $0x20] sm:$0xff] %vm5827_vm13, %v3420_v17  ;;  %3429 = vrot.lane.b32.xlu0 %v5192_v38, %s4268_s21  ;;  %v2337_v42 = vrot.slane %v2336_v35, 2  ;;  %v2344_v43 = vrot.slane %v2343_v53, 4  ;;  %vm5828_vm10 = vcmask 228544   ;;  %v2295_v45 = vmax.f32 %v2293_v48, %v2294_v34 }
 0x12d   :  { %3622 = vrot.lane.b32.xlu1 %v5170_v0, %s4270_s25  ;;  %3562 = vst.msk [vmem:[#allocation3 + $0x20] sm:$0xff] %vm5828_vm10, %v3518_v16  ;;  %v2304_v25 = vmax.f32 %v2302_v14, %v2303_v39  ;;  %v2312_v22 = vrot.slane %v2311_v20, 1  ;;  %vm3789_vm13 = vcmask 293888   ;;  %v2321_v30 = vrot.slane %v2320_v13, 1 }
 0x12e   :  { %v2329_v21 = vmax.f32 %v2327_v26, %v2328_v29  ;;  %v2338_v0 = vmax.f32 %v2336_v35, %v2337_v42  ;;  %v2345_v55 = vmax.f32 %v2343_v53, %v2344_v43  ;;  %4154 = vmatprep.mubr.msk.f32.mxu0 %vm3789_vm13, %v3768_v41  ;;  %v2891_v7 = vsel %vm2807_vm2, %v2295_v45, %v2286_v36 }
 0x12f   :  { %v2313_v1 = vmax.f32 %v2311_v20, %v2312_v22  ;;  %4155 = vmatmul.mubr.msk.f32.vlgmr.msra.gmra.mxu0 %vm3789_vm13, %v3769_v44  ;;  %v957_v12 = vcombine.high %v61_v28, %v61_v28  ;;  %v964_v32 = vrot.slane %v61_v28, %v4400_v27  ;;  %v2322_v57 = vmax.f32 %v2320_v13, %v2321_v30 }
 0x130   :  { %3142 = vrot.lane.b32.xlu0 %v5296_v56, %s4264_s13  ;;  %v2330_v51 = vrot.slane %v2329_v21, 1  ;;  %v2339_v15 = vrot.slane %v2338_v0, 1  ;;  %v2346_v54 = vrot.slane %v2345_v55, 2  ;;  %v2892_v6 = vsel %vm2809_vm3, %v2304_v25, %v2891_v7  ;;  %4157 = vmatprep.mubr.msk.f32.mxu0 %vm3789_vm13, %v3770_v10 }
 0x131   :  { %3334 = vrot.lane.b32.xlu1 %v5275_v47, %s4267_s16  ;;  %v971_v11 = vrot.slane %v957_v12, %v4400_v27  ;;  %v972_v49 = vcombine.high %v964_v32, %v964_v32  ;;  %v974_v9 = vcombine.high %v62_v18, %v62_v18  ;;  %v2893_v61 = vsel %vm2811_vm4, %v2313_v1, %v2892_v6 }
 0x132   :  { %v2331_v46 = vmax.f32 %v2329_v21, %v2330_v51  ;;  %v2340_v58 = vmax.f32 %v2338_v0, %v2339_v15  ;;  %v2347_v59 = vmax.f32 %v2345_v55, %v2346_v54  ;;  %v2894_v60 = vsel %vm2813_vm5, %v2322_v57, %v2893_v61 }
 0x133   :  { %v973_v4 = vcombine.high %v971_v11, %v971_v11  ;;  %v981_v63 = vrot.slane %v62_v18, %v4400_v27  ;;  %v5322_v50 = vrot.slane %v974_v9, %v4400_v27  ;;  %4158 = vmatmul.mubr.msk.f32.gmra.mxu0 %vm3789_vm13, %v3771_v52  ;;  %v991_v40 = vcombine.high %v63_v31, %v63_v31  ;;  %v2970_v9 = vld [vmem:[#allocation2 + $0xd0] sm:$0xff] }
 0x134   :  { %3527 = vrot.lane.b32.xlu0 %v5277_v19, %s4269_s22  ;;  %v2348_v24 = vrot.slane %v2347_v59, 1  ;;  %v2895_v3 = vsel %vm2815_vm6, %v2331_v46, %v2894_v60  ;;  %v998_v23 = vrot.slane %v63_v31, %v4400_v27  ;;  %v1008_v48 = vcombine.high %v64_v37, %v64_v37  ;;  %v3038_v14 = vpop.permute.xlu0 %3037  ;;  %2986 = vst.msk [vmem:[#allocation3 + $0x58] sm:$0xff] %vm2638_vm1, %v2970_v9 }
 0x135   :  { %3719 = vrot.lane.b32.xlu1 %v5192_v38, %s4271_s5  ;;  %v2896_v5 = vsel %vm2817_vm7, %v2340_v58, %v2895_v3  ;;  %v989_v2 = vcombine.high %v981_v63, %v981_v63  ;;  %v990_v8 = vcombine.high %v5322_v50, %v5322_v50  ;;  %v3230_v62 = vpop.permute.xlu1 %3229  ;;  %v1005_v19 = vrot.slane %v991_v40, %v4400_v27 }
 0x136   :  { %v2349_v33 = vmax.f32 %v2347_v59, %v2348_v24  ;;  %v1006_v26 = vcombine.high %v998_v23, %v998_v23  ;;  %v1015_v35 = vrot.slane %v64_v37, %v4400_v27  ;;  %3079 = vst.msk [vmem:[#allocation3 + $0x38] sm:$0xff] %vm3071_vm9, %v3038_v14  ;;  %v1022_v38 = vrot.slane %v1008_v48, %v4400_v27 }
 0x137   :  { %3272 = vst.msk [vmem:[#allocation3 + $0x30] sm:$0xff] %vm3265_vm11, %v3230_v62  ;;  %v2350_v53 = vsel %vm1485_vm0, %v964_v32, -inf  ;;  %v2351_v17 = vsel %vm1485_vm0, %v998_v23, -inf  ;;  %v2359_v16 = vsel %vm1485_vm0, %v972_v49, -inf  ;;  %v1007_v34 = vcombine.high %v1005_v19, %v1005_v19  ;;  %v2969_v49 = vld [vmem:[#allocation2 + $0xc0] sm:$0xff] }
 0x138   :  { %v2897_v36 = vsel %vm2819_vm8, %v2349_v33, %v2896_v5  ;;  %v1023_v39 = vcombine.high %v1015_v35, %v1015_v35  ;;  %v2352_v20 = vmax.f32 %v2350_v53, %v2351_v17  ;;  %v1024_v41 = vcombine.high %v1022_v38, %v1022_v38  ;;  %v3422_v43 = vpop.permute.xlu0 %3421  ;;  %2985 = vst.msk [vmem:[#allocation3 + $0x50] sm:$0xff] %vm2638_vm1, %v2969_v49  ;;  %v65_v17 = vld [vmem:[%s5817_s0 + $0x1a0] sm:$0xff] }
 0x139   :  { %2954 = vst.msk [vmem:[#allocation2 + $0xe1] sm:$0xff] %vm2638_vm1, %v2897_v36  ;;  %v2360_v13 = vsel %vm1485_vm0, %v1006_v26, -inf  ;;  %v2368_v29 = vsel %vm1485_vm0, %v971_v11, -inf  ;;  %v2369_v42 = vsel %vm1485_vm0, %v1005_v19, -inf  ;;  %v3615_v44 = vpop.permute.xlu1 %3614  ;;  %v2377_v22 = vsel %vm1485_vm0, %v973_v4, -inf }
 0x13a   :  { %v2353_v28 = vrot.slane %v2352_v20, 4  ;;  %v2361_v45 = vmax.f32 %v2359_v16, %v2360_v13  ;;  %v2370_v25 = vmax.f32 %v2368_v29, %v2369_v42  ;;  %vm5829_vm10 = vcmask 195744   ;;  %3659 = vst.msk [vmem:[#allocation3 + $0x20] sm:$0xff] %vm3654_vm15, %v3615_v44 }
 0x13b   :  { %3465 = vst.msk [vmem:[#allocation3 + $0x28] sm:$0xff] %vm5829_vm10, %v3422_v43  ;;  %v2378_v30 = vsel %vm1485_vm0, %v1007_v34, -inf  ;;  %v2386_v21 = vsel %vm1485_vm0, %v981_v63, -inf  ;;  %v2387_v0 = vsel %vm1485_vm0, %v1015_v35, -inf  ;;  %v2395_v55 = vsel %vm1485_vm0, %v989_v2, -inf }
 0x13c   :  { %v2354_v18 = vmax.f32 %v2352_v20, %v2353_v28  ;;  %v2362_v10 = vrot.slane %v2361_v45, 4  ;;  %v2371_v1 = vrot.slane %v2370_v25, 4  ;;  %v2379_v7 = vmax.f32 %v2377_v22, %v2378_v30  ;;  %v3135_v15 = vpop.permute.xlu0 %3134 }
 0x13d   :  { %v2388_v12 = vmax.f32 %v2386_v21, %v2387_v0  ;;  %v2396_v32 = vsel %vm1485_vm0, %v1023_v39, -inf  ;;  %v2404_v57 = vsel %vm1485_vm0, %v5322_v50, -inf  ;;  %v2405_v51 = vsel %vm1485_vm0, %v1022_v38, -inf  ;;  %v3327_v54 = vpop.permute.xlu1 %3326 }
 0x13e   :  { %v2355_v52 = vrot.slane %v2354_v18, 2  ;;  %v2363_v6 = vmax.f32 %v2361_v45, %v2362_v10  ;;  %v2372_v31 = vmax.f32 %v2370_v25, %v2371_v1  ;;  %v2380_v11 = vrot.slane %v2379_v7, 4  ;;  %3369 = vst.msk [vmem:[#allocation3 + $0x30] sm:$0xff] %vm3362_vm12, %v3327_v54  ;;  %v68_v54 = vld [vmem:[%s5817_s0 + $0x1b8] sm:$0xff] }
 0x13f   :  { %vm5830_vm10 = vcmask 97344   ;;  %v2389_v46 = vrot.slane %v2388_v12, 4  ;;  %v2397_v58 = vmax.f32 %v2395_v55, %v2396_v32  ;;  %v2406_v59 = vmax.f32 %v2404_v57, %v2405_v51  ;;  %v67_v57 = vld [vmem:[%s5817_s0 + $0x1b0] sm:$0xff] }
 0x140   :  { %3176 = vst.msk [vmem:[#allocation3 + $0x38] sm:$0xff] %vm5830_vm10, %v3135_v15  ;;  %v2413_v61 = vsel %vm1485_vm0, %v990_v8, -inf  ;;  %v5363_v37 = vld [vmem:[#allocation2 + $0xe0] sm:$0xff]  ;;  %v2356_v4 = vmax.f32 %v2354_v18, %v2355_v52  ;;  %v2364_v63 = vrot.slane %v2363_v6, 2  ;;  %v2373_v50 = vrot.slane %v2372_v31, 2  ;;  %v3520_v2 = vpop.permute.xlu0 %3519 }
 0x141   :  { %v5365_v60 = vld [vmem:[#allocation2 + $0xe1] sm:$0xff]  ;;  %v2381_v24 = vmax.f32 %v2379_v7, %v2380_v11  ;;  %3239 = vrot.lane.b32.xlu0 %v5363_v37, %s4266_s15  ;;  %v2390_v3 = vmax.f32 %v2388_v12, %v2389_v46  ;;  %v2398_v40 = vrot.slane %v2397_v58, 4  ;;  %v2407_v23 = vrot.slane %v2406_v59, 4  ;;  %v3712_v8 = vpop.permute.xlu1 %3711 }
 0x142   :  { %3336 = vrot.lane.b32.xlu1 %v5365_v60, %s4267_s16  ;;  %v2414_v5 = vsel %vm1485_vm0, %v1024_v41, -inf  ;;  %v2971_v48 = vld [vmem:[#allocation2 + $0xe0] sm:$0xff]  ;;  %v2357_v14 = vrot.slane %v2356_v4, 1  ;;  %v2365_v62 = vmax.f32 %v2363_v6, %v2364_v63  ;;  %v2374_v33 = vmax.f32 %v2372_v31, %v2373_v50  ;;  %3756 = vst.msk [vmem:[#allocation3 + $0x20] sm:$0xff] %vm5824_vm14, %v3712_v8 }
 0x143   :  { %v2382_v19 = vrot.slane %v2381_v24, 2  ;;  %vm5831_vm10 = vcmask 228544   ;;  %2987 = vst.msk [vmem:[#allocation3 + $0x60] sm:$0xff] %vm2638_vm1, %v2971_v48  ;;  %v2391_v26 = vrot.slane %v2390_v3, 2  ;;  %v2399_v35 = vmax.f32 %v2397_v58, %v2398_v40  ;;  %v5382_v42 = vld [vmem:[#allocation2 + $0xe2] sm:$0xff] }
 0x144   :  { %3563 = vst.msk [vmem:[#allocation3 + $0x28] sm:$0xff] %vm5831_vm10, %v3520_v2  ;;  %v2408_v38 = vmax.f32 %v2406_v59, %v2407_v23  ;;  %v2415_v53 = vmax.f32 %v2413_v61, %v2414_v5  ;;  %v2358_v16 = vmax.f32 %v2356_v4, %v2357_v14  ;;  %v2366_v36 = vrot.slane %v2365_v62, 1 }
 0x145   :  { %v2375_v34 = vrot.slane %v2374_v33, 1  ;;  %v2383_v39 = vmax.f32 %v2381_v24, %v2382_v19  ;;  %3624 = vrot.lane.b32.xlu0 %v5275_v47, %s4270_s25  ;;  %v2392_v20 = vmax.f32 %v2390_v3, %v2391_v26  ;;  %v2400_v41 = vrot.slane %v2399_v35, 2  ;;  %v66_v47 = vld [vmem:[%s5817_s0 + $0x1a8] sm:$0xff] }
 0x146   :  { %3721 = vrot.lane.b32.xlu1 %v5296_v56, %s4271_s5  ;;  %v2409_v13 = vrot.slane %v2408_v38, 2  ;;  %v2416_v29 = vrot.slane %v2415_v53, 4  ;;  %v2367_v43 = vmax.f32 %v2365_v62, %v2366_v36  ;;  %v1025_v45 = vcombine.high %v65_v17, %v65_v17 }
 0x147   :  { %v2376_v44 = vmax.f32 %v2374_v33, %v2375_v34  ;;  %v2384_v28 = vrot.slane %v2383_v39, 1  ;;  %v2393_v25 = vrot.slane %v2392_v20, 1  ;;  %v2401_v22 = vmax.f32 %v2399_v35, %v2400_v41 }
 0x148   :  { %v2410_v30 = vmax.f32 %v2408_v38, %v2409_v13  ;;  %v2417_v21 = vmax.f32 %v2415_v53, %v2416_v29  ;;  %v2898_v55 = vsel %vm2807_vm2, %v2367_v43, %v2358_v16  ;;  %v1032_v18 = vrot.slane %v65_v17, %v4400_v27 }
 0x149   :  { %v2385_v0 = vmax.f32 %v2383_v39, %v2384_v28  ;;  %v1039_v10 = vrot.slane %v1025_v45, %v4400_v27  ;;  %3047 = vrot.lane.b32.xlu0 %v5365_v60, %s4265_s14  ;;  %v2394_v1 = vmax.f32 %v2392_v20, %v2393_v25  ;;  %v2402_v7 = vrot.slane %v2401_v22, 1  ;;  %v3772_v51 = vld [vmem:[#allocation3 + $0x20] sm:$0xff] }
 0x14a   :  { %3144 = vrot.lane.b32.xlu1 %v5382_v42, %s4264_s13  ;;  %v2411_v12 = vrot.slane %v2410_v30, 1  ;;  %v2418_v32 = vrot.slane %v2417_v21, 2  ;;  %v2899_v15 = vsel %vm2809_vm3, %v2376_v44, %v2898_v55  ;;  %v1040_v52 = vcombine.high %v1032_v18, %v1032_v18  ;;  %4160 = vmatprep.mubr.msk.f32.mxu0 %vm3789_vm13, %v3772_v51 }
 0x14b   :  { %v1041_v6 = vcombine.high %v1039_v10, %v1039_v10  ;;  %v1042_v31 = vcombine.high %v66_v47, %v66_v47  ;;  %v2403_v11 = vmax.f32 %v2401_v22, %v2402_v7  ;;  %v2900_v46 = vsel %vm2811_vm4, %v2385_v0, %v2899_v15 }
 0x14c   :  { %v2412_v49 = vmax.f32 %v2410_v30, %v2411_v12  ;;  %v2419_v9 = vmax.f32 %v2417_v21, %v2418_v32  ;;  %v2901_v58 = vsel %vm2813_vm5, %v2394_v1, %v2900_v46  ;;  %v1049_v59 = vrot.slane %v66_v47, %v4400_v27  ;;  %v3232_v40 = vpop.permute.xlu0 %3231 }
 0x14d   :  { %v5406_v61 = vrot.slane %v1042_v31, %v4400_v27  ;;  %v1059_v4 = vcombine.high %v67_v57, %v67_v57  ;;  %3431 = vrot.lane.b32.xlu0 %v5296_v56, %s4268_s21  ;;  %v2902_v50 = vsel %vm2815_vm6, %v2403_v11, %v2901_v58  ;;  %v1066_v24 = vrot.slane %v67_v57, %v4400_v27  ;;  %v3329_v23 = vpop.permute.xlu1 %3328 }
 0x14e   :  { %v2420_v63 = vrot.slane %v2419_v9, 1  ;;  %3529 = vrot.lane.b32.xlu1 %v5363_v37, %s4269_s22  ;;  %v1076_v3 = vcombine.high %v68_v54, %v68_v54  ;;  %v2903_v5 = vsel %vm2817_vm7, %v2412_v49, %v2902_v50  ;;  %v1057_v2 = vcombine.high %v1049_v59, %v1049_v59  ;;  %3273 = vst.msk [vmem:[#allocation3 + $0x38] sm:$0xff] %vm3265_vm11, %v3232_v40 }
 0x14f   :  { %v1058_v8 = vcombine.high %v5406_v61, %v5406_v61  ;;  %v1073_v48 = vrot.slane %v1059_v4, %v4400_v27  ;;  %v1074_v14 = vcombine.high %v1066_v24, %v1066_v24  ;;  %v1083_v62 = vrot.slane %v68_v54, %v4400_v27  ;;  %3370 = vst.msk [vmem:[#allocation3 + $0x38] sm:$0xff] %vm3362_vm12, %v3329_v23 }
 0x150   :  { %v2421_v56 = vmax.f32 %v2419_v9, %v2420_v63  ;;  %v1090_v37 = vrot.slane %v1076_v3, %v4400_v27  ;;  %v2422_v19 = vsel %vm1485_vm0, %v1032_v18, -inf  ;;  %v2423_v26 = vsel %vm1485_vm0, %v1066_v24, -inf  ;;  %v3617_v36 = vpop.permute.xlu0 %3616 }
 0x151   :  { %v1075_v33 = vcombine.high %v1073_v48, %v1073_v48  ;;  %v2431_v35 = vsel %vm1485_vm0, %v1040_v52, -inf  ;;  %v1091_v53 = vcombine.high %v1083_v62, %v1083_v62  ;;  %v2424_v16 = vmax.f32 %v2422_v19, %v2423_v26  ;;  %v3714_v34 = vpop.permute.xlu1 %3713  ;;  %3660 = vst.msk [vmem:[#allocation3 + $0x28] sm:$0xff] %vm3654_vm15, %v3617_v36  ;;  %v69_v19 = vld [vmem:[%s5817_s0 + $0x1c0] sm:$0xff] }
 0x152   :  { %v2904_v38 = vsel %vm2819_vm8, %v2421_v56, %v2903_v5  ;;  %v1092_v17 = vcombine.high %v1090_v37, %v1090_v37  ;;  %v2432_v39 = vsel %vm1485_vm0, %v1074_v14, -inf  ;;  %v2440_v20 = vsel %vm1485_vm0, %v1039_v10, -inf  ;;  %3757 = vst.msk [vmem:[#allocation3 + $0x28] sm:$0xff] %vm5824_vm14, %v3714_v34 }
 0x153   :  { %2955 = vst.msk [vmem:[#allocation2 + $0xf1] sm:$0xff] %vm2638_vm1, %v2904_v38  ;;  %v2441_v41 = vsel %vm1485_vm0, %v1073_v48, -inf  ;;  %v2449_v13 = vsel %vm1485_vm0, %v1041_v6, -inf  ;;  %v2425_v29 = vrot.slane %v2424_v16, 4  ;;  %v2433_v43 = vmax.f32 %v2431_v35, %v2432_v39 }
 0x154   :  { %v2442_v44 = vmax.f32 %v2440_v20, %v2441_v41  ;;  %v2450_v28 = vsel %vm1485_vm0, %v1075_v33, -inf  ;;  %v2458_v25 = vsel %vm1485_vm0, %v1049_v59, -inf  ;;  %v2459_v22 = vsel %vm1485_vm0, %v1083_v62, -inf  ;;  %v3040_v18 = vpop.permute.xlu0 %3039 }
 0x155   :  { %v2451_v45 = vmax.f32 %v2449_v13, %v2450_v28  ;;  %v2467_v30 = vsel %vm1485_vm0, %v1057_v2, -inf  ;;  %v2426_v21 = vmax.f32 %v2424_v16, %v2425_v29  ;;  %v2434_v47 = vrot.slane %v2433_v43, 4  ;;  %v3137_v10 = vpop.permute.xlu1 %3136  ;;  %3080 = vst.msk [vmem:[#allocation3 + $0x40] sm:$0xff] %vm3071_vm9, %v3040_v18 }
 0x156   :  { %v2443_v0 = vrot.slane %v2442_v44, 4  ;;  %v2460_v55 = vmax.f32 %v2458_v25, %v2459_v22  ;;  %v2468_v7 = vsel %vm1485_vm0, %v1091_v53, -inf  ;;  %v2476_v12 = vsel %vm1485_vm0, %v5406_v61, -inf  ;;  %v70_v25 = vld [vmem:[%s5817_s0 + $0x1c8] sm:$0xff] }
 0x157   :  { %v2452_v1 = vrot.slane %v2451_v45, 4  ;;  %v2477_v32 = vsel %vm1485_vm0, %v1090_v37, -inf  ;;  %v2427_v57 = vrot.slane %v2426_v21, 2  ;;  %v2435_v51 = vmax.f32 %v2433_v43, %v2434_v47 }
 0x158   :  { %v2444_v15 = vmax.f32 %v2442_v44, %v2443_v0  ;;  %v2461_v54 = vrot.slane %v2460_v55, 4  ;;  %vm5832_vm10 = vcmask 97344   ;;  %v2469_v6 = vmax.f32 %v2467_v30, %v2468_v7  ;;  %v3424_v4 = vpop.permute.xlu0 %3423  ;;  %v72_v7 = vld [vmem:[%s5817_s0 + $0x1d8] sm:$0xff] }
 0x159   :  { %3177 = vst.msk [vmem:[#allocation3 + $0x40] sm:$0xff] %vm5832_vm10, %v3137_v10  ;;  %v2453_v52 = vmax.f32 %v2451_v45, %v2452_v1  ;;  %v2478_v31 = vmax.f32 %v2476_v12, %v2477_v32  ;;  %v2485_v11 = vsel %vm1485_vm0, %v1058_v8, -inf  ;;  %v2428_v46 = vmax.f32 %v2426_v21, %v2427_v57  ;;  %v3522_v63 = vpop.permute.xlu1 %3521  ;;  %v3773_v23 = vld [vmem:[#allocation3 + $0x28] sm:$0xff]  ;;  %v71_v10 = vld [vmem:[%s5817_s0 + $0x1d0] sm:$0xff] }
 0x15a   :  { %v5444_v49 = vld [vmem:[#allocation2 + $0xf1] sm:$0xff]  ;;  %v2436_v58 = vrot.slane %v2435_v51, 2  ;;  %v2445_v59 = vrot.slane %v2444_v15, 2  ;;  %v2462_v61 = vmax.f32 %v2460_v55, %v2461_v54  ;;  %v2470_v24 = vrot.slane %v2469_v6, 4  ;;  %4161 = vmatmul.mubr.msk.f32.gmra.mxu0 %vm3789_vm13, %v3773_v23 }
 0x15b   :  { %v5446_v9 = vld [vmem:[#allocation2 + $0xf0] sm:$0xff]  ;;  %3049 = vrot.lane.b32.xlu0 %v5444_v49, %s4265_s14  ;;  %v2454_v50 = vrot.slane %v2453_v52, 2  ;;  %v2479_v3 = vrot.slane %v2478_v31, 4  ;;  %v2486_v40 = vsel %vm1485_vm0, %v1092_v17, -inf  ;;  %vm5833_vm10 = vcmask 195744  }
 0x15c   :  { %3241 = vrot.lane.b32.xlu1 %v5446_v9, %s4266_s15  ;;  %3466 = vst.msk [vmem:[#allocation3 + $0x30] sm:$0xff] %vm5833_vm10, %v3424_v4  ;;  %v2972_v5 = vld [vmem:[#allocation2 + $0xf0] sm:$0xff]  ;;  %v2429_v2 = vrot.slane %v2428_v46, 1  ;;  %v2437_v8 = vmax.f32 %v2435_v51, %v2436_v58  ;;  %v2446_v48 = vmax.f32 %v2444_v15, %v2445_v59  ;;  %v2463_v56 = vrot.slane %v2462_v61, 2 }
 0x15d   :  { %vm5834_vm14 = vcmask 228544   ;;  %2988 = vst.msk [vmem:[#allocation3 + $0x68] sm:$0xff] %vm2638_vm1, %v2972_v5  ;;  %v2455_v14 = vmax.f32 %v2453_v52, %v2454_v50  ;;  %v2471_v62 = vmax.f32 %v2469_v6, %v2470_v24  ;;  %v2480_v37 = vmax.f32 %v2478_v31, %v2479_v3  ;;  %v5464_v39 = vld [vmem:[#allocation2 + $0xf2] sm:$0xff] }
 0x15e   :  { %3564 = vst.msk [vmem:[#allocation3 + $0x30] sm:$0xff] %vm5834_vm14, %v3522_v63  ;;  %v2487_v33 = vmax.f32 %v2485_v11, %v2486_v40  ;;  %v2430_v26 = vmax.f32 %v2428_v46, %v2429_v2  ;;  %v2438_v35 = vrot.slane %v2437_v8, 1  ;;  %v2447_v38 = vrot.slane %v2446_v48, 1  ;;  %vm5835_vm14 = vmmov %vm5833_vm10 }
 0x15f   :  { %v2464_v53 = vmax.f32 %v2462_v61, %v2463_v56  ;;  %3433 = vrot.lane.b32.xlu0 %v5382_v42, %s4268_s21  ;;  %v2456_v17 = vrot.slane %v2455_v14, 1  ;;  %v2472_v16 = vrot.slane %v2471_v62, 2  ;;  %v2481_v36 = vrot.slane %v2480_v37, 2 }
 0x160   :  { %3626 = vrot.lane.b32.xlu1 %v5365_v60, %s4270_s25  ;;  %v2488_v34 = vrot.slane %v2487_v33, 4  ;;  %v2439_v20 = vmax.f32 %v2437_v8, %v2438_v35  ;;  %v2448_v41 = vmax.f32 %v2446_v48, %v2447_v38  ;;  %v1093_v29 = vcombine.high %v69_v19, %v69_v19 }
 0x161   :  { %v2465_v13 = vrot.slane %v2464_v53, 1  ;;  %v2457_v43 = vmax.f32 %v2455_v14, %v2456_v17  ;;  %v2473_v44 = vmax.f32 %v2471_v62, %v2472_v16  ;;  %v2482_v28 = vmax.f32 %v2480_v37, %v2481_v36 }
 0x162   :  { %v2489_v45 = vmax.f32 %v2487_v33, %v2488_v34  ;;  %v2905_v60 = vsel %vm2807_vm2, %v2439_v20, %v2430_v26  ;;  %v1100_v30 = vrot.slane %v69_v19, %v4400_v27  ;;  %v1107_v21 = vrot.slane %v1093_v29, %v4400_v27 }
 0x163   :  { %v2466_v22 = vmax.f32 %v2464_v53, %v2465_v13  ;;  %3146 = vrot.lane.b32.xlu0 %v5464_v39, %s4264_s13  ;;  %v2474_v47 = vrot.slane %v2473_v44, 1  ;;  %v2483_v0 = vrot.slane %v2482_v28, 1  ;;  %v2906_v18 = vsel %vm2809_vm3, %v2448_v41, %v2905_v60 }
 0x164   :  { %3338 = vrot.lane.b32.xlu1 %v5444_v49, %s4267_s16  ;;  %v2490_v55 = vrot.slane %v2489_v45, 2  ;;  %v2907_v1 = vsel %vm2811_vm4, %v2457_v43, %v2906_v18  ;;  %v1108_v12 = vcombine.high %v1100_v30, %v1100_v30  ;;  %v1109_v32 = vcombine.high %v1107_v21, %v1107_v21 }
 0x165   :  { %v1110_v57 = vcombine.high %v70_v25, %v70_v25  ;;  %v2475_v51 = vmax.f32 %v2473_v44, %v2474_v47  ;;  %v2484_v15 = vmax.f32 %v2482_v28, %v2483_v0  ;;  %v2908_v52 = vsel %vm2813_vm5, %v2466_v22, %v2907_v1 }
 0x166   :  { %v2491_v54 = vmax.f32 %v2489_v45, %v2490_v55  ;;  %v1117_v6 = vrot.slane %v70_v25, %v4400_v27  ;;  %v1127_v11 = vcombine.high %v71_v10, %v71_v10  ;;  %v1134_v46 = vrot.slane %v71_v10, %v4400_v27  ;;  %v3042_v40 = vpop.permute.xlu0 %3041 }
 0x167   :  { %v5487_v31 = vrot.slane %v1110_v57, %v4400_v27  ;;  %3531 = vrot.lane.b32.xlu0 %v5446_v9, %s4269_s22  ;;  %v2909_v59 = vsel %vm2815_vm6, %v2475_v51, %v2908_v52  ;;  %v1144_v61 = vcombine.high %v72_v7, %v72_v7  ;;  %v1151_v4 = vrot.slane %v72_v7, %v4400_v27  ;;  %v3234_v23 = vpop.permute.xlu1 %3233 }
 0x168   :  { %v2492_v58 = vrot.slane %v2491_v54, 1  ;;  %3723 = vrot.lane.b32.xlu1 %v5382_v42, %s4271_s5  ;;  %v2910_v63 = vsel %vm2817_vm7, %v2484_v15, %v2909_v59  ;;  %v1125_v50 = vcombine.high %v1117_v6, %v1117_v6  ;;  %v1141_v3 = vrot.slane %v1127_v11, %v4400_v27  ;;  %3081 = vst.msk [vmem:[#allocation3 + $0x48] sm:$0xff] %vm3071_vm9, %v3042_v40 }
 0x169   :  { %v1126_v24 = vcombine.high %v5487_v31, %v5487_v31  ;;  %v1142_v5 = vcombine.high %v1134_v46, %v1134_v46  ;;  %v5501_v2 = vrot.slane %v1144_v61, %v4400_v27  ;;  %v1159_v8 = vcombine.high %v1151_v4, %v1151_v4  ;;  %3274 = vst.msk [vmem:[#allocation3 + $0x40] sm:$0xff] %vm3265_vm11, %v3234_v23 }
 0x16a   :  { %v2493_v9 = vmax.f32 %v2491_v54, %v2492_v58  ;;  %v1143_v42 = vcombine.high %v1141_v3, %v1141_v3  ;;  %v2494_v48 = vsel %vm1485_vm0, %v1100_v30, -inf  ;;  %v2495_v56 = vsel %vm1485_vm0, %v1134_v46, -inf  ;;  %v3426_v17 = vpop.permute.xlu0 %3425 }
 0x16b   :  { %v2503_v14 = vsel %vm1485_vm0, %v1108_v12, -inf  ;;  %v1160_v37 = vcombine.high %v5501_v2, %v5501_v2  ;;  %v2496_v33 = vmax.f32 %v2494_v48, %v2495_v56  ;;  %v2504_v19 = vsel %vm1485_vm0, %v1142_v5, -inf  ;;  %v3619_v16 = vpop.permute.xlu1 %3618  ;;  %3467 = vst.msk [vmem:[#allocation3 + $0x38] sm:$0xff] %vm5835_vm14, %v3426_v17 }
 0x16c   :  { %v2911_v62 = vsel %vm2819_vm8, %v2493_v9, %v2910_v63  ;;  %v2505_v26 = vmax.f32 %v2503_v14, %v2504_v19  ;;  %v2512_v35 = vsel %vm1485_vm0, %v1107_v21, -inf  ;;  %v2513_v38 = vsel %vm1485_vm0, %v1141_v3, -inf  ;;  %3661 = vst.msk [vmem:[#allocation3 + $0x30] sm:$0xff] %vm3654_vm15, %v3619_v16 }
 0x16d   :  { %2956 = vst.msk [vmem:[#allocation2 + $0x101] sm:$0xff] %vm2638_vm1, %v2911_v62  ;;  %v2521_v53 = vsel %vm1485_vm0, %v1109_v32, -inf  ;;  %v2497_v36 = vrot.slane %v2496_v33, 4  ;;  %v2514_v34 = vmax.f32 %v2512_v35, %v2513_v38  ;;  %v2522_v20 = vsel %vm1485_vm0, %v1143_v42, -inf }
 0x16e   :  { %v2530_v41 = vsel %vm1485_vm0, %v1117_v6, -inf  ;;  %v2506_v13 = vrot.slane %v2505_v26, 4  ;;  %v2523_v29 = vmax.f32 %v2521_v53, %v2522_v20  ;;  %v2531_v43 = vsel %vm1485_vm0, %v1151_v4, -inf  ;;  %v3139_v0 = vpop.permute.xlu0 %3138 }
 0x16f   :  { %v2539_v44 = vsel %vm1485_vm0, %v1125_v50, -inf  ;;  %v2498_v28 = vmax.f32 %v2496_v33, %v2497_v36  ;;  %v2515_v45 = vrot.slane %v2514_v34, 4  ;;  %v2532_v25 = vmax.f32 %v2530_v41, %v2531_v43  ;;  %v3331_v55 = vpop.permute.xlu1 %3330 }
 0x170   :  { %v2540_v22 = vsel %vm1485_vm0, %v1159_v8, -inf  ;;  %v2507_v60 = vmax.f32 %v2505_v26, %v2506_v13  ;;  %v2524_v30 = vrot.slane %v2523_v29, 4  ;;  %v2548_v47 = vsel %vm1485_vm0, %v5487_v31, -inf  ;;  %3371 = vst.msk [vmem:[#allocation3 + $0x40] sm:$0xff] %vm3362_vm12, %v3331_v55  ;;  %v73_v8 = vld [vmem:[%s5817_s0 + $0x1e0] sm:$0xff] }
 0x171   :  { %v2541_v21 = vmax.f32 %v2539_v44, %v2540_v22  ;;  %v2499_v18 = vrot.slane %v2498_v28, 2  ;;  %v2516_v10 = vmax.f32 %v2514_v34, %v2515_v45  ;;  %v2533_v1 = vrot.slane %v2532_v25, 4 }
 0x172   :  { %v2549_v7 = vsel %vm1485_vm0, %v5501_v2, -inf  ;;  %vm5836_vm10 = vcmask 97344   ;;  %v2508_v12 = vrot.slane %v2507_v60, 2  ;;  %v2525_v32 = vmax.f32 %v2523_v29, %v2524_v30  ;;  %v3524_v4 = vpop.permute.xlu0 %3523 }
 0x173   :  { %3178 = vst.msk [vmem:[#allocation3 + $0x48] sm:$0xff] %vm5836_vm10, %v3139_v0  ;;  %v2542_v57 = vrot.slane %v2541_v21, 4  ;;  %v2550_v51 = vmax.f32 %v2548_v47, %v2549_v7  ;;  %v2500_v52 = vmax.f32 %v2498_v28, %v2499_v18  ;;  %v2517_v6 = vrot.slane %v2516_v10, 2  ;;  %v3716_v63 = vpop.permute.xlu1 %3715  ;;  %v76_v47 = vld [vmem:[%s5817_s0 + $0x1f8] sm:$0xff] }
 0x174   :  { %v5529_v15 = vld [vmem:[#allocation2 + $0x100] sm:$0xff]  ;;  %v2534_v31 = vmax.f32 %v2532_v25, %v2533_v1  ;;  %v2557_v11 = vsel %vm1485_vm0, %v1126_v24, -inf  ;;  %v2509_v46 = vmax.f32 %v2507_v60, %v2508_v12  ;;  %v2526_v58 = vrot.slane %v2525_v32, 2  ;;  %v75_v25 = vld [vmem:[%s5817_s0 + $0x1f0] sm:$0xff] }
 0x175   :  { %v5531_v54 = vld [vmem:[#allocation2 + $0x101] sm:$0xff]  ;;  %3243 = vrot.lane.b32.xlu0 %v5529_v15, %s4266_s15  ;;  %v2543_v59 = vmax.f32 %v2541_v21, %v2542_v57  ;;  %v2551_v61 = vrot.slane %v2550_v51, 4  ;;  %2989 = vst.msk [vmem:[#allocation3 + $0x70] sm:$0xff] %vm2638_vm1, %v5529_v15  ;;  %v2501_v50 = vrot.slane %v2500_v52, 1  ;;  %v2518_v3 = vmax.f32 %v2516_v10, %v2517_v6 }
 0x176   :  { %3340 = vrot.lane.b32.xlu1 %v5531_v54, %s4267_s16  ;;  %v2535_v40 = vrot.slane %v2534_v31, 2  ;;  %v2558_v24 = vsel %vm1485_vm0, %v1160_v37, -inf  ;;  %vm5837_vm14 = vcmask 228544   ;;  %vm5838_vm10 = vcmask 294144   ;;  %v5550_v53 = vld [vmem:[#allocation2 + $0x102] sm:$0xff] }
 0x177   :  { %3565 = vst.msk [vmem:[#allocation3 + $0x38] sm:$0xff] %vm5837_vm14, %v3524_v4  ;;  %v2510_v23 = vrot.slane %v2509_v46, 1  ;;  %v2527_v9 = vmax.f32 %v2525_v32, %v2526_v58  ;;  %v2544_v5 = vrot.slane %v2543_v59, 2  ;;  %v2552_v2 = vmax.f32 %v2550_v51, %v2551_v61  ;;  %vm5839_vm14 = vmmov %vm5838_vm10 }
 0x178   :  { %3758 = vst.msk [vmem:[#allocation3 + $0x30] sm:$0xff] %vm5838_vm10, %v3716_v63  ;;  %v2502_v42 = vmax.f32 %v2500_v52, %v2501_v50  ;;  %v2519_v48 = vrot.slane %v2518_v3, 1  ;;  %v2536_v56 = vmax.f32 %v2534_v31, %v2535_v40  ;;  %v2559_v14 = vmax.f32 %v2557_v11, %v2558_v24 }
 0x179   :  { %3628 = vrot.lane.b32.xlu0 %v5444_v49, %s4270_s25  ;;  %v2511_v62 = vmax.f32 %v2509_v46, %v2510_v23  ;;  %v2528_v37 = vrot.slane %v2527_v9, 1  ;;  %v2545_v33 = vmax.f32 %v2543_v59, %v2544_v5  ;;  %v2553_v19 = vrot.slane %v2552_v2, 2  ;;  %v74_v49 = vld [vmem:[%s5817_s0 + $0x1e8] sm:$0xff] }
 0x17a   :  { %3725 = vrot.lane.b32.xlu1 %v5464_v39, %s4271_s5  ;;  %v2520_v26 = vmax.f32 %v2518_v3, %v2519_v48  ;;  %v2537_v35 = vrot.slane %v2536_v56, 1  ;;  %v2560_v38 = vrot.slane %v2559_v14, 4  ;;  %v1161_v17 = vcombine.high %v73_v8, %v73_v8 }
 0x17b   :  { %v2529_v16 = vmax.f32 %v2527_v9, %v2528_v37  ;;  %v2546_v36 = vrot.slane %v2545_v33, 1  ;;  %v2554_v34 = vmax.f32 %v2552_v2, %v2553_v19  ;;  %v2912_v20 = vsel %vm2807_vm2, %v2511_v62, %v2502_v42 }
 0x17c   :  { %v2538_v41 = vmax.f32 %v2536_v56, %v2537_v35  ;;  %v2561_v13 = vmax.f32 %v2559_v14, %v2560_v38  ;;  %v2913_v29 = vsel %vm2809_vm3, %v2520_v26, %v2912_v20  ;;  %v1168_v43 = vrot.slane %v73_v8, %v4400_v27 }
 0x17d   :  { %3051 = vrot.lane.b32.xlu0 %v5531_v54, %s4265_s14  ;;  %v2547_v44 = vmax.f32 %v2545_v33, %v2546_v36  ;;  %v2555_v28 = vrot.slane %v2554_v34, 1  ;;  %v2914_v45 = vsel %vm2811_vm4, %v2529_v16, %v2913_v29  ;;  %v1175_v22 = vrot.slane %v1161_v17, %v4400_v27 }
 0x17e   :  { %3148 = vrot.lane.b32.xlu1 %v5550_v53, %s4264_s13  ;;  %v2562_v30 = vrot.slane %v2561_v13, 2  ;;  %v2915_v21 = vsel %vm2813_vm5, %v2538_v41, %v2914_v45  ;;  %v1176_v0 = vcombine.high %v1168_v43, %v1168_v43  ;;  %v1178_v55 = vcombine.high %v74_v49, %v74_v49 }
 0x17f   :  { %v3774_v60 = vld [vmem:[#allocation3 + $0x30] sm:$0xff]  ;;  %v2556_v18 = vmax.f32 %v2554_v34, %v2555_v28  ;;  %v2916_v10 = vsel %vm2815_vm6, %v2547_v44, %v2915_v21  ;;  %v1177_v1 = vcombine.high %v1175_v22, %v1175_v22  ;;  %v1185_v7 = vrot.slane %v74_v49, %v4400_v27 }
 0x180   :  { %4163 = vmatprep.mubr.msk.f32.mxu0 %vm3789_vm13, %v3774_v60  ;;  %v2563_v12 = vmax.f32 %v2561_v13, %v2562_v30  ;;  %v5575_v32 = vrot.slane %v1178_v55, %v4400_v27  ;;  %v1195_v57 = vcombine.high %v75_v25, %v75_v25  ;;  %v1202_v51 = vrot.slane %v75_v25, %v4400_v27  ;;  %v3236_v23 = vpop.permute.xlu0 %3235 }
 0x181   :  { %3435 = vrot.lane.b32.xlu0 %v5464_v39, %s4268_s21  ;;  %v2917_v52 = vsel %vm2817_vm7, %v2556_v18, %v2916_v10  ;;  %v1193_v6 = vcombine.high %v1185_v7, %v1185_v7  ;;  %v1212_v31 = vcombine.high %v76_v47, %v76_v47  ;;  %v2566_v11 = vsel %vm1485_vm0, %v1168_v43, -inf  ;;  %v3333_v9 = vpop.permute.xlu1 %3332  ;;  %3275 = vst.msk [vmem:[#allocation3 + $0x48] sm:$0xff] %vm3265_vm11, %v3236_v23 }
 0x182   :  { %3533 = vrot.lane.b32.xlu1 %v5529_v15, %s4269_s22  ;;  %v2564_v46 = vrot.slane %v2563_v12, 1  ;;  %v1194_v58 = vcombine.high %v5575_v32, %v5575_v32  ;;  %v1209_v59 = vrot.slane %v1195_v57, %v4400_v27  ;;  %v1210_v61 = vcombine.high %v1202_v51, %v1202_v51  ;;  %3372 = vst.msk [vmem:[#allocation3 + $0x48] sm:$0xff] %vm3362_vm12, %v3333_v9 }
 0x183   :  { %v1219_v4 = vrot.slane %v76_v47, %v4400_v27  ;;  %v5589_v39 = vrot.slane %v1212_v31, %v4400_v27  ;;  %v2567_v63 = vsel %vm1485_vm0, %v1202_v51, -inf  ;;  %v2575_v15 = vsel %vm1485_vm0, %v1176_v0, -inf }
 0x184   :  { %v2565_v50 = vmax.f32 %v2563_v12, %v2564_v46  ;;  %v1211_v3 = vcombine.high %v1209_v59, %v1209_v59  ;;  %v2568_v40 = vmax.f32 %v2566_v11, %v2567_v63  ;;  %v2576_v24 = vsel %vm1485_vm0, %v1210_v61, -inf  ;;  %v3621_v16 = vpop.permute.xlu0 %3620 }
 0x185   :  { %v1227_v5 = vcombine.high %v1219_v4, %v1219_v4  ;;  %v1228_v2 = vcombine.high %v5589_v39, %v5589_v39  ;;  %v2577_v8 = vmax.f32 %v2575_v15, %v2576_v24  ;;  %v2584_v42 = vsel %vm1485_vm0, %v1175_v22, -inf  ;;  %v3718_v36 = vpop.permute.xlu1 %3717  ;;  %3662 = vst.msk [vmem:[#allocation3 + $0x38] sm:$0xff] %vm3654_vm15, %v3621_v16 }
 0x186   :  { %v2918_v27 = vsel %vm2819_vm8, %v2565_v50, %v2917_v52  ;;  %v2569_v48 = vrot.slane %v2568_v40, 4  ;;  %v2585_v56 = vsel %vm1485_vm0, %v1209_v59, -inf  ;;  %v2593_v14 = vsel %vm1485_vm0, %v1177_v1, -inf  ;;  %3759 = vst.msk [vmem:[#allocation3 + $0x38] sm:$0xff] %vm5839_vm14, %v3718_v36 }
 0x187   :  { %2957 = vst.msk [vmem:[#allocation2 + $0x111] sm:$0xff] %vm2638_vm1, %v2918_v27  ;;  %v2578_v62 = vrot.slane %v2577_v8, 4  ;;  %v2586_v37 = vmax.f32 %v2584_v42, %v2585_v56  ;;  %v2594_v33 = vsel %vm1485_vm0, %v1211_v3, -inf  ;;  %v2602_v19 = vsel %vm1485_vm0, %v1185_v7, -inf }
 0x188   :  { %v2570_v26 = vmax.f32 %v2568_v40, %v2569_v48  ;;  %v2595_v35 = vmax.f32 %v2593_v14, %v2594_v33  ;;  %v2603_v38 = vsel %vm1485_vm0, %v1219_v4, -inf  ;;  %v2611_v17 = vsel %vm1485_vm0, %v1193_v6, -inf }
 0x189   :  { %v2579_v34 = vmax.f32 %v2577_v8, %v2578_v62  ;;  %v2587_v20 = vrot.slane %v2586_v37, 4  ;;  %v2604_v49 = vmax.f32 %v2602_v19, %v2603_v38  ;;  %v2612_v41 = vsel %vm1485_vm0, %v1227_v5, -inf  ;;  %v3044_v0 = vpop.permute.xlu0 %3043  ;;  %v3141_v55 = vpop.permute.xlu1 %3140 }
 0x18a   :  { %v2571_v13 = vrot.slane %v2570_v26, 2  ;;  %v2596_v29 = vrot.slane %v2595_v35, 4  ;;  %v2613_v43 = vmax.f32 %v2611_v17, %v2612_v41  ;;  %v2620_v44 = vsel %vm1485_vm0, %v5575_v32, -inf  ;;  %3082 = vst.msk [vmem:[#allocation3 + $0x50] sm:$0xff] %vm3071_vm9, %v3044_v0 }
 0x18b   :  { %v2580_v28 = vrot.slane %v2579_v34, 2  ;;  %v2588_v45 = vmax.f32 %v2586_v37, %v2587_v20  ;;  %v2605_v25 = vrot.slane %v2604_v49, 4  ;;  %v2621_v22 = vsel %vm1485_vm0, %v5589_v39, -inf }
 0x18c   :  { %v2572_v60 = vmax.f32 %v2570_v26, %v2571_v13  ;;  %v2597_v30 = vmax.f32 %v2595_v35, %v2596_v29  ;;  %v2614_v21 = vrot.slane %v2613_v43, 4  ;;  %v2622_v47 = vmax.f32 %v2620_v44, %v2621_v22 }
 0x18d   :  { %v2581_v18 = vmax.f32 %v2579_v34, %v2580_v28  ;;  %v2589_v10 = vrot.slane %v2588_v45, 2  ;;  %v2606_v1 = vmax.f32 %v2604_v49, %v2605_v25  ;;  %v2629_v7 = vsel %vm1485_vm0, %v1194_v58, -inf  ;;  %v3428_v63 = vpop.permute.xlu0 %3427  ;;  %v3526_v15 = vpop.permute.xlu1 %3525  ;;  %v3775_v23 = vld [vmem:[#allocation3 + $0x38] sm:$0xff] }
 0x18e   :  { %v5616_v12 = vld [vmem:[#allocation2 + $0x111] sm:$0xff]  ;;  %v2573_v57 = vrot.slane %v2572_v60, 1  ;;  %v2598_v51 = vrot.slane %v2597_v30, 2  ;;  %v2615_v52 = vmax.f32 %v2613_v43, %v2614_v21  ;;  %v2623_v6 = vrot.slane %v2622_v47, 4  ;;  %4164 = vmatmul.mubr.msk.f32.gmra.mxu0 %vm3789_vm13, %v3775_v23 }
 0x18f   :  { %v3199_v32 = vld [vmem:[#allocation2 + $0x110] sm:$0xff]  ;;  %vm5840_vm10 = vcmask 97344   ;;  %3053 = vrot.lane.b32.xlu0 %v5616_v12, %s4265_s14  ;;  %v2582_v31 = vrot.slane %v2581_v18, 1  ;;  %v2590_v11 = vmax.f32 %v2588_v45, %v2589_v10  ;;  %v2607_v46 = vrot.slane %v2606_v1, 2 }
 0x190   :  { %3179 = vst.msk [vmem:[#allocation3 + $0x50] sm:$0xff] %vm5840_vm10, %v3141_v55  ;;  %3245 = vrot.lane.b32.xlu1 %v3199_v32, %s4266_s15  ;;  %v2630_v58 = vsel %vm1485_vm0, %v1228_v2, -inf  ;;  %v2574_v59 = vmax.f32 %v2572_v60, %v2573_v57  ;;  %v2599_v61 = vmax.f32 %v2597_v30, %v2598_v51  ;;  %v2616_v4 = vrot.slane %v2615_v52, 2  ;;  %v3103_v56 = vld [vmem:[#allocation2 + $0x112] sm:$0xff] }
 0x191   :  { %2990 = vst.msk [vmem:[#allocation3 + $0x78] sm:$0xff] %vm2638_vm1, %v3199_v32  ;;  %v2624_v39 = vmax.f32 %v2622_v47, %v2623_v6  ;;  %v2583_v50 = vmax.f32 %v2581_v18, %v2582_v31  ;;  %v2591_v3 = vrot.slane %v2590_v11, 1  ;;  %v2608_v40 = vmax.f32 %v2606_v1, %v2607_v46  ;;  %v3492_v47 = vld [vmem:[#allocation2 + $0x130] sm:$0xff] }
 0x192   :  { %v2631_v24 = vmax.f32 %v2629_v7, %v2630_v58  ;;  %vm5841_vm14 = vcmask 195744   ;;  %v2600_v9 = vrot.slane %v2599_v61, 1  ;;  %v2617_v5 = vmax.f32 %v2615_v52, %v2616_v4  ;;  %v3589_v55 = vld [vmem:[#allocation2 + $0x131] sm:$0xff] }
 0x193   :  { %3468 = vst.msk [vmem:[#allocation3 + $0x40] sm:$0xff] %vm5841_vm14, %v3428_v63  ;;  %v2625_v8 = vrot.slane %v2624_v39, 2  ;;  %vm5842_vm10 = vcmask 228544   ;;  %3437 = vrot.lane.b32.xlu0 %v5550_v53, %s4268_s21  ;;  %v2592_v2 = vmax.f32 %v2590_v11, %v2591_v3  ;;  %v2609_v42 = vrot.slane %v2608_v40, 1  ;;  %vm5843_vm0 = vmmov %vm5841_vm14  ;;  %v3686_v10 = vld [vmem:[#allocation2 + $0x132] sm:$0xff] }
 0x194   :  { %3566 = vst.msk [vmem:[#allocation3 + $0x40] sm:$0xff] %vm5842_vm10, %v3526_v15  ;;  %3630 = vrot.lane.b32.xlu1 %v5531_v54, %s4270_s25  ;;  %v2632_v27 = vrot.slane %v2631_v24, 4  ;;  %v2919_v48 = vsel %vm2807_vm2, %v2583_v50, %v2574_v59  ;;  %v2601_v14 = vmax.f32 %v2599_v61, %v2600_v9  ;;  %v2618_v62 = vrot.slane %v2617_v5, 1 }
 0x195   :  { %v2626_v37 = vmax.f32 %v2624_v39, %v2625_v8  ;;  %v2610_v33 = vmax.f32 %v2608_v40, %v2609_v42  ;;  %v2920_v26 = vsel %vm2809_vm3, %v2592_v2, %v2919_v48  ;;  %vm5844_vm2 = vcmask 97344  }
 0x196   :  { %v2633_v19 = vmax.f32 %v2631_v24, %v2632_v27  ;;  %v2619_v35 = vmax.f32 %v2617_v5, %v2618_v62  ;;  %v2921_v17 = vsel %vm2811_vm4, %v2601_v14, %v2920_v26  ;;  %vm5846_vm3 = vcmask 294144   ;;  %vm5852_vm14 = vmmov %vm5844_vm2 }
 0x197   :  { %v2627_v38 = vrot.slane %v2626_v37, 1  ;;  %3150 = vrot.lane.b32.xlu0 %v3103_v56, %s4264_s13  ;;  %v2922_v16 = vsel %vm2813_vm5, %v2610_v33, %v2921_v17  ;;  %vm5847_vm4 = vmmov %vm5846_vm3 }
 0x198   :  { %v2634_v54 = vrot.slane %v2633_v19, 2  ;;  %3342 = vrot.lane.b32.xlu1 %v5616_v12, %s4267_s16  ;;  %v2923_v20 = vsel %vm2815_vm6, %v2619_v35, %v2922_v16  ;;  %vm5848_vm5 = vmmov %vm5844_vm2 }
 0x199   :  { %v2628_v36 = vmax.f32 %v2626_v37, %v2627_v38  ;;  %vm5849_vm6 = vmmov %vm5843_vm0 }
 0x19a   :  { %v2635_v34 = vmax.f32 %v2633_v19, %v2634_v54  ;;  %v3046_v13 = vpop.permute.xlu0 %3045 }
 0x19b   :  { %3535 = vrot.lane.b32.xlu0 %v3199_v32, %s4269_s22  ;;  %v2924_v41 = vsel %vm2817_vm7, %v2628_v36, %v2923_v20  ;;  %v3238_v29 = vpop.permute.xlu1 %3237  ;;  %3083 = vst.msk [vmem:[#allocation3 + $0x58] sm:$0xff] %vm3071_vm9, %v3046_v13 }
 0x19c   :  { %v2636_v49 = vrot.slane %v2635_v34, 1  ;;  %3727 = vrot.lane.b32.xlu1 %v5550_v53, %s4271_s5  ;;  %3276 = vst.msk [vmem:[#allocation3 + $0x50] sm:$0xff] %vm3265_vm11, %v3238_v29 }
 0x19e   :  { %v2637_v43 = vmax.f32 %v2635_v34, %v2636_v49  ;;  %v3430_v28 = vpop.permute.xlu0 %3429 }
 0x19f   :  { %v3623_v45 = vpop.permute.xlu1 %3622  ;;  %3469 = vst.msk [vmem:[#allocation3 + $0x48] sm:$0xff] %vm5843_vm0, %v3430_v28 }
 0x1a0   :  { %v2925_v44 = vsel %vm2819_vm8, %v2637_v43, %v2924_v41  ;;  %3439 = vrot.lane.b32.xlu1 %v3103_v56, %s4268_s21  ;;  %3663 = vst.msk [vmem:[#allocation3 + $0x40] sm:$0xff] %vm3654_vm15, %v3623_v45  ;;  %vm5851_vm8 = vmmov %vm5843_vm0 }
 0x1a1   :  { %2958 = vst.msk [vmem:[#allocation2 + $0x121] sm:$0xff] %vm2638_vm1, %v2925_v44  ;;  %vm5845_vm1 = vmmov %vm5842_vm10 }
 0x1a2   :  { %v3143_v53 = vpop.permute.xlu0 %3142  ;;  %vm5850_vm7 = vmmov %vm5845_vm1 }
 0x1a3   :  { %v3335_v25 = vpop.permute.xlu1 %3334  ;;  %3180 = vst.msk [vmem:[#allocation3 + $0x58] sm:$0xff] %vm5844_vm2, %v3143_v53  ;;  %vm5853_vm10 = vmmov %vm5845_vm1 }
 0x1a4   :  { %3373 = vst.msk [vmem:[#allocation3 + $0x50] sm:$0xff] %vm3362_vm12, %v3335_v25  ;;  %vm5854_vm0 = vmmov %vm5846_vm3 }
 0x1a5   :  { %vm5855_vm2 = vmmov %vm5854_vm0 }
 0x1a6   :  { %v3528_v30 = vpop.permute.xlu0 %3527 }
 0x1a7   :  { %v3720_v21 = vpop.permute.xlu1 %3719  ;;  %3567 = vst.msk [vmem:[#allocation3 + $0x48] sm:$0xff] %vm5845_vm1, %v3528_v30  ;;  %vm3987_vm1 = vcmask 64512  }
 0x1a8   :  { %v3200_v22 = vld [vmem:[#allocation2 + $0x120] sm:$0xff]  ;;  %3760 = vst.msk [vmem:[#allocation3 + $0x40] sm:$0xff] %vm5846_vm3, %v3720_v21  ;;  %vm5856_vm3 = vmmov %vm5848_vm5 }
 0x1a9   :  { %v3394_v60 = vld [vmem:[#allocation2 + $0x122] sm:$0xff]  ;;  %3247 = vrot.lane.b32.xlu0 %v3200_v22, %s4266_s15 }
 0x1aa   :  { %3441 = vrot.lane.b32.xlu1 %v3394_v60, %s4268_s21  ;;  %v3297_v0 = vld [vmem:[#allocation2 + $0x121] sm:$0xff] }
 0x1ad   :  { %3632 = vrot.lane.b32.xlu0 %v5616_v12, %s4270_s25 }
 0x1ae   :  { %3539 = vrot.lane.b32.xlu1 %v3492_v47, %s4269_s22 }
 0x1af   :  { %v3776_v18 = vld [vmem:[#allocation3 + $0x40] sm:$0xff] }
 0x1b0   :  { %4166 = vmatprep.mubr.msk.f32.mxu1 %vm3789_vm13, %v3776_v18 }
 0x1b1   :  { %3344 = vrot.lane.b32.xlu0 %v3297_v0, %s4267_s16 }
 0x1b2   :  { %3636 = vrot.lane.b32.xlu1 %v3589_v55, %s4270_s25 }
 0x1b3   :  { %v3240_v1 = vpop.permute.xlu0 %3239 }
 0x1b4   :  { %v3337_v7 = vpop.permute.xlu1 %3336  ;;  %3277 = vst.msk [vmem:[#allocation3 + $0x58] sm:$0xff] %vm3265_vm11, %v3240_v1 }
 0x1b5   :  { %3729 = vrot.lane.b32.xlu0 %v3103_v56, %s4271_s5  ;;  %3374 = vst.msk [vmem:[#allocation3 + $0x58] sm:$0xff] %vm3362_vm12, %v3337_v7 }
 0x1b6   :  { %3733 = vrot.lane.b32.xlu1 %v3686_v10, %s4271_s5 }
 0x1b7   :  { %v3625_v12 = vpop.permute.xlu0 %3624 }
 0x1b8   :  { %v3722_v32 = vpop.permute.xlu1 %3721  ;;  %3664 = vst.msk [vmem:[#allocation3 + $0x48] sm:$0xff] %vm3654_vm15, %v3625_v12 }
 0x1b9   :  { %3537 = vrot.lane.b32.xlu0 %v3200_v22, %s4269_s22  ;;  %3761 = vst.msk [vmem:[#allocation3 + $0x48] sm:$0xff] %vm5847_vm4, %v3722_v32  ;;  %vm5857_vm4 = vmmov %vm5849_vm6 }
 0x1bb   :  { %v3048_v57 = vpop.permute.xlu0 %3047 }
 0x1bc   :  { %v3145_v51 = vpop.permute.xlu1 %3144  ;;  %3084 = vst.msk [vmem:[#allocation3 + $0x60] sm:$0xff] %vm3071_vm9, %v3048_v57 }
 0x1bd   :  { %3634 = vrot.lane.b32.xlu0 %v3297_v0, %s4270_s25  ;;  %3181 = vst.msk [vmem:[#allocation3 + $0x60] sm:$0xff] %vm5848_vm5, %v3145_v51  ;;  %vm5858_vm5 = vmmov %vm5850_vm7 }
 0x1bf   :  { %v3432_v52 = vpop.permute.xlu0 %3431 }
 0x1c0   :  { %v3530_v6 = vpop.permute.xlu1 %3529  ;;  %3470 = vst.msk [vmem:[#allocation3 + $0x50] sm:$0xff] %vm5849_vm6, %v3432_v52  ;;  %v3777_v31 = vld [vmem:[#allocation3 + $0x48] sm:$0xff]  ;;  %vm5859_vm6 = vmmov %vm5857_vm4 }
 0x1c1   :  { %3731 = vrot.lane.b32.xlu0 %v3394_v60, %s4271_s5  ;;  %3568 = vst.msk [vmem:[#allocation3 + $0x50] sm:$0xff] %vm5850_vm7, %v3530_v6  ;;  %4167 = vmatmul.mubr.msk.f32.vlgmr.msra.gmra.mxu1 %vm3789_vm13, %v3777_v31  ;;  %vm5860_vm7 = vmmov %vm5856_vm3 }
 0x1cd   :  { %v3050_v11 = vpop.permute.xlu0 %3049 }
 0x1ce   :  { %v3242_v46 = vpop.permute.xlu1 %3241  ;;  %3085 = vst.msk [vmem:[#allocation3 + $0x68] sm:$0xff] %vm3071_vm9, %v3050_v11 }
 0x1cf   :  { %3278 = vst.msk [vmem:[#allocation3 + $0x60] sm:$0xff] %vm3265_vm11, %v3242_v46 }
 0x1d1   :  { %v3434_v58 = vpop.permute.xlu0 %3433 }
 0x1d2   :  { %v3627_v59 = vpop.permute.xlu1 %3626  ;;  %3471 = vst.msk [vmem:[#allocation3 + $0x58] sm:$0xff] %vm5851_vm8, %v3434_v58  ;;  %vm5861_vm8 = vmmov %vm5858_vm5 }
 0x1d3   :  { %3665 = vst.msk [vmem:[#allocation3 + $0x50] sm:$0xff] %vm3654_vm15, %v3627_v59 }
 0x1d5   :  { %v3147_v61 = vpop.permute.xlu0 %3146 }
 0x1d6   :  { %v3339_v4 = vpop.permute.xlu1 %3338  ;;  %3182 = vst.msk [vmem:[#allocation3 + $0x68] sm:$0xff] %vm5852_vm14, %v3147_v61  ;;  %vm5862_vm14 = vmmov %vm5854_vm0 }
 0x1d7   :  { %3375 = vst.msk [vmem:[#allocation3 + $0x60] sm:$0xff] %vm3362_vm12, %v3339_v4 }
 0x1d9   :  { %v3532_v39 = vpop.permute.xlu0 %3531 }
 0x1da   :  { %v3724_v63 = vpop.permute.xlu1 %3723  ;;  %3569 = vst.msk [vmem:[#allocation3 + $0x58] sm:$0xff] %vm5853_vm10, %v3532_v39  ;;  %vm5865_vm10 = vmmov %vm5858_vm5 }
 0x1db   :  { %3762 = vst.msk [vmem:[#allocation3 + $0x50] sm:$0xff] %vm5854_vm0, %v3724_v63 }
 0x1e2   :  { %v3778_v15 = vld [vmem:[#allocation3 + $0x50] sm:$0xff] }
 0x1e3   :  { %4169 = vmatprep.mubr.msk.f32.mxu1 %vm3789_vm13, %v3778_v15 }
 0x1e7   :  { %v3244_v50 = vpop.permute.xlu0 %3243 }
 0x1e8   :  { %v3341_v3 = vpop.permute.xlu1 %3340  ;;  %3279 = vst.msk [vmem:[#allocation3 + $0x68] sm:$0xff] %vm3265_vm11, %v3244_v50 }
 0x1e9   :  { %3376 = vst.msk [vmem:[#allocation3 + $0x68] sm:$0xff] %vm3362_vm12, %v3341_v3 }
 0x1eb   :  { %v3629_v40 = vpop.permute.xlu0 %3628 }
 0x1ec   :  { %v3726_v24 = vpop.permute.xlu1 %3725  ;;  %3666 = vst.msk [vmem:[#allocation3 + $0x58] sm:$0xff] %vm3654_vm15, %v3629_v40 }
 0x1ed   :  { %3763 = vst.msk [vmem:[#allocation3 + $0x58] sm:$0xff] %vm5855_vm2, %v3726_v24  ;;  %vm5866_vm2 = vmmov %vm5854_vm0 }
 0x1ef   :  { %v3052_v23 = vpop.permute.xlu0 %3051  ;;  %v4156_v5 = vpop.f32.mrf.mxu0 }
 0x1f0   :  { %v3149_v9 = vpop.permute.xlu1 %3148  ;;  %3086 = vst.msk [vmem:[#allocation3 + $0x70] sm:$0xff] %vm3071_vm9, %v3052_v23  ;;  %v4042_v8 = vmul.f32 %v4156_v5, %v4156_v5  ;;  %v4005_v27 = vsel %vm3987_vm1, %v4156_v5, 0.0 }
 0x1f1   :  { %3183 = vst.msk [vmem:[#allocation3 + $0x70] sm:$0xff] %vm5856_vm3, %v3149_v9  ;;  %v3908_v56 = vpop.f32.mrf.mxu0  ;;  %vm5867_vm3 = vmmov %vm5858_vm5 }
 0x1f2   :  { %3989 = vst.msk [vmem:[%s5819_s2 + $0x8] sm:$0xff] %vm3987_vm1, %v4156_v5  ;;  %v4058_v14 = vsel %vm3987_vm1, %v4042_v8, 0.0  ;;  %3988 = vst.msk [vmem:[%s5819_s2] sm:$0xff] %vm3987_vm1, %v3908_v56  ;;  %v4004_v62 = vsel %vm3987_vm1, %v3908_v56, 0.0  ;;  %v4041_v37 = vmul.f32 %v3908_v56, %v3908_v56 }
 0x1f3   :  { %v3436_v2 = vpop.permute.xlu0 %3435  ;;  %v4006_v33 = vadd.f32 %v4005_v27, %v4004_v62  ;;  %v4159_v19 = vpop.f32.mrf.mxu0 }
 0x1f4   :  { %v3534_v42 = vpop.permute.xlu1 %3533  ;;  %3472 = vst.msk [vmem:[#allocation3 + $0x60] sm:$0xff] %vm5857_vm4, %v3436_v2  ;;  %v3779_v48 = vld [vmem:[#allocation3 + $0x58] sm:$0xff]  ;;  %v4057_v26 = vsel %vm3987_vm1, %v4041_v37, 0.0  ;;  %v4044_v17 = vmul.f32 %v4159_v19, %v4159_v19  ;;  %v4009_v34 = vsel %vm3987_vm1, %v4159_v19, 0.0 }
 0x1f5   :  { %3570 = vst.msk [vmem:[#allocation3 + $0x60] sm:$0xff] %vm5858_vm5, %v3534_v42  ;;  %4170 = vmatmul.mubr.msk.f32.gmra.mxu1 %vm3789_vm13, %v3779_v48  ;;  %v4059_v35 = vadd.f32 %v4058_v14, %v4057_v26  ;;  %v3918_v38 = vpop.f32.mrf.mxu0 }
 0x1f6   :  { %3991 = vst.msk [vmem:[%s5819_s2 + $0x18] sm:$0xff] %vm3987_vm1, %v4159_v19  ;;  %3990 = vst.msk [vmem:[%s5819_s2 + $0x10] sm:$0xff] %vm3987_vm1, %v3918_v38  ;;  %v4007_v54 = vsel %vm3987_vm1, %v3918_v38, 0.0  ;;  %v4043_v16 = vmul.f32 %v3918_v38, %v3918_v38  ;;  %v4062_v13 = vsel %vm3987_vm1, %v4044_v17, 0.0 }
 0x1f7   :  { %v4008_v36 = vadd.f32 %v4007_v54, %v4006_v33 }
 0x1f8   :  { %v4060_v20 = vsel %vm3987_vm1, %v4043_v16, 0.0 }
 0x1f9   :  { %v4061_v49 = vadd.f32 %v4060_v20, %v4059_v35  ;;  %v4010_v41 = vadd.f32 %v4009_v34, %v4008_v36 }
 0x1fb   :  { %v4063_v29 = vadd.f32 %v4062_v13, %v4061_v49 }
 0x201   :  { %v3054_v43 = vpop.permute.xlu0 %3053 }
 0x202   :  { %v3246_v44 = vpop.permute.xlu1 %3245  ;;  %3087 = vst.msk [vmem:[#allocation3 + $0x78] sm:$0xff] %vm3071_vm9, %v3054_v43  ;;  %vm5863_vm9 = vmmov %vm5857_vm4 }
 0x203   :  { %3280 = vst.msk [vmem:[#allocation3 + $0x70] sm:$0xff] %vm3265_vm11, %v3246_v44 }
 0x205   :  { %v3438_v28 = vpop.permute.xlu0 %3437 }
 0x206   :  { %v3631_v45 = vpop.permute.xlu1 %3630  ;;  %3473 = vst.msk [vmem:[#allocation3 + $0x68] sm:$0xff] %vm5859_vm6, %v3438_v28 }
 0x207   :  { %3667 = vst.msk [vmem:[#allocation3 + $0x60] sm:$0xff] %vm3654_vm15, %v3631_v45 }
 0x209   :  { %v3151_v53 = vpop.permute.xlu0 %3150 }
 0x20a   :  { %v3343_v25 = vpop.permute.xlu1 %3342  ;;  %3184 = vst.msk [vmem:[#allocation3 + $0x78] sm:$0xff] %vm5860_vm7, %v3151_v53 }
 0x20b   :  { %3377 = vst.msk [vmem:[#allocation3 + $0x70] sm:$0xff] %vm3362_vm12, %v3343_v25 }
 0x20d   :  { %v3536_v22 = vpop.permute.xlu0 %3535 }
 0x20e   :  { %v3728_v60 = vpop.permute.xlu1 %3727  ;;  %3571 = vst.msk [vmem:[#allocation3 + $0x68] sm:$0xff] %vm5861_vm8, %v3536_v22 }
 0x20f   :  { %3764 = vst.msk [vmem:[#allocation3 + $0x60] sm:$0xff] %vm5862_vm14, %v3728_v60 }
 0x212   :  { %v3440_v30 = vpop.permute.xlu1 %3439 }
 0x213   :  { %3474 = vst.msk [vmem:[#allocation3 + $0x70] sm:$0xff] %vm5863_vm9, %v3440_v30 }
 0x216   :  { %v3780_v21 = vld [vmem:[#allocation3 + $0x60] sm:$0xff] }
 0x217   :  { %4172 = vmatprep.mubr.msk.f32.mxu1 %vm3789_vm13, %v3780_v21 }
 0x21a   :  { %v4162_v55 = vpop.f32.mrf.mxu0 }
 0x21b   :  { %v3248_v47 = vpop.permute.xlu0 %3247  ;;  %3993 = vst.msk [vmem:[%s5819_s2 + $0x28] sm:$0xff] %vm3987_vm1, %v4162_v55  ;;  %v4046_v7 = vmul.f32 %v4162_v55, %v4162_v55  ;;  %v4013_v6 = vsel %vm3987_vm1, %v4162_v55, 0.0 }
 0x21c   :  { %v3442_v0 = vpop.permute.xlu1 %3441  ;;  %3281 = vst.msk [vmem:[#allocation3 + $0x78] sm:$0xff] %vm3265_vm11, %v3248_v47  ;;  %v3928_v1 = vpop.f32.mrf.mxu0  ;;  %vm5864_vm11 = vmmov %vm5857_vm4 }
 0x21d   :  { %3992 = vst.msk [vmem:[%s5819_s2 + $0x20] sm:$0xff] %vm3987_vm1, %v3928_v1  ;;  %v4011_v12 = vsel %vm3987_vm1, %v3928_v1, 0.0  ;;  %v4045_v32 = vmul.f32 %v3928_v1, %v3928_v1  ;;  %v4066_v58 = vsel %vm3987_vm1, %v4046_v7, 0.0 }
 0x21e   :  { %v4012_v57 = vadd.f32 %v4011_v12, %v4010_v41 }
 0x21f   :  { %v3633_v18 = vpop.permute.xlu0 %3632  ;;  %v4064_v31 = vsel %vm3987_vm1, %v4045_v32, 0.0 }
 0x220   :  { %v3540_v10 = vpop.permute.xlu1 %3539  ;;  %3668 = vst.msk [vmem:[#allocation3 + $0x68] sm:$0xff] %vm3654_vm15, %v3633_v18  ;;  %v4065_v11 = vadd.f32 %v4064_v31, %v4063_v29  ;;  %v4014_v46 = vadd.f32 %v4013_v6, %v4012_v57 }
 0x222   :  { %v4067_v59 = vadd.f32 %v4066_v58, %v4065_v11 }
 0x223   :  { %v3345_v51 = vpop.permute.xlu0 %3344 }
 0x224   :  { %v3637_v52 = vpop.permute.xlu1 %3636  ;;  %3378 = vst.msk [vmem:[#allocation3 + $0x78] sm:$0xff] %vm3362_vm12, %v3345_v51  ;;  %vm5868_vm12 = vmmov %vm5854_vm0 }
 0x225   :  { %3475 = vst.msk [vmem:[#allocation3 + $0x78] sm:$0xff] %vm5864_vm11, %v3442_v0 }
 0x226   :  { %3573 = vst.msk [vmem:[#allocation3 + $0x78] sm:$0xff] %vm5865_vm10, %v3540_v10 }
 0x227   :  { %v3730_v61 = vpop.permute.xlu0 %3729  ;;  %3670 = vst.msk [vmem:[#allocation3 + $0x78] sm:$0xff] %vm3654_vm15, %v3637_v52 }
 0x228   :  { %v3734_v4 = vpop.permute.xlu1 %3733  ;;  %3765 = vst.msk [vmem:[#allocation3 + $0x68] sm:$0xff] %vm5854_vm0, %v3730_v61 }
 0x229   :  { %3767 = vst.msk [vmem:[#allocation3 + $0x78] sm:$0xff] %vm5866_vm2, %v3734_v4 }
 0x22b   :  { %v3538_v39 = vpop.permute.xlu0 %3537 }
 0x22c   :  { %3572 = vst.msk [vmem:[#allocation3 + $0x70] sm:$0xff] %vm5867_vm3, %v3538_v39 }
 0x22f   :  { %v3635_v63 = vpop.permute.xlu0 %3634  ;;  %v3781_v15 = vld [vmem:[#allocation3 + $0x68] sm:$0xff] }
 0x230   :  { %3669 = vst.msk [vmem:[#allocation3 + $0x70] sm:$0xff] %vm3654_vm15, %v3635_v63  ;;  %4173 = vmatmul.mubr.msk.f32.gmra.mxu1 %vm3789_vm13, %v3781_v15  ;;  %v3783_v3 = vld [vmem:[#allocation3 + $0x78] sm:$0xff]  ;;  %vm4094_vm15 = vcmask 1040384  }
 0x233   :  { %v3732_v50 = vpop.permute.xlu0 %3731 }
 0x234   :  { %3766 = vst.msk [vmem:[#allocation3 + $0x70] sm:$0xff] %vm5868_vm12, %v3732_v50 }
 0x23b   :  { %v3782_v40 = vld [vmem:[#allocation3 + $0x70] sm:$0xff] }
 0x23c   :  { %4175 = vmatprep.mubr.msk.f32.mxu1 %vm3789_vm13, %v3782_v40 }
 0x23d   :  { %4176 = vmatmul.mubr.msk.f32.gmra.mxu1 %vm3789_vm13, %v3783_v3  ;;  %vm4096_vm13 = vcmask 58368  }
 0x24e   :  { %v4165_v24 = vpop.f32.mrf.mxu0 }
 0x24f   :  { %3995 = vst.msk [vmem:[%s5819_s2 + $0x38] sm:$0xff] %vm3987_vm1, %v4165_v24  ;;  %v4048_v9 = vmul.f32 %v4165_v24, %v4165_v24  ;;  %v4017_v42 = vsel %vm3987_vm1, %v4165_v24, 0.0 }
 0x250   :  { %v3938_v23 = vpop.f32.mrf.mxu0 }
 0x251   :  { %3994 = vst.msk [vmem:[%s5819_s2 + $0x30] sm:$0xff] %vm3987_vm1, %v3938_v23  ;;  %v4015_v5 = vsel %vm3987_vm1, %v3938_v23, 0.0  ;;  %v4047_v8 = vmul.f32 %v3938_v23, %v3938_v23  ;;  %v4070_v14 = vsel %vm3987_vm1, %v4048_v9, 0.0 }
 0x252   :  { %v4016_v2 = vadd.f32 %v4015_v5, %v4014_v46 }
 0x253   :  { %v4068_v27 = vsel %vm3987_vm1, %v4047_v8, 0.0 }
 0x254   :  { %v4018_v48 = vadd.f32 %v4017_v42, %v4016_v2  ;;  %v4069_v56 = vadd.f32 %v4068_v27, %v4067_v59 }
 0x256   :  { %v4071_v62 = vadd.f32 %v4070_v14, %v4069_v56 }
 0x281   :  { %v4168_v37 = vpop.f32.mrf.mxu1 }
 0x282   :  { %3997 = vst.msk [vmem:[%s5819_s2 + $0x48] sm:$0xff] %vm3987_vm1, %v4168_v37  ;;  %v4050_v19 = vmul.f32 %v4168_v37, %v4168_v37  ;;  %v4021_v17 = vsel %vm3987_vm1, %v4168_v37, 0.0 }
 0x283   :  { %v3948_v33 = vpop.f32.mrf.mxu1 }
 0x284   :  { %3996 = vst.msk [vmem:[%s5819_s2 + $0x40] sm:$0xff] %vm3987_vm1, %v3948_v33  ;;  %v4019_v26 = vsel %vm3987_vm1, %v3948_v33, 0.0  ;;  %v4049_v35 = vmul.f32 %v3948_v33, %v3948_v33  ;;  %v4074_v34 = vsel %vm3987_vm1, %v4050_v19, 0.0 }
 0x285   :  { %v4020_v38 = vadd.f32 %v4019_v26, %v4018_v48 }
 0x286   :  { %v4072_v54 = vsel %vm3987_vm1, %v4049_v35, 0.0 }
 0x287   :  { %v4073_v16 = vadd.f32 %v4072_v54, %v4071_v62  ;;  %v4022_v36 = vadd.f32 %v4021_v17, %v4020_v38 }
 0x289   :  { %v4075_v20 = vadd.f32 %v4074_v34, %v4073_v16 }
 0x2b5   :  { %v4171_v49 = vpop.f32.mrf.mxu1 }
 0x2b6   :  { %3999 = vst.msk [vmem:[%s5819_s2 + $0x58] sm:$0xff] %vm3987_vm1, %v4171_v49  ;;  %v4052_v13 = vmul.f32 %v4171_v49, %v4171_v49  ;;  %v4025_v28 = vsel %vm3987_vm1, %v4171_v49, 0.0 }
 0x2b7   :  { %v3958_v41 = vpop.f32.mrf.mxu1 }
 0x2b8   :  { %3998 = vst.msk [vmem:[%s5819_s2 + $0x50] sm:$0xff] %vm3987_vm1, %v3958_v41  ;;  %v4023_v29 = vsel %vm3987_vm1, %v3958_v41, 0.0  ;;  %v4051_v43 = vmul.f32 %v3958_v41, %v3958_v41  ;;  %v4078_v22 = vsel %vm3987_vm1, %v4052_v13, 0.0 }
 0x2b9   :  { %v4024_v44 = vadd.f32 %v4023_v29, %v4022_v36 }
 0x2ba   :  { %v4076_v45 = vsel %vm3987_vm1, %v4051_v43, 0.0 }
 0x2bb   :  { %v4077_v53 = vadd.f32 %v4076_v45, %v4075_v20  ;;  %v4026_v25 = vadd.f32 %v4025_v28, %v4024_v44 }
 0x2bd   :  { %v4079_v60 = vadd.f32 %v4078_v22, %v4077_v53 }
 0x2f0   :  { %v4174_v30 = vpop.f32.mrf.mxu1 }
 0x2f1   :  { %4001 = vst.msk [vmem:[%s5819_s2 + $0x68] sm:$0xff] %vm3987_vm1, %v4174_v30  ;;  %v4054_v10 = vmul.f32 %v4174_v30, %v4174_v30  ;;  %v4029_v12 = vsel %vm3987_vm1, %v4174_v30, 0.0 }
 0x2f2   :  { %v3968_v21 = vpop.f32.mrf.mxu1 }
 0x2f3   :  { %4000 = vst.msk [vmem:[%s5819_s2 + $0x60] sm:$0xff] %vm3987_vm1, %v3968_v21  ;;  %v4053_v47 = vmul.f32 %v3968_v21, %v3968_v21  ;;  %v4027_v0 = vsel %vm3987_vm1, %v3968_v21, 0.0  ;;  %v4082_v51 = vsel %vm3987_vm1, %v4054_v10, 0.0 }
 0x2f4   :  { %v4028_v18 = vadd.f32 %v4027_v0, %v4026_v25 }
 0x2f5   :  { %v4080_v55 = vsel %vm3987_vm1, %v4053_v47, 0.0 }
 0x2f6   :  { %v4081_v1 = vadd.f32 %v4080_v55, %v4079_v60  ;;  %v4030_v57 = vadd.f32 %v4029_v12, %v4028_v18 }
 0x2f8   :  { %v4083_v46 = vadd.f32 %v4082_v51, %v4081_v1 }
 0x2fd   :  { %v4177_v7 = vpop.f32.mrf.mxu1 }
 0x2fe   :  { %4003 = vst.msk [vmem:[%s5819_s2 + $0x78] sm:$0xff] %vm3987_vm1, %v4177_v7  ;;  %v4056_v52 = vmul.f32 %v4177_v7, %v4177_v7  ;;  %v4033_v58 = vsel %vm3987_vm1, %v4177_v7, 0.0 }
 0x2ff   :  { %v3978_v32 = vpop.f32.mrf.mxu1 }
 0x300   :  { %4002 = vst.msk [vmem:[%s5819_s2 + $0x70] sm:$0xff] %vm3987_vm1, %v3978_v32  ;;  %v4031_v6 = vsel %vm3987_vm1, %v3978_v32, 0.0  ;;  %v4055_v31 = vmul.f32 %v3978_v32, %v3978_v32  ;;  %v4086_v39 = vsel %vm3987_vm1, %v4056_v52, 0.0 }
 0x301   :  { %v4032_v11 = vadd.f32 %v4031_v6, %v4030_v57 }
 0x302   :  { %v4084_v59 = vsel %vm3987_vm1, %v4055_v31, 0.0 }
 0x303   :  { %v4034_v61 = vadd.f32 %v4033_v58, %v4032_v11  ;;  %v4085_v4 = vadd.f32 %v4084_v59, %v4083_v46 }
 0x305   :  { %v4035_v63 = vrot.slane %v4034_v61, 4  ;;  %v4087_v15 = vadd.f32 %v4086_v39, %v4085_v4 }
 0x307   :  { %v4036_v50 = vadd.f32 %v4035_v63, %v4034_v61  ;;  %v4088_v3 = vrot.slane %v4087_v15, 4 }
 0x309   :  { %v4037_v40 = vrot.slane %v4036_v50, 2  ;;  %v4089_v24 = vadd.f32 %v4088_v3, %v4087_v15 }
 0x30b   :  { %v4038_v23 = vadd.f32 %v4037_v40, %v4036_v50  ;;  %v4090_v9 = vrot.slane %v4089_v24, 2 }
 0x30d   :  { %v4039_v5 = vrot.slane %v4038_v23, 1  ;;  %v4091_v8 = vadd.f32 %v4090_v9, %v4089_v24 }
 0x30f   :  { %v4092_v2 = vrot.slane %v4091_v8, 1  ;;  %v4040_v42 = vadd.f32 %v4039_v5, %v4038_v23 }
 0x311   :  { %v4093_v27 = vadd.f32 %v4092_v2, %v4091_v8 }
 0x313   :  { %v4095_v48 = vsel %vm4094_vm15, %v4040_v42, %v4093_v27 }
 0x314   :  { %4097 = vst.msk [vmem:[%s5820_s3] sm:$0x3] %vm4096_vm13, %v4095_v48 }

</bundles_post_ra>
